<compile_context>
chip_gen: v5e
topology: v5e:2x2
jax: 0.10.0
libtpu: 0.0.40
codegen_flags: <defaults>
</compile_context>

<pallas_src>
import functools

import jax
import jax.numpy as jnp
import numpy as np
from jax.experimental import pallas as pl
from jax.experimental.pallas import tpu as pltpu

BN_EPS = 1e-3


def _mul_conv_bn_kernel(x_ref, s_ref, w_ref, gb_ref, o_ref, *, use_bf16_mxu):
    # x_ref:  (Cin, HW)      activation, NCHW-native flatten (channels on sublanes)
    # s_ref:  (1, Cin)       per-channel broadcast scale (from x173, N=1)
    # w_ref:  (Cb, Cin)      1x1 conv weight slice for this grid step
    # gb_ref: (Cb, 2)        packed BN params: [:, 0]=gamma, [:, 1]=beta
    # o_ref:  (Cb, HW)
    ws = w_ref[...] * s_ref[...]                       # fold scale into weight (VPU)
    if use_bf16_mxu:
        y = jnp.dot(ws.astype(jnp.bfloat16),
                    x_ref[...].astype(jnp.bfloat16),
                    preferred_element_type=jnp.float32)   # 1x1 conv == matmul (MXU)
    else:
        y = jnp.dot(ws, x_ref[...], preferred_element_type=jnp.float32)

    # Stage y through the output ref to bound its vreg live range: the epilogue
    # streams it back from VMEM instead of holding the whole (Cb, HW) f32 tile
    # in registers across two lane-reductions + y*y + the final FMA.
    o_ref[...] = y

    ys = o_ref[...]
    inv_n = 1.0 / ys.shape[1]
    # single-pass biased (training-mode) statistics over H*W (N=1)
    sum_y = jnp.sum(ys, axis=1, keepdims=True)         # (Cb, 1)
    sum_y2 = jnp.sum(ys * ys, axis=1, keepdims=True)   # (Cb, 1)
    mean = sum_y * inv_n
    var = jnp.maximum(sum_y2 * inv_n - mean * mean, 0.0)   # clamp f32 cancellation
    inv = jax.lax.rsqrt(var + BN_EPS)

    scale = gb_ref[:, 0:1] * inv                       # gamma * rsqrt(var+eps)
    shift = gb_ref[:, 1:2] - mean * scale              # beta - mean*scale
    o_ref[...] = o_ref[...] * scale + shift            # single FMA pass over (Cb, HW)


def _num_tensorcores():
    """2 on v7x (2 TCs/chip), else 1.  Falls back to 1 if detection fails."""
    try:
        kind = jax.devices()[0].device_kind.lower()
    except Exception:
        return 1
    return 2 if ("v7" in kind or "7x" in kind) else 1


def mul_conv_bn(x168, x173, conv_weight, bn_gamma, bn_beta,
                *, use_bf16_mxu=True, cout_splits=None):
    """x168: (1,Cin,H,W), x173: (1,Cin,1,1), conv_weight: (Cout,Cin,1,1)."""
    N, Cin, H, W = x168.shape
    Cout = conv_weight.shape[0]
    HW = H * W
    assert N == 1, "weight-folded path assumes N == 1 (matches the module spec)"
    # TODO(synk): for N > 1 the scale is per (batch, channel); use a batch grid
    # axis and fold per batch slice, with BN stats accumulated across batches.

    if cout_splits is None:
        cout_splits = _num_tensorcores()
    if Cout % cout_splits != 0 or (Cout // cout_splits) % 8 != 0:
        cout_splits = 1
    cb = Cout // cout_splits

    x = x168.reshape(Cin, HW)                      # free reshape (NCHW-native)
    s = x173.reshape(1, Cin)                       # free reshape
    w = conv_weight.reshape(Cout, Cin)             # free reshape
    gb = jnp.stack([bn_gamma, bn_beta], axis=1)    # (Cout, 2) packed BN params

    kernel = functools.partial(_mul_conv_bn_kernel, use_bf16_mxu=use_bf16_mxu)

    out_flat = pl.pallas_call(
        kernel,
        out_shape=jax.ShapeDtypeStruct((Cout, HW), jnp.float32),
        grid_spec=pltpu.PrefetchScalarGridSpec(
            num_scalar_prefetch=0,
            grid=(cout_splits,),
            in_specs=[
                pl.BlockSpec((Cin, HW), lambda i: (0, 0)),   # x: shared by all steps
                pl.BlockSpec((1, Cin), lambda i: (0, 0)),    # s: shared
                pl.BlockSpec((cb, Cin), lambda i: (i, 0)),   # w: per-step Cout slice
                pl.BlockSpec((cb, 2), lambda i: (i, 0)),     # gamma/beta slice
            ],
            out_specs=pl.BlockSpec((cb, HW), lambda i: (i, 0)),
        ),
        compiler_params=pltpu.CompilerParams(
            dimension_semantics=("parallel",)),
    )(x, s, w, gb)

    # free reshape back to NCHW (no transpose)
    return out_flat.reshape(N, Cout, H, W)


def _reference(x168, x173, conv_weight, bn_gamma, bn_beta):
    x174 = x173 * x168
    w = conv_weight.reshape(conv_weight.shape[0], conv_weight.shape[1])  # (Cout, Cin)
    y = jnp.einsum("nchw,oc->nohw", x174, w)
    mean = jnp.mean(y, axis=(0, 2, 3), keepdims=True)
    var = jnp.mean(jnp.square(y - mean), axis=(0, 2, 3), keepdims=True)
    return (y - mean) / jnp.sqrt(var + BN_EPS) * bn_gamma.reshape(1, -1, 1, 1) \
        + bn_beta.reshape(1, -1, 1, 1)


if __name__ == "__main__":
    # Shapes fixed by the module's layers: Conv2d(640 -> 160), input (1, 640, 14, 14)
    N, Cin, Cout, H, W = 1, 640, 160, 14, 14

    key = jax.random.PRNGKey(0)
    k1, k2, k3, k4, k5 = jax.random.split(key, 5)
    x168 = jax.random.normal(k1, (N, Cin, H, W), dtype=jnp.float32)
    x173 = jax.random.normal(k2, (N, Cin, 1, 1), dtype=jnp.float32)
    conv_weight = jax.random.normal(k3, (Cout, Cin, 1, 1), dtype=jnp.float32) * 0.05
    bn_gamma = 1.0 + 0.1 * jax.random.normal(k4, (Cout,), dtype=jnp.float32)
    bn_beta = 0.1 * jax.random.normal(k5, (Cout,), dtype=jnp.float32)

    ref = _reference(x168, x173, conv_weight, bn_gamma, bn_beta)

    # Full-f32 MXU path: matches the PyTorch f32 module tightly.
    out_f32 = mul_conv_bn(x168, x173, conv_weight, bn_gamma, bn_beta,
                          use_bf16_mxu=False)
    out_f32 = jax.block_until_ready(out_f32)
    np.testing.assert_allclose(np.asarray(out_f32), np.asarray(ref),
                               rtol=2e-4, atol=2e-4)

    # Default bf16-MXU path (perf): K=640 bf16 products accumulated in f32 give
    # ~3e-3 absolute error on the O(1) BN output -> bf16-appropriate tolerance.
    out_bf16 = mul_conv_bn(x168, x173, conv_weight, bn_gamma, bn_beta)
    out_bf16 = jax.block_until_ready(out_bf16)
    np.testing.assert_allclose(np.asarray(out_bf16), np.asarray(ref),
                               rtol=2e-2, atol=2e-2)

    print("KERNEL_OK")
</pallas_src>

<mosaic_0001>
module attributes {stable_mosaic.version = 11 : i64} {
  func.func @_mul_conv_bn_kernel(%arg0: i32, %arg1: memref<640x196xf32, #tpu.memory_space<vmem>>, %arg2: memref<1x640xf32, #tpu.memory_space<vmem>>, %arg3: memref<160x640xf32, #tpu.memory_space<vmem>>, %arg4: memref<160x2xf32, #tpu.memory_space<vmem>>, %arg5: memref<160x196xf32, #tpu.memory_space<vmem>>) attributes {dimension_semantics = [#tpu.dimension_semantics<parallel>], iteration_bounds = array<i64: 1>, scalar_prefetch = 0 : i64, scratch_operands = 0 : i64, tpu.core_type = #tpu.core_type<tc>, window_params = [{pipeline_mode = #tpu.pipeline_mode<synchronous>, transform_indices = @transform_0, window_bounds = array<i64: 640, 196>}, {pipeline_mode = #tpu.pipeline_mode<synchronous>, transform_indices = @transform_1, window_bounds = array<i64: 1, 640>}, {transform_indices = @transform_2, window_bounds = array<i64: 160, 640>}, {transform_indices = @transform_3, window_bounds = array<i64: 160, 2>}, {transform_indices = @transform_4, window_bounds = array<i64: 160, 196>}]} {
    %c0 = arith.constant 0 : index
    %c0_0 = arith.constant 0 : index
    %0 = vector.load %arg3[%c0, %c0_0] : memref<160x640xf32, #tpu.memory_space<vmem>>, vector<160x640xf32>
    %c0_1 = arith.constant 0 : index
    %c0_2 = arith.constant 0 : index
    %1 = vector.load %arg2[%c0_1, %c0_2] : memref<1x640xf32, #tpu.memory_space<vmem>>, vector<1x640xf32>
    %2 = vector.broadcast %1 : vector<1x640xf32> to vector<160x640xf32>
    %3 = arith.mulf %0, %2 : vector<160x640xf32>
    %c0_3 = arith.constant 0 : index
    %c0_4 = arith.constant 0 : index
    %4 = vector.load %arg1[%c0_3, %c0_4] : memref<640x196xf32, #tpu.memory_space<vmem>>, vector<640x196xf32>
    %cst = arith.constant dense<0.000000e+00> : vector<160x196xf32>
    %5 = tpu.matmul %3, %4, %cst {dimension_numbers = #tpu.dot_dimension_numbers<[1], [0], [0], [1], [0, 0, 1, 1], [], []>} : vector<160x640xf32>, vector<640x196xf32>, vector<160x196xf32> -> vector<160x196xf32>
    %c0_5 = arith.constant 0 : index
    %c0_6 = arith.constant 0 : index
    %6 = vector.load %arg5[%c0_5, %c0_6] : memref<160x196xf32, #tpu.memory_space<vmem>>, vector<160x196xf32>
    tpu.vector_store %arg5[%c0_5, %c0_6], %5 {strides = array<i32>} : memref<160x196xf32, #tpu.memory_space<vmem>>, vector<160x196xf32>,
    %c0_7 = arith.constant 0 : index
    %c0_8 = arith.constant 0 : index
    %7 = vector.load %arg5[%c0_7, %c0_8] : memref<160x196xf32, #tpu.memory_space<vmem>>, vector<160x196xf32>
    %cst_9 = arith.constant dense<0.000000e+00> : vector<160xf32>
    %8 = vector.multi_reduction <add>, %7, %cst_9 [1] : vector<160x196xf32> to vector<160xf32>
    %9 = vector.shape_cast %8 : vector<160xf32> to vector<160x1xf32>
    %10 = arith.mulf %7, %7 : vector<160x196xf32>
    %cst_10 = arith.constant dense<0.000000e+00> : vector<160xf32>
    %11 = vector.multi_reduction <add>, %10, %cst_10 [1] : vector<160x196xf32> to vector<160xf32>
    %12 = vector.shape_cast %11 : vector<160xf32> to vector<160x1xf32>
    %cst_11 = arith.constant 0.00510204071 : f32
    %13 = vector.broadcast %cst_11 : f32 to vector<160x1xf32>
    %14 = arith.mulf %9, %13 : vector<160x1xf32>
    %cst_12 = arith.constant 0.00510204071 : f32
    %15 = vector.broadcast %cst_12 : f32 to vector<160x1xf32>
    %16 = arith.mulf %12, %15 : vector<160x1xf32>
    %17 = arith.mulf %14, %14 : vector<160x1xf32>
    %18 = arith.subf %16, %17 : vector<160x1xf32>
    %cst_13 = arith.constant 0.000000e+00 : f32
    %19 = vector.broadcast %cst_13 : f32 to vector<160x1xf32>
    %20 = arith.maximumf %18, %19 : vector<160x1xf32>
    %cst_14 = arith.constant 1.000000e-03 : f32
    %21 = vector.broadcast %cst_14 : f32 to vector<160x1xf32>
    %22 = arith.addf %20, %21 : vector<160x1xf32>
    %23 = math.rsqrt %22 : vector<160x1xf32>
    %c0_15 = arith.constant 0 : index
    %c0_16 = arith.constant 0 : index
    %24 = vector.load %arg4[%c0_15, %c0_16] : memref<160x2xf32, #tpu.memory_space<vmem>>, vector<160x1xf32>
    %25 = arith.mulf %24, %23 : vector<160x1xf32>
    %c0_17 = arith.constant 0 : index
    %c1 = arith.constant 1 : index
    %26 = vector.load %arg4[%c0_17, %c1] : memref<160x2xf32, #tpu.memory_space<vmem>>, vector<160x1xf32>
    %27 = arith.mulf %14, %25 : vector<160x1xf32>
    %28 = arith.subf %26, %27 : vector<160x1xf32>
    %c0_18 = arith.constant 0 : index
    %c0_19 = arith.constant 0 : index
    %29 = vector.load %arg5[%c0_18, %c0_19] : memref<160x196xf32, #tpu.memory_space<vmem>>, vector<160x196xf32>
    %30 = vector.broadcast %25 : vector<160x1xf32> to vector<160x196xf32>
    %31 = arith.mulf %29, %30 : vector<160x196xf32>
    %32 = vector.broadcast %28 : vector<160x1xf32> to vector<160x196xf32>
    %33 = arith.addf %31, %32 : vector<160x196xf32>
    %c0_20 = arith.constant 0 : index
    %c0_21 = arith.constant 0 : index
    %34 = vector.load %arg5[%c0_20, %c0_21] : memref<160x196xf32, #tpu.memory_space<vmem>>, vector<160x196xf32>
    tpu.vector_store %arg5[%c0_20, %c0_21], %33 {strides = array<i32>} : memref<160x196xf32, #tpu.memory_space<vmem>>, vector<160x196xf32>,
    return
  }
  func.func @transform_0(%arg0: i32) -> (i32, i32) {
    %c0_i32 = arith.constant 0 : i32
    %c0_i32_0 = arith.constant 0 : i32
    %c0_i32_1 = arith.constant 0 : i32
    return %c0_i32, %c0_i32_0 : i32, i32
  }
  func.func @transform_1(%arg0: i32) -> (i32, i32) {
    %c0_i32 = arith.constant 0 : i32
    %c0_i32_0 = arith.constant 0 : i32
    %c0_i32_1 = arith.constant 0 : i32
    return %c0_i32, %c0_i32_0 : i32, i32
  }
  func.func @transform_2(%arg0: i32) -> (i32, i32) {
    %c0_i32 = arith.constant 0 : i32
    %c0_i32_0 = arith.constant 0 : i32
    return %arg0, %c0_i32 : i32, i32
  }
  func.func @transform_3(%arg0: i32) -> (i32, i32) {
    %c0_i32 = arith.constant 0 : i32
    %c0_i32_0 = arith.constant 0 : i32
    return %arg0, %c0_i32 : i32, i32
  }
  func.func @transform_4(%arg0: i32) -> (i32, i32) {
    %c0_i32 = arith.constant 0 : i32
    %c0_i32_0 = arith.constant 0 : i32
    return %arg0, %c0_i32 : i32, i32
  }
}

</mosaic_0001>

<bundles_post_ra>
// kernel: tpu_custom_call.1
= control target key start
LH: loop header
LB: loop body
LE: loop exit
PB: predicated region body
PF: predicated region fallthrough
CT: control target
= control target key end

     0   :  { %s4603_s0 = inlined_call_operand.vmem [shape: f32[640,196], index: 0, kind: input, shape index: {}]   ;;  %s4604_s1 = inlined_call_operand.vmem [shape: f32[1,640], index: 1, kind: input, shape index: {}]   ;;  %s4605_s2 = inlined_call_operand.vmem [shape: f32[160,640], index: 2, kind: input, shape index: {}]   ;;  %s4606_s3 = inlined_call_operand.vmem [shape: f32[160,2], index: 3, kind: input, shape index: {}]   ;;  %s4607_s4 = inlined_call_operand.hbm [shape: f32[160,196], index: 4, kind: output, shape index: {}]  }
   0x1   :  { %v260_v0 = vld [vmem:[%s4603_s0 + $0xf0] sm:$0xff]  ;;  %v258_v2 = vld [vmem:[%s4603_s0 + $0xe0] sm:$0xff] }
   0x2   :  { %v292_v1 = vld [vmem:[%s4603_s0 + $0x1f0] sm:$0xff]  ;;  %2259 = vmatpush.msra.mxu2 %v260_v0  ;;  %v290_v3 = vld [vmem:[%s4603_s0 + $0x1e0] sm:$0xff]  ;;  %390 = vmatpush.msra.mxu0 %v260_v0 }
   0x3   :  { %2275 = vmatpush.msra.mxu3 %v292_v1  ;;  %v256_v4 = vld [vmem:[%s4603_s0 + $0xd0] sm:$0xff]  ;;  %467 = vmatpush.msra.mxu1 %v292_v1  ;;  %v254_v6 = vld [vmem:[%s4603_s0 + $0xc0] sm:$0xff] }
   0x4   :  { %v288_v5 = vld [vmem:[%s4603_s0 + $0x1d0] sm:$0xff]  ;;  %2260 = vmatpush.msra.mxu2 %v258_v2  ;;  %v286_v7 = vld [vmem:[%s4603_s0 + $0x1c0] sm:$0xff]  ;;  %391 = vmatpush.msra.mxu0 %v258_v2 }
   0x5   :  { %2276 = vmatpush.msra.mxu3 %v290_v3  ;;  %468 = vmatpush.msra.mxu1 %v290_v3  ;;  %v252_v8 = vld [vmem:[%s4603_s0 + $0xb0] sm:$0xff]  ;;  %v250_v10 = vld [vmem:[%s4603_s0 + $0xa0] sm:$0xff] }
   0x6   :  { %2261 = vmatpush.msra.mxu2 %v256_v4  ;;  %v284_v9 = vld [vmem:[%s4603_s0 + $0x1b0] sm:$0xff]  ;;  %392 = vmatpush.msra.mxu0 %v256_v4  ;;  %v282_v11 = vld [vmem:[%s4603_s0 + $0x1a0] sm:$0xff] }
   0x7   :  { %2277 = vmatpush.msra.mxu3 %v288_v5  ;;  %469 = vmatpush.msra.mxu1 %v288_v5  ;;  %v248_v12 = vld [vmem:[%s4603_s0 + $0x90] sm:$0xff]  ;;  %v246_v14 = vld [vmem:[%s4603_s0 + $0x80] sm:$0xff] }
   0x8   :  { %2262 = vmatpush.msra.mxu2 %v254_v6  ;;  %393 = vmatpush.msra.mxu0 %v254_v6  ;;  %v280_v13 = vld [vmem:[%s4603_s0 + $0x190] sm:$0xff]  ;;  %v278_v15 = vld [vmem:[%s4603_s0 + $0x180] sm:$0xff] }
   0x9   :  { %2278 = vmatpush.msra.mxu3 %v286_v7  ;;  %470 = vmatpush.msra.mxu1 %v286_v7  ;;  %v244_v16 = vld [vmem:[%s4603_s0 + $0x70] sm:$0xff]  ;;  %v242_v18 = vld [vmem:[%s4603_s0 + $0x60] sm:$0xff] }
   0xa   :  { %2263 = vmatpush.msra.mxu2 %v252_v8  ;;  %394 = vmatpush.msra.mxu0 %v252_v8  ;;  %v276_v17 = vld [vmem:[%s4603_s0 + $0x170] sm:$0xff]  ;;  %v274_v19 = vld [vmem:[%s4603_s0 + $0x160] sm:$0xff] }
   0xb   :  { %2279 = vmatpush.msra.mxu3 %v284_v9  ;;  %471 = vmatpush.msra.mxu1 %v284_v9  ;;  %v240_v20 = vld [vmem:[%s4603_s0 + $0x50] sm:$0xff]  ;;  %v238_v22 = vld [vmem:[%s4603_s0 + $0x40] sm:$0xff] }
   0xc   :  { %2264 = vmatpush.msra.mxu2 %v250_v10  ;;  %395 = vmatpush.msra.mxu0 %v250_v10  ;;  %v272_v21 = vld [vmem:[%s4603_s0 + $0x150] sm:$0xff]  ;;  %v270_v23 = vld [vmem:[%s4603_s0 + $0x140] sm:$0xff] }
   0xd   :  { %2280 = vmatpush.msra.mxu3 %v282_v11  ;;  %472 = vmatpush.msra.mxu1 %v282_v11 }
   0xe   :  { %2265 = vmatpush.msra.mxu2 %v248_v12  ;;  %396 = vmatpush.msra.mxu0 %v248_v12 }
   0xf   :  { %2281 = vmatpush.msra.mxu3 %v280_v13  ;;  %473 = vmatpush.msra.mxu1 %v280_v13 }
  0x10   :  { %2266 = vmatpush.msra.mxu2 %v246_v14  ;;  %397 = vmatpush.msra.mxu0 %v246_v14 }
  0x11   :  { %2282 = vmatpush.msra.mxu3 %v278_v15  ;;  %474 = vmatpush.msra.mxu1 %v278_v15 }
  0x12   :  { %2267 = vmatpush.msra.mxu2 %v244_v16  ;;  %398 = vmatpush.msra.mxu0 %v244_v16 }
  0x13   :  { %2283 = vmatpush.msra.mxu3 %v276_v17  ;;  %475 = vmatpush.msra.mxu1 %v276_v17 }
  0x14   :  { %2268 = vmatpush.msra.mxu2 %v242_v18  ;;  %399 = vmatpush.msra.mxu0 %v242_v18 }
  0x15   :  { %2284 = vmatpush.msra.mxu3 %v274_v19  ;;  %476 = vmatpush.msra.mxu1 %v274_v19 }
  0x16   :  { %9 = vsyncpa [#allocation3], 0  ;;  %2269 = vmatpush.msra.mxu2 %v240_v20  ;;  %v2500_v24 = vld [vmem:[%s4604_s1] sm:$0x1f]  ;;  %v236_v25 = vld [vmem:[%s4603_s0 + $0x30] sm:$0xff]  ;;  %400 = vmatpush.msra.mxu0 %v240_v20  ;;  %vm1161_vm0 = vcmask 556032  }
  0x17   :  { %2285 = vmatpush.msra.mxu3 %v272_v21  ;;  %v268_v26 = vld [vmem:[%s4603_s0 + $0x130] sm:$0xff]  ;;  %477 = vmatpush.msra.mxu1 %v272_v21  ;;  %v234_v27 = vld [vmem:[%s4603_s0 + $0x20] sm:$0xff]  ;;  %v2515_v29 = vperm.slane %v2500_v24, 0  ;;  %v2518_v30 = vperm.slane %v2500_v24, 1  ;;  %v69_v32 = vld [vmem:[%s4605_s2 + $0x198] sm:$0xff]  ;;  %s2395_s25 = smov 1  }
  0x18   :  { %2270 = vmatpush.msra.mxu2 %v238_v22  ;;  %v266_v28 = vld [vmem:[%s4603_s0 + $0x120] sm:$0xff]  ;;  %401 = vmatpush.msra.mxu0 %v238_v22  ;;  %v68_v31 = vld [vmem:[%s4605_s2 + $0x190] sm:$0xff]  ;;  %v19_v40 = vld [vmem:[%s4605_s2 + $0x8] sm:$0xff]  ;;  %s2398_s12 = smov 256   ;;  %s2399_s13 = smov 16  }
  0x19   :  { %2286 = vmatpush.msra.mxu3 %v270_v23  ;;  %478 = vmatpush.msra.mxu1 %v270_v23  ;;  %v232_v33 = vld [vmem:[%s4603_s0 + $0x10] sm:$0xff]  ;;  %v230_v35 = vld [vmem:[%s4603_s0] sm:$0xff]  ;;  %v2539_v37 = vmul.f32 %v2515_v29, %v68_v31  ;;  %v2542_v38 = vmul.f32 %v2518_v30, %v69_v32  ;;  %v2568_v46 = vmul.f32 %v2518_v30, %v19_v40  ;;  %v73_v47 = vld [vmem:[%s4605_s2 + $0x1b8] sm:$0xff] }
  0x1a   :  { %2271 = vmatpush.msra.mxu2 %v236_v25  ;;  %v264_v34 = vld [vmem:[%s4603_s0 + $0x110] sm:$0xff]  ;;  %402 = vmatpush.msra.mxu0 %v236_v25  ;;  %v262_v36 = vld [vmem:[%s4603_s0 + $0x100] sm:$0xff]  ;;  %v261_v52 = vld [vmem:[%s4603_s0 + $0xf8] sm:$0xff]  ;;  %v2589_v53 = vmul.f32 %v2515_v29, %v73_v47 }
  0x1b   :  { %2287 = vmatpush.msra.mxu3 %v268_v26  ;;  %479 = vmatpush.msra.mxu1 %v268_v26  ;;  %4663 = vst [vmem:[#allocation5_spill] sm:$0xff] %v2542_v38  ;;  %v18_v39 = vld [vmem:[%s4605_s2] sm:$0xff]  ;;  %v324_v41 = vld [vmem:[%s4603_s0 + $0x2f0] sm:$0xff]  ;;  %v23_v57 = vld [vmem:[%s4605_s2 + $0x28] sm:$0xff] }
  0x1c   :  { %2272 = vmatpush.msra.mxu2 %v234_v27  ;;  %403 = vmatpush.msra.mxu0 %v234_v27  ;;  %v356_v42 = vld [vmem:[%s4603_s0 + $0x3f0] sm:$0xff]  ;;  %v322_v43 = vld [vmem:[%s4603_s0 + $0x2e0] sm:$0xff]  ;;  %v2565_v45 = vmul.f32 %v2515_v29, %v18_v39  ;;  %v259_v60 = vld [vmem:[%s4603_s0 + $0xe8] sm:$0xff]  ;;  %v2623_v63 = vmul.f32 %v2515_v29, %v23_v57 }
  0x1d   :  { %2288 = vmatpush.msra.mxu3 %v266_v28  ;;  %480 = vmatpush.msra.mxu1 %v266_v28  ;;  %v354_v44 = vld [vmem:[%s4603_s0 + $0x3e0] sm:$0xff]  ;;  %v320_v49 = vld [vmem:[%s4603_s0 + $0x2d0] sm:$0xff]  ;;  %v257_v2 = vld [vmem:[%s4603_s0 + $0xd8] sm:$0xff] }
  0x1e   :  { %2273 = vmatpush.msra.mxu2 %v232_v33  ;;  %404 = vmatpush.msra.mxu0 %v232_v33  ;;  %v74_v48 = vld [vmem:[%s4605_s2 + $0x1c0] sm:$0xff]  ;;  %v388_v50 = vld [vmem:[%s4603_s0 + $0x4f0] sm:$0xff]  ;;  %v79_v4 = vld [vmem:[%s4605_s2 + $0x1e8] sm:$0xff] }
  0x1f   :  { %2289 = vmatpush.msra.mxu3 %v264_v34  ;;  %481 = vmatpush.msra.mxu1 %v264_v34  ;;  %v352_v51 = vld [vmem:[%s4603_s0 + $0x3d0] sm:$0xff]  ;;  %v2592_v54 = vmul.f32 %v2518_v30, %v74_v48  ;;  %v318_v55 = vld [vmem:[%s4603_s0 + $0x2c0] sm:$0xff]  ;;  %v255_v8 = vld [vmem:[%s4603_s0 + $0xc8] sm:$0xff]  ;;  %v2656_v10 = vmul.f32 %v2518_v30, %v79_v4 }
  0x20   :  { %2274 = vmatpush.msra.mxu2 %v230_v35  ;;  %405 = vmatpush.msra.mxu0 %v230_v35  ;;  %v386_v56 = vld [vmem:[%s4603_s0 + $0x4e0] sm:$0xff]  ;;  %v24_v58 = vld [vmem:[%s4605_s2 + $0x30] sm:$0xff]  ;;  %v29_v14 = vld [vmem:[%s4605_s2 + $0x58] sm:$0xff] }
  0x21   :  { %2290 = vmatpush.msra.mxu3 %v262_v36  ;;  %436 = vmatmul.f32.vlgmr.msra.gmra.mxu2 %v2539_v37  ;;  %4664 = vst [vmem:[#allocation6_spill] sm:$0xff] %v2592_v54  ;;  %v350_v59 = vld [vmem:[%s4603_s0 + $0x3c0] sm:$0xff]  ;;  %v316_v61 = vld [vmem:[%s4603_s0 + $0x2b0] sm:$0xff]  ;;  %v2626_v0 = vmul.f32 %v2518_v30, %v24_v58  ;;  %v253_v16 = vld [vmem:[%s4603_s0 + $0xb8] sm:$0xff]  ;;  %v2690_v20 = vmul.f32 %v2518_v30, %v29_v14 }
  0x22   :  { %513 = vmatmul.f32.vlgmr.msra.gmra.mxu3 %v2542_v38  ;;  %544 = vmatpush.msrb.mxu2 %v324_v41  ;;  %v384_v62 = vld [vmem:[%s4603_s0 + $0x4d0] sm:$0xff]  ;;  %v78_v3 = vld [vmem:[%s4605_s2 + $0x1e0] sm:$0xff]  ;;  %4665 = vst [vmem:[#allocation7_spill] sm:$0xff] %v2656_v10  ;;  %v251_v22 = vld [vmem:[%s4603_s0 + $0xa8] sm:$0xff] }
  0x23   :  { %621 = vmatpush.msrb.mxu3 %v356_v42  ;;  %482 = vmatpush.msra.mxu1 %v262_v36  ;;  %v348_v1 = vld [vmem:[%s4603_s0 + $0x3b0] sm:$0xff]  ;;  %v314_v5 = vld [vmem:[%s4603_s0 + $0x2a0] sm:$0xff]  ;;  %v2653_v9 = vmul.f32 %v2515_v29, %v78_v3  ;;  %v83_v23 = vld [vmem:[%s4605_s2 + $0x208] sm:$0xff] }
  0x24   :  { %545 = vmatpush.msrb.mxu2 %v322_v43  ;;  %406 = vmatmul.f32.vlgmr.msra.gmra.mxu0 %v2565_v45  ;;  %v382_v6 = vld [vmem:[%s4603_s0 + $0x4c0] sm:$0xff]  ;;  %v312_v11 = vld [vmem:[%s4603_s0 + $0x290] sm:$0xff]  ;;  %v249_v31 = vld [vmem:[%s4603_s0 + $0x98] sm:$0xff]  ;;  %v2717_v32 = vmul.f32 %v2515_v29, %v83_v23 }
  0x25   :  { %622 = vmatpush.msrb.mxu3 %v354_v44  ;;  %483 = vmatmul.f32.vlgmr.msra.gmra.mxu1 %v2568_v46  ;;  %v346_v7 = vld [vmem:[%s4603_s0 + $0x3a0] sm:$0xff]  ;;  %v380_v12 = vld [vmem:[%s4603_s0 + $0x4b0] sm:$0xff]  ;;  %v33_v36 = vld [vmem:[%s4605_s2 + $0x78] sm:$0xff] }
  0x26   :  { %546 = vmatpush.msrb.mxu2 %v320_v49  ;;  %698 = vmatpush.msrb.mxu0 %v388_v50  ;;  %v28_v13 = vld [vmem:[%s4605_s2 + $0x50] sm:$0xff]  ;;  %v310_v17 = vld [vmem:[%s4603_s0 + $0x280] sm:$0xff]  ;;  %v247_v41 = vld [vmem:[%s4603_s0 + $0x88] sm:$0xff]  ;;  %v2751_v44 = vmul.f32 %v2515_v29, %v33_v36 }
  0x27   :  { %623 = vmatpush.msrb.mxu3 %v352_v51  ;;  %775 = vmatpush.msrb.mxu1 %v261_v52  ;;  %v344_v15 = vld [vmem:[%s4603_s0 + $0x390] sm:$0xff]  ;;  %v378_v18 = vld [vmem:[%s4603_s0 + $0x4a0] sm:$0xff]  ;;  %v2687_v19 = vmul.f32 %v2515_v29, %v28_v13  ;;  %v245_v49 = vld [vmem:[%s4603_s0 + $0x78] sm:$0xff] }
  0x28   :  { %547 = vmatpush.msrb.mxu2 %v318_v55  ;;  %699 = vmatpush.msrb.mxu0 %v386_v56  ;;  %v342_v21 = vld [vmem:[%s4603_s0 + $0x380] sm:$0xff]  ;;  %v84_v25 = vld [vmem:[%s4605_s2 + $0x210] sm:$0xff]  ;;  %v89_v51 = vld [vmem:[%s4605_s2 + $0x238] sm:$0xff] }
  0x29   :  { %439 = vmatmul.f32.gmra.mxu2 %v2589_v53  ;;  %624 = vmatpush.msrb.mxu3 %v350_v59  ;;  %v308_v26 = vld [vmem:[%s4603_s0 + $0x270] sm:$0xff]  ;;  %v2720_v33 = vmul.f32 %v2518_v30, %v84_v25  ;;  %v306_v34 = vld [vmem:[%s4603_s0 + $0x260] sm:$0xff]  ;;  %v243_v57 = vld [vmem:[%s4603_s0 + $0x68] sm:$0xff]  ;;  %v2784_v59 = vmul.f32 %v2518_v30, %v89_v51 }
  0x2a   :  { %516 = vmatmul.f32.gmra.mxu3 %v2592_v54  ;;  %776 = vmatpush.msrb.mxu1 %v259_v60  ;;  %v376_v27 = vld [vmem:[%s4603_s0 + $0x490] sm:$0xff]  ;;  %v374_v35 = vld [vmem:[%s4603_s0 + $0x480] sm:$0xff]  ;;  %v241_v3 = vld [vmem:[%s4603_s0 + $0x58] sm:$0xff] }
  0x2b   :  { %548 = vmatpush.msrb.mxu2 %v316_v61  ;;  %700 = vmatpush.msrb.mxu0 %v384_v62  ;;  %v340_v28 = vld [vmem:[%s4603_s0 + $0x370] sm:$0xff]  ;;  %4666 = vst [vmem:[#allocation8_spill] sm:$0xff] %v2720_v33  ;;  %v34_v39 = vld [vmem:[%s4605_s2 + $0x80] sm:$0xff]  ;;  %v239_v13 = vld [vmem:[%s4603_s0 + $0x48] sm:$0xff] }
  0x2c   :  { %625 = vmatpush.msrb.mxu3 %v348_v1  ;;  %777 = vmatpush.msrb.mxu1 %v257_v2  ;;  %v338_v40 = vld [vmem:[%s4603_s0 + $0x360] sm:$0xff]  ;;  %v304_v42 = vld [vmem:[%s4603_s0 + $0x250] sm:$0xff]  ;;  %v2754_v47 = vmul.f32 %v2518_v30, %v34_v39  ;;  %4667 = vst [vmem:[#allocation9_spill] sm:$0xff] %v2784_v59  ;;  %v39_v1 = vld [vmem:[%s4605_s2 + $0xa8] sm:$0xff] }
  0x2d   :  { %409 = vmatmul.f32.gmra.mxu0 %v2623_v63  ;;  %486 = vmatmul.f32.gmra.mxu1 %v2626_v0  ;;  %v372_v43 = vld [vmem:[%s4603_s0 + $0x470] sm:$0xff]  ;;  %v302_v52 = vld [vmem:[%s4603_s0 + $0x240] sm:$0xff]  ;;  %v99_v23 = vld [vmem:[%s4605_s2 + $0x288] sm:$0xff] }
  0x2e   :  { %549 = vmatpush.msrb.mxu2 %v314_v5  ;;  %701 = vmatpush.msrb.mxu0 %v382_v6  ;;  %v336_v48 = vld [vmem:[%s4603_s0 + $0x350] sm:$0xff]  ;;  %v370_v55 = vld [vmem:[%s4603_s0 + $0x460] sm:$0xff]  ;;  %v2812_v5 = vmul.f32 %v2518_v30, %v39_v1  ;;  %v235_v36 = vld [vmem:[%s4603_s0 + $0x28] sm:$0xff] }
  0x2f   :  { %626 = vmatpush.msrb.mxu3 %v346_v7  ;;  %778 = vmatpush.msrb.mxu1 %v255_v8  ;;  %v88_v50 = vld [vmem:[%s4605_s2 + $0x230] sm:$0xff]  ;;  %v334_v56 = vld [vmem:[%s4603_s0 + $0x340] sm:$0xff]  ;;  %v293_v51 = vld [vmem:[%s4603_s0 + $0x1f8] sm:$0xff] }
  0x30   :  { %550 = vmatpush.msrb.mxu2 %v312_v11  ;;  %702 = vmatpush.msrb.mxu0 %v380_v12  ;;  %v2781_v58 = vmul.f32 %v2515_v29, %v88_v50  ;;  %v300_v60 = vld [vmem:[%s4603_s0 + $0x230] sm:$0xff]  ;;  %v38_v62 = vld [vmem:[%s4605_s2 + $0xa0] sm:$0xff]  ;;  %v93_v11 = vld [vmem:[%s4605_s2 + $0x258] sm:$0xff] }
  0x31   :  { %442 = vmatmul.f32.gmra.mxu2 %v2653_v9  ;;  %627 = vmatpush.msrb.mxu3 %v344_v15  ;;  %v368_v61 = vld [vmem:[%s4603_s0 + $0x450] sm:$0xff]  ;;  %v2809_v4 = vmul.f32 %v2515_v29, %v38_v62  ;;  %v298_v6 = vld [vmem:[%s4603_s0 + $0x220] sm:$0xff]  ;;  %v53_v1 = vld [vmem:[%s4605_s2 + $0x118] sm:$0xff] }
  0x32   :  { %519 = vmatmul.f32.gmra.mxu3 %v2656_v10  ;;  %779 = vmatpush.msrb.mxu1 %v253_v16  ;;  %v332_v2 = vld [vmem:[%s4603_s0 + $0x330] sm:$0xff]  ;;  %v366_v7 = vld [vmem:[%s4603_s0 + $0x440] sm:$0xff]  ;;  %v2839_v16 = vmul.f32 %v2515_v29, %v93_v11  ;;  %v323_v11 = vld [vmem:[%s4603_s0 + $0x2e8] sm:$0xff] }
  0x33   :  { %551 = vmatpush.msrb.mxu2 %v310_v17  ;;  %703 = vmatpush.msrb.mxu0 %v378_v18  ;;  %v330_v8 = vld [vmem:[%s4603_s0 + $0x320] sm:$0xff]  ;;  %v296_v14 = vld [vmem:[%s4603_s0 + $0x210] sm:$0xff]  ;;  %v43_v18 = vld [vmem:[%s4605_s2 + $0xc8] sm:$0xff] }
  0x34   :  { %628 = vmatpush.msrb.mxu3 %v342_v21  ;;  %780 = vmatpush.msrb.mxu1 %v251_v22  ;;  %v94_v12 = vld [vmem:[%s4605_s2 + $0x260] sm:$0xff]  ;;  %v364_v15 = vld [vmem:[%s4603_s0 + $0x430] sm:$0xff]  ;;  %v2861_v25 = vmul.f32 %v2515_v29, %v43_v18 }
  0x35   :  { %412 = vmatmul.f32.gmra.mxu0 %v2687_v19  ;;  %489 = vmatmul.f32.gmra.mxu1 %v2690_v20  ;;  %v2842_v17 = vmul.f32 %v2518_v30, %v94_v12  ;;  %v44_v21 = vld [vmem:[%s4605_s2 + $0xd0] sm:$0xff]  ;;  %v98_v22 = vld [vmem:[%s4605_s2 + $0x280] sm:$0xff] }
  0x36   :  { %552 = vmatpush.msrb.mxu2 %v308_v26  ;;  %704 = vmatpush.msrb.mxu0 %v376_v27  ;;  %v2864_v26 = vmul.f32 %v2518_v30, %v44_v21  ;;  %v328_v27 = vld [vmem:[%s4603_s0 + $0x310] sm:$0xff]  ;;  %v2885_v39 = vmul.f32 %v2515_v29, %v98_v22  ;;  %v58_v21 = vld [vmem:[%s4605_s2 + $0x140] sm:$0xff]  ;;  %v59_v22 = vld [vmem:[%s4605_s2 + $0x148] sm:$0xff] }
  0x37   :  { %629 = vmatpush.msrb.mxu3 %v340_v28  ;;  %781 = vmatpush.msrb.mxu1 %v249_v31  ;;  %4668 = vst [vmem:[#allocation10_spill] sm:$0xff] %v2842_v17  ;;  %v237_v28 = vld [vmem:[%s4603_s0 + $0x38] sm:$0xff]  ;;  %v294_v31 = vld [vmem:[%s4603_s0 + $0x200] sm:$0xff]  ;;  %v360_v50 = vld [vmem:[%s4603_s0 + $0x410] sm:$0xff] }
  0x38   :  { %553 = vmatpush.msrb.mxu2 %v306_v34  ;;  %705 = vmatpush.msrb.mxu0 %v374_v35  ;;  %v362_v34 = vld [vmem:[%s4603_s0 + $0x420] sm:$0xff]  ;;  %v108_v12 = vld [vmem:[%s4605_s2 + $0x2d0] sm:$0xff] }
  0x39   :  { %445 = vmatmul.f32.gmra.mxu2 %v2717_v32  ;;  %630 = vmatpush.msrb.mxu3 %v338_v40  ;;  %v326_v35 = vld [vmem:[%s4603_s0 + $0x300] sm:$0xff]  ;;  %v2888_v40 = vmul.f32 %v2518_v30, %v99_v23  ;;  %v2987_v23 = vmul.f32 %v2515_v29, %v58_v21 }
  0x3a   :  { %522 = vmatmul.f32.gmra.mxu3 %v2720_v33  ;;  %782 = vmatpush.msrb.mxu1 %v247_v41  ;;  %v48_v41 = vld [vmem:[%s4605_s2 + $0xf0] sm:$0xff]  ;;  %v26_v21 = vld [vmem:[%s4605_s2 + $0x40] sm:$0xff] }
  0x3b   :  { %554 = vmatpush.msrb.mxu2 %v304_v42  ;;  %706 = vmatpush.msrb.mxu0 %v372_v43  ;;  %4669 = vst [vmem:[#allocation11_spill] sm:$0xff] %v2888_v40  ;;  %v49_v42 = vld [vmem:[%s4605_s2 + $0xf8] sm:$0xff]  ;;  %v103_v43 = vld [vmem:[%s4605_s2 + $0x2a8] sm:$0xff] }
  0x3c   :  { %631 = vmatpush.msrb.mxu3 %v336_v48  ;;  %783 = vmatpush.msrb.mxu1 %v245_v49  ;;  %v2904_v48 = vmul.f32 %v2515_v29, %v48_v41  ;;  %v2907_v49 = vmul.f32 %v2518_v30, %v49_v42  ;;  %v387_v41 = vld [vmem:[%s4603_s0 + $0x4e8] sm:$0xff] }
  0x3d   :  { %415 = vmatmul.f32.gmra.mxu0 %v2751_v44  ;;  %492 = vmatmul.f32.gmra.mxu1 %v2754_v47 }
  0x3e   :  { %555 = vmatpush.msrb.mxu2 %v302_v52  ;;  %707 = vmatpush.msrb.mxu0 %v370_v55  ;;  %4670 = vst [vmem:[#allocation12_spill] sm:$0xff] %v2907_v49  ;;  %v233_v52 = vld [vmem:[%s4603_s0 + $0x18] sm:$0xff]  ;;  %v104_v55 = vld [vmem:[%s4605_s2 + $0x2b0] sm:$0xff] }
  0x3f   :  { %632 = vmatpush.msrb.mxu3 %v334_v56  ;;  %784 = vmatpush.msrb.mxu1 %v243_v57  ;;  %v325_v56 = vld [vmem:[%s4603_s0 + $0x2f8] sm:$0xff]  ;;  %v358_v57 = vld [vmem:[%s4603_s0 + $0x400] sm:$0xff]  ;;  %v2934_v62 = vmul.f32 %v2518_v30, %v104_v55 }
  0x40   :  { %556 = vmatpush.msrb.mxu2 %v300_v60  ;;  %708 = vmatpush.msrb.mxu0 %v368_v61  ;;  %v231_v60 = vld [vmem:[%s4603_s0 + $0x8] sm:$0xff]  ;;  %v2931_v61 = vmul.f32 %v2515_v29, %v103_v43 }
  0x41   :  { %448 = vmatmul.f32.gmra.mxu2 %v2781_v58  ;;  %633 = vmatpush.msrb.mxu3 %v332_v2  ;;  %4671 = vst [vmem:[#allocation13_spill] sm:$0xff] %v2934_v62  ;;  %v54_v2 = vld [vmem:[%s4605_s2 + $0x120] sm:$0xff] }
  0x42   :  { %525 = vmatmul.f32.gmra.mxu3 %v2784_v59  ;;  %785 = vmatpush.msrb.mxu1 %v241_v3  ;;  %v2947_v3 = vmul.f32 %v2515_v29, %v53_v1  ;;  %v353_v1 = vld [vmem:[%s4603_s0 + $0x3d8] sm:$0xff] }
  0x43   :  { %557 = vmatpush.msrb.mxu2 %v298_v6  ;;  %709 = vmatpush.msrb.mxu0 %v366_v7  ;;  %v2950_v6 = vmul.f32 %v2518_v30, %v54_v2  ;;  %v291_v7 = vld [vmem:[%s4603_s0 + $0x1e8] sm:$0xff]  ;;  %v20_v2 = vld [vmem:[%s4605_s2 + $0x10] sm:$0xff] }
  0x44   :  { %634 = vmatpush.msrb.mxu3 %v330_v8  ;;  %786 = vmatpush.msrb.mxu1 %v239_v13  ;;  %v357_v8 = vld [vmem:[%s4603_s0 + $0x3f8] sm:$0xff] }
  0x45   :  { %418 = vmatmul.f32.gmra.mxu0 %v2809_v4  ;;  %495 = vmatmul.f32.gmra.mxu1 %v2812_v5  ;;  %4672 = vst [vmem:[#allocation14_spill] sm:$0xff] %v2950_v6  ;;  %v109_v13 = vld [vmem:[%s4605_s2 + $0x2d8] sm:$0xff] }
  0x46   :  { %558 = vmatpush.msrb.mxu2 %v296_v14  ;;  %710 = vmatpush.msrb.mxu0 %v364_v15  ;;  %v389_v14 = vld [vmem:[%s4603_s0 + $0x4f8] sm:$0xff]  ;;  %v2971_v15 = vmul.f32 %v2515_v29, %v108_v12  ;;  %v2974_v18 = vmul.f32 %v2518_v30, %v109_v13  ;;  %v319_v13 = vld [vmem:[%s4603_s0 + $0x2c8] sm:$0xff] }
  0x47   :  { %635 = vmatpush.msrb.mxu3 %v328_v27  ;;  %787 = vmatpush.msrb.mxu1 %v237_v28  ;;  %v2990_v27 = vmul.f32 %v2518_v30, %v59_v22  ;;  %v289_v28 = vld [vmem:[%s4603_s0 + $0x1d8] sm:$0xff] }
  0x48   :  { %559 = vmatpush.msrb.mxu2 %v294_v31  ;;  %711 = vmatpush.msrb.mxu0 %v362_v34  ;;  %4673 = vst [vmem:[#allocation15_spill] sm:$0xff] %v2974_v18  ;;  %v355_v31 = vld [vmem:[%s4603_s0 + $0x3e8] sm:$0xff]  ;;  %v321_v34 = vld [vmem:[%s4603_s0 + $0x2d8] sm:$0xff] }
  0x49   :  { %451 = vmatmul.f32.gmra.mxu2 %v2839_v16  ;;  %636 = vmatpush.msrb.mxu3 %v326_v35  ;;  %4674 = vst [vmem:[#allocation16_spill] sm:$0xff] %v2990_v27  ;;  %v113_v35 = vld [vmem:[%s4605_s2 + $0x2f8] sm:$0xff] }
  0x4a   :  { %528 = vmatmul.f32.gmra.mxu3 %v2842_v17  ;;  %788 = vmatpush.msrb.mxu1 %v235_v36  ;;  %v114_v36 = vld [vmem:[%s4605_s2 + $0x300] sm:$0xff]  ;;  %v3011_v42 = vmul.f32 %v2515_v29, %v113_v35  ;;  %v285_v35 = vld [vmem:[%s4603_s0 + $0x1b8] sm:$0xff] }
  0x4b   :  { %712 = vmatpush.msrb.mxu0 %v360_v50  ;;  %852 = vmatpush.msra.mxu2 %v293_v51  ;;  %v3014_v43 = vmul.f32 %v2518_v30, %v114_v36  ;;  %v63_v50 = vld [vmem:[%s4605_s2 + $0x168] sm:$0xff]  ;;  %v64_v51 = vld [vmem:[%s4605_s2 + $0x170] sm:$0xff] }
  0x4c   :  { %789 = vmatpush.msrb.mxu1 %v233_v52  ;;  %929 = vmatpush.msra.mxu3 %v325_v56  ;;  %v3027_v52 = vperm.slane %v2500_v24, 2  ;;  %v3030_v55 = vmul.f32 %v2515_v29, %v63_v50  ;;  %v3033_v56 = vmul.f32 %v2518_v30, %v64_v51  ;;  %v21_v29 = vld [vmem:[%s4605_s2 + $0x18] sm:$0xff]  ;;  %v351_v36 = vld [vmem:[%s4603_s0 + $0x3c8] sm:$0xff] }
  0x4d   :  { %421 = vmatmul.f32.gmra.mxu0 %v2861_v25  ;;  %498 = vmatmul.f32.gmra.mxu1 %v2864_v26  ;;  %4675 = vst [vmem:[#allocation17_spill] sm:$0xff] %v3014_v43  ;;  %v31_v50 = vld [vmem:[%s4605_s2 + $0x68] sm:$0xff] }
  0x4e   :  { %713 = vmatpush.msrb.mxu0 %v358_v57  ;;  %790 = vmatpush.msrb.mxu1 %v231_v60  ;;  %4676 = vst [vmem:[#allocation18_spill] sm:$0xff] %v3033_v56  ;;  %v3036_v57 = vperm.slane %v2500_v24, 3  ;;  %v287_v60 = vld [vmem:[%s4603_s0 + $0x1c8] sm:$0xff]  ;;  %v3051_v30 = vmul.f32 %v3027_v52, %v20_v2  ;;  %v32_v2 = vld [vmem:[%s4605_s2 + $0x70] sm:$0xff] }
  0x4f   :  { %853 = vmatpush.msra.mxu2 %v291_v7  ;;  %930 = vmatpush.msra.mxu3 %v323_v11  ;;  %v22_v11 = vld [vmem:[%s4605_s2 + $0x20] sm:$0xff]  ;;  %v383_v51 = vld [vmem:[%s4603_s0 + $0x4c8] sm:$0xff] }
  0x50   :  { %1006 = vmatpush.msra.mxu0 %v357_v8  ;;  %1083 = vmatpush.msra.mxu1 %v389_v14  ;;  %v3056_v7 = vmul.f32 %v3036_v57, %v21_v29  ;;  %v3059_v8 = vperm.slane %v2500_v24, 4  ;;  %v385_v24 = vld [vmem:[%s4603_s0 + $0x4d8] sm:$0xff] }
  0x51   :  { %454 = vmatmul.f32.gmra.mxu2 %v2885_v39  ;;  %931 = vmatpush.msra.mxu3 %v321_v34  ;;  %v25_v14 = vld [vmem:[%s4605_s2 + $0x38] sm:$0xff] }
  0x52   :  { %531 = vmatmul.f32.gmra.mxu3 %v2888_v40  ;;  %854 = vmatpush.msra.mxu2 %v289_v28  ;;  %v3067_v12 = vmul.f32 %v3059_v8, %v22_v11  ;;  %v3082_v22 = vmul.f32 %v3027_v52, %v25_v14  ;;  %v3085_v28 = vmul.f32 %v3036_v57, %v26_v21  ;;  %v283_v11 = vld [vmem:[%s4603_s0 + $0x1a8] sm:$0xff] }
  0x53   :  { %1007 = vmatpush.msra.mxu0 %v355_v31  ;;  %1084 = vmatpush.msra.mxu1 %v387_v41  ;;  %v27_v31 = vld [vmem:[%s4605_s2 + $0x48] sm:$0xff]  ;;  %v30_v41 = vld [vmem:[%s4605_s2 + $0x60] sm:$0xff]  ;;  %v3129_v29 = vmul.f32 %v3059_v8, %v32_v2  ;;  %v281_v2 = vld [vmem:[%s4603_s0 + $0x198] sm:$0xff] }
  0x54   :  { %855 = vmatpush.msra.mxu2 %v287_v60  ;;  %932 = vmatpush.msra.mxu3 %v319_v13  ;;  %v3095_v34 = vmul.f32 %v3059_v8, %v27_v31  ;;  %v3116_v60 = vmul.f32 %v3027_v52, %v30_v41  ;;  %v349_v13 = vld [vmem:[%s4603_s0 + $0x3b8] sm:$0xff]  ;;  %v315_v31 = vld [vmem:[%s4603_s0 + $0x2a8] sm:$0xff] }
  0x55   :  { %424 = vmatmul.f32.gmra.mxu0 %v2904_v48  ;;  %501 = vmatmul.f32.gmra.mxu1 %v2907_v49  ;;  %v41_v41 = vld [vmem:[%s4605_s2 + $0xb8] sm:$0xff] }
  0x56   :  { %1008 = vmatpush.msra.mxu0 %v353_v1  ;;  %1085 = vmatpush.msra.mxu1 %v385_v24  ;;  %v3119_v1 = vmul.f32 %v3036_v57, %v31_v50  ;;  %v36_v24 = vld [vmem:[%s4605_s2 + $0x90] sm:$0xff] }
  0x57   :  { %856 = vmatpush.msra.mxu2 %v285_v35  ;;  %v3147_v21 = vmul.f32 %v3036_v57, %v36_v24  ;;  %v381_v35 = vld [vmem:[%s4603_s0 + $0x4b8] sm:$0xff] }
  0x58   :  { %1009 = vmatpush.msra.mxu0 %v351_v36  ;;  %1086 = vmatpush.msra.mxu1 %v383_v51  ;;  %v37_v36 = vld [vmem:[%s4605_s2 + $0x98] sm:$0xff]  ;;  %v3175_v51 = vmul.f32 %v3036_v57, %v41_v41  ;;  %v279_v41 = vld [vmem:[%s4603_s0 + $0x188] sm:$0xff] }
  0x59   :  { %457 = vmatmul.f32.gmra.mxu2 %v2931_v61 }
  0x5a   :  { %534 = vmatmul.f32.gmra.mxu3 %v2934_v62  ;;  %857 = vmatpush.msra.mxu2 %v283_v11  ;;  %v347_v11 = vld [vmem:[%s4603_s0 + $0x3a8] sm:$0xff] }
  0x5b   :  { %1010 = vmatpush.msra.mxu0 %v349_v13  ;;  %1087 = vmatpush.msra.mxu1 %v381_v35  ;;  %v313_v13 = vld [vmem:[%s4603_s0 + $0x298] sm:$0xff]  ;;  %v46_v35 = vld [vmem:[%s4605_s2 + $0xe0] sm:$0xff] }
  0x5c   :  { %858 = vmatpush.msra.mxu2 %v281_v2  ;;  %v345_v2 = vld [vmem:[%s4603_s0 + $0x398] sm:$0xff] }
  0x5d   :  { %427 = vmatmul.f32.gmra.mxu0 %v2947_v3  ;;  %504 = vmatmul.f32.gmra.mxu1 %v2950_v6 }
  0x5e   :  { %1011 = vmatpush.msra.mxu0 %v347_v11  ;;  %v47_v11 = vld [vmem:[%s4605_s2 + $0xe8] sm:$0xff]  ;;  %859 = vmatpush.msra.mxu2 %v279_v41 }
  0x60   :  { %1012 = vmatpush.msra.mxu0 %v345_v2  ;;  %v52_v2 = vld [vmem:[%s4605_s2 + $0x110] sm:$0xff] }
  0x61   :  { %460 = vmatmul.f32.gmra.mxu2 %v2971_v15 }
  0x62   :  { %537 = vmatmul.f32.gmra.mxu3 %v2974_v18  ;;  %v375_v18 = vld [vmem:[%s4603_s0 + $0x488] sm:$0xff] }
  0x65   :  { %430 = vmatmul.f32.gmra.mxu0 %v2987_v23  ;;  %507 = vmatmul.f32.gmra.mxu1 %v2990_v27  ;;  %v273_v27 = vld [vmem:[%s4603_s0 + $0x158] sm:$0xff] }
  0x69   :  { %463 = vmatmul.f32.gmra.mxu2 %v3011_v42 }
  0x6a   :  { %540 = vmatmul.f32.gmra.mxu3 %v3014_v43  ;;  %v56_v43 = vld [vmem:[%s4605_s2 + $0x130] sm:$0xff] }
  0x6b   :  { %v3283_v33 = vmul.f32 %v3036_v57, %v56_v43 }
  0x6d   :  { %433 = vmatmul.f32.gmra.mxu0 %v3030_v55  ;;  %510 = vmatmul.f32.gmra.mxu1 %v3033_v56  ;;  %4682 = vst [vmem:[#allocation24_spill] sm:$0xff] %v3283_v33  ;;  %v307_v56 = vld [vmem:[%s4603_s0 + $0x268] sm:$0xff] }
  0x71   :  { %560 = vmatmul.f32.vlgmr.msrb.gmra.mxu2 %v3051_v30 }
  0x72   :  { %637 = vmatmul.f32.vlgmr.msrb.gmra.mxu3 %v3056_v7 }
  0x75   :  { %714 = vmatmul.f32.vlgmr.msrb.gmra.mxu0 %v3067_v12  ;;  %791 = vmatmul.f32.vlgmr.msrb.gmra.mxu1 %v2565_v45  ;;  %v317_v45 = vld [vmem:[%s4603_s0 + $0x2b8] sm:$0xff] }
  0x76   :  { %933 = vmatpush.msra.mxu3 %v317_v45  ;;  %v40_v45 = vld [vmem:[%s4605_s2 + $0xb0] sm:$0xff] }
  0x77   :  { %v3172_v50 = vmul.f32 %v3027_v52, %v40_v45  ;;  %v3209_v45 = vmul.f32 %v3036_v57, %v46_v35 }
  0x78   :  { %934 = vmatpush.msra.mxu3 %v315_v31  ;;  %v45_v31 = vld [vmem:[%s4605_s2 + $0xd8] sm:$0xff] }
  0x79   :  { %563 = vmatmul.f32.gmra.mxu2 %v3082_v22 }
  0x7a   :  { %640 = vmatmul.f32.gmra.mxu3 %v3085_v28 }
  0x7b   :  { %935 = vmatpush.msra.mxu3 %v313_v13  ;;  %v311_v13 = vld [vmem:[%s4603_s0 + $0x288] sm:$0xff] }
  0x7d   :  { %717 = vmatmul.f32.gmra.mxu0 %v3095_v34  ;;  %794 = vmatmul.f32.gmra.mxu1 %v2623_v63  ;;  %v35_v63 = vld [vmem:[%s4605_s2 + $0x88] sm:$0xff] }
  0x7e   :  { %v3144_v14 = vmul.f32 %v3027_v52, %v35_v63  ;;  %v42_v63 = vld [vmem:[%s4605_s2 + $0xc0] sm:$0xff]  ;;  %936 = vmatpush.msra.mxu3 %v311_v13  ;;  %v277_v13 = vld [vmem:[%s4603_s0 + $0x178] sm:$0xff] }
  0x7f   :  { %v3197_v24 = vmul.f32 %v3059_v8, %v42_v63  ;;  %v377_v63 = vld [vmem:[%s4603_s0 + $0x498] sm:$0xff]  ;;  %860 = vmatpush.msra.mxu2 %v277_v13 }
  0x80   :  { %v57_v13 = vld [vmem:[%s4605_s2 + $0x138] sm:$0xff] }
  0x81   :  { %566 = vmatmul.f32.gmra.mxu2 %v3116_v60 }
  0x82   :  { %643 = vmatmul.f32.gmra.mxu3 %v3119_v1 }
  0x85   :  { %720 = vmatmul.f32.gmra.mxu0 %v3129_v29  ;;  %797 = vmatmul.f32.gmra.mxu1 %v2687_v19  ;;  %v3163_v19 = vmul.f32 %v3059_v8, %v37_v36  ;;  %v3206_v36 = vmul.f32 %v3027_v52, %v45_v31  ;;  %v51_v31 = vld [vmem:[%s4605_s2 + $0x108] sm:$0xff] }
  0x86   :  { %v3243_v41 = vmul.f32 %v3036_v57, %v51_v31 }
  0x88   :  { %4678 = vst [vmem:[#allocation20_spill] sm:$0xff] %v3243_v41 }
  0x89   :  { %569 = vmatmul.f32.gmra.mxu2 %v3144_v14 }
  0x8a   :  { %646 = vmatmul.f32.gmra.mxu3 %v3147_v21 }
  0x8d   :  { %723 = vmatmul.f32.gmra.mxu0 %v3163_v19  ;;  %800 = vmatmul.f32.gmra.mxu1 %v2751_v44  ;;  %v379_v44 = vld [vmem:[%s4603_s0 + $0x4a8] sm:$0xff] }
  0x8e   :  { %1088 = vmatpush.msra.mxu1 %v379_v44  ;;  %v50_v44 = vld [vmem:[%s4605_s2 + $0x100] sm:$0xff] }
  0x8f   :  { %v3240_v35 = vmul.f32 %v3027_v52, %v50_v44 }
  0x90   :  { %1089 = vmatpush.msra.mxu1 %v377_v63  ;;  %v343_v63 = vld [vmem:[%s4603_s0 + $0x388] sm:$0xff] }
  0x91   :  { %572 = vmatmul.f32.gmra.mxu2 %v3172_v50  ;;  %4677 = vst [vmem:[#allocation19_spill] sm:$0xff] %v3240_v35  ;;  %1013 = vmatpush.msra.mxu0 %v343_v63  ;;  %v60_v63 = vld [vmem:[%s4605_s2 + $0x150] sm:$0xff] }
  0x92   :  { %649 = vmatmul.f32.gmra.mxu3 %v3175_v51  ;;  %1090 = vmatpush.msra.mxu1 %v375_v18  ;;  %v341_v18 = vld [vmem:[%s4603_s0 + $0x378] sm:$0xff]  ;;  %v3314_v54 = vmul.f32 %v3027_v52, %v60_v63 }
  0x93   :  { %1014 = vmatpush.msra.mxu0 %v341_v18  ;;  %v62_v18 = vld [vmem:[%s4605_s2 + $0x160] sm:$0xff] }
  0x94   :  { %4685 = vst [vmem:[#allocation27_spill] sm:$0xff] %v3314_v54 }
  0x95   :  { %726 = vmatmul.f32.gmra.mxu0 %v3197_v24  ;;  %803 = vmatmul.f32.gmra.mxu1 %v2809_v4  ;;  %v3225_v4 = vmul.f32 %v3059_v8, %v47_v11  ;;  %v3253_v11 = vmul.f32 %v3059_v8, %v52_v2  ;;  %v55_v2 = vld [vmem:[%s4605_s2 + $0x128] sm:$0xff] }
  0x96   :  { %v3280_v59 = vmul.f32 %v3027_v52, %v55_v2 }
  0x97   :  { %4679 = vst [vmem:[#allocation21_spill] sm:$0xff] %v3253_v11 }
  0x98   :  { %4681 = vst [vmem:[#allocation23_spill] sm:$0xff] %v3280_v59 }
  0x99   :  { %575 = vmatmul.f32.gmra.mxu2 %v3206_v36 }
  0x9a   :  { %652 = vmatmul.f32.gmra.mxu3 %v3209_v45 }
  0x9d   :  { %729 = vmatmul.f32.gmra.mxu0 %v3225_v4  ;;  %806 = vmatmul.f32.gmra.mxu1 %v2861_v25  ;;  %v309_v25 = vld [vmem:[%s4603_s0 + $0x278] sm:$0xff] }
  0x9e   :  { %937 = vmatpush.msra.mxu3 %v309_v25  ;;  %v61_v25 = vld [vmem:[%s4605_s2 + $0x158] sm:$0xff] }
  0x9f   :  { %v3317_v38 = vmul.f32 %v3036_v57, %v61_v25 }
  0xa0   :  { %938 = vmatpush.msra.mxu3 %v307_v56  ;;  %v66_v56 = vld [vmem:[%s4605_s2 + $0x180] sm:$0xff] }
  0xa1   :  { %578 = vmatmul.f32.gmra.mxu2 %v3240_v35  ;;  %v3264_v44 = vpop.f32.mrf.mxu0  ;;  %4686 = vst [vmem:[#allocation28_spill] sm:$0xff] %v3317_v38  ;;  %v102_v35 = vld [vmem:[%s4605_s2 + $0x2a0] sm:$0xff] }
  0xa2   :  { %655 = vmatmul.f32.gmra.mxu3 %v3243_v41  ;;  %v3266_v31 = vpop.f32.mrf.mxu1  ;;  %v263_v41 = vld [vmem:[%s4603_s0 + $0x108] sm:$0xff] }
  0xa4   :  { %v437_v62 = vpop.f32.mrf.mxu2 }
  0xa5   :  { %v514_v40 = vpop.f32.mrf.mxu3  ;;  %732 = vmatmul.f32.gmra.mxu0 %v3253_v11  ;;  %809 = vmatmul.f32.gmra.mxu1 %v2904_v48 }
  0xa6   :  { %v3277_v17 = vadd.f32 %v514_v40, %v437_v62  ;;  %v3293_v40 = vmul.f32 %v3059_v8, %v57_v13  ;;  %v275_v62 = vld [vmem:[%s4603_s0 + $0x168] sm:$0xff] }
  0xa7   :  { %861 = vmatpush.msra.mxu2 %v275_v62  ;;  %v373_v62 = vld [vmem:[%s4603_s0 + $0x478] sm:$0xff] }
  0xa8   :  { %4680 = vst [vmem:[#allocation22_spill] sm:$0xff] %v3277_v17  ;;  %1091 = vmatpush.msra.mxu1 %v373_v62 }
  0xa9   :  { %581 = vmatmul.f32.gmra.mxu2 %v3280_v59  ;;  %4683 = vst [vmem:[#allocation25_spill] sm:$0xff] %v3293_v40  ;;  %v77_v59 = vld [vmem:[%s4605_s2 + $0x1d8] sm:$0xff] }
  0xaa   :  { %658 = vmatmul.f32.gmra.mxu3 %v3283_v33  ;;  %v3301_v48 = vpop.f32.mrf.mxu0  ;;  %v3303_v43 = vpop.f32.mrf.mxu1  ;;  %862 = vmatpush.msra.mxu2 %v273_v27  ;;  %v70_v27 = vld [vmem:[%s4605_s2 + $0x1a0] sm:$0xff]  ;;  %v337_v33 = vld [vmem:[%s4603_s0 + $0x358] sm:$0xff] }
  0xac   :  { %v440_v2 = vpop.f32.mrf.mxu2 }
  0xad   :  { %v517_v13 = vpop.f32.mrf.mxu3  ;;  %735 = vmatmul.f32.gmra.mxu0 %v3293_v40  ;;  %812 = vmatmul.f32.gmra.mxu1 %v2947_v3  ;;  %v3333_v3 = vmul.f32 %v3059_v8, %v62_v18  ;;  %v3351_v18 = vmul.f32 %v3036_v57, %v66_v56  ;;  %v339_v40 = vld [vmem:[%s4603_s0 + $0x368] sm:$0xff] }
  0xae   :  { %v3311_v10 = vadd.f32 %v517_v13, %v440_v2  ;;  %v65_v2 = vld [vmem:[%s4605_s2 + $0x178] sm:$0xff]  ;;  %v67_v56 = vld [vmem:[%s4605_s2 + $0x188] sm:$0xff]  ;;  %1015 = vmatpush.msra.mxu0 %v339_v40 }
  0xaf   :  { %4687 = vst [vmem:[#allocation29_spill] sm:$0xff] %v3333_v3  ;;  %v71_v40 = vld [vmem:[%s4605_s2 + $0x1a8] sm:$0xff] }
  0xb0   :  { %4684 = vst [vmem:[#allocation26_spill] sm:$0xff] %v3311_v10  ;;  %1016 = vmatpush.msra.mxu0 %v337_v33  ;;  %v76_v33 = vld [vmem:[%s4605_s2 + $0x1d0] sm:$0xff] }
  0xb1   :  { %584 = vmatmul.f32.gmra.mxu2 %v3314_v54  ;;  %4690 = vst [vmem:[#allocation32_spill] sm:$0xff] %v3351_v18  ;;  %v3431_v10 = vmul.f32 %v3036_v57, %v76_v33 }
  0xb2   :  { %661 = vmatmul.f32.gmra.mxu3 %v3317_v38  ;;  %v3335_v63 = vpop.f32.mrf.mxu0  ;;  %v3337_v25 = vpop.f32.mrf.mxu1  ;;  %v3348_v38 = vmul.f32 %v3027_v52, %v65_v2  ;;  %v305_v2 = vld [vmem:[%s4603_s0 + $0x258] sm:$0xff] }
  0xb3   :  { %939 = vmatpush.msra.mxu3 %v305_v2  ;;  %4698 = vst [vmem:[#allocation40_spill] sm:$0xff] %v3431_v10 }
  0xb4   :  { %v443_v13 = vpop.f32.mrf.mxu2  ;;  %4689 = vst [vmem:[#allocation31_spill] sm:$0xff] %v3348_v38 }
  0xb5   :  { %v520_v62 = vpop.f32.mrf.mxu3  ;;  %738 = vmatmul.f32.gmra.mxu0 %v3333_v3  ;;  %815 = vmatmul.f32.gmra.mxu1 %v2987_v23  ;;  %v371_v23 = vld [vmem:[%s4603_s0 + $0x468] sm:$0xff] }
  0xb6   :  { %v3345_v54 = vadd.f32 %v520_v62, %v443_v13  ;;  %1092 = vmatpush.msra.mxu1 %v371_v23  ;;  %v3373_v13 = vmul.f32 %v3059_v8, %v67_v56  ;;  %v3391_v56 = vmul.f32 %v3036_v57, %v71_v40  ;;  %v303_v40 = vld [vmem:[%s4603_s0 + $0x248] sm:$0xff] }
  0xb7   :  { %940 = vmatpush.msra.mxu3 %v303_v40  ;;  %v269_v40 = vld [vmem:[%s4603_s0 + $0x138] sm:$0xff] }
  0xb8   :  { %4688 = vst [vmem:[#allocation30_spill] sm:$0xff] %v3345_v54  ;;  %v271_v54 = vld [vmem:[%s4603_s0 + $0x148] sm:$0xff] }
  0xb9   :  { %587 = vmatmul.f32.gmra.mxu2 %v3348_v38  ;;  %4691 = vst [vmem:[#allocation33_spill] sm:$0xff] %v3373_v13 }
  0xba   :  { %664 = vmatmul.f32.gmra.mxu3 %v3351_v18  ;;  %v3375_v62 = vpop.f32.mrf.mxu0  ;;  %v3377_v3 = vpop.f32.mrf.mxu1  ;;  %v3388_v18 = vmul.f32 %v3027_v52, %v70_v27  ;;  %4694 = vst [vmem:[#allocation36_spill] sm:$0xff] %v3391_v56  ;;  %v72_v27 = vld [vmem:[%s4605_s2 + $0x1b0] sm:$0xff]  ;;  %863 = vmatpush.msra.mxu2 %v271_v54  ;;  %v75_v54 = vld [vmem:[%s4605_s2 + $0x1c8] sm:$0xff] }
  0xbc   :  { %v446_v2 = vpop.f32.mrf.mxu2  ;;  %4693 = vst [vmem:[#allocation35_spill] sm:$0xff] %v3388_v18  ;;  %864 = vmatpush.msra.mxu2 %v269_v40  ;;  %v82_v40 = vld [vmem:[%s4605_s2 + $0x200] sm:$0xff] }
  0xbd   :  { %v523_v23 = vpop.f32.mrf.mxu3  ;;  %741 = vmatmul.f32.gmra.mxu0 %v3373_v13  ;;  %818 = vmatmul.f32.gmra.mxu1 %v3030_v55  ;;  %v3407_v55 = vmul.f32 %v3059_v8, %v72_v27 }
  0xbe   :  { %v3385_v38 = vadd.f32 %v523_v23, %v446_v2  ;;  %v369_v2 = vld [vmem:[%s4603_s0 + $0x458] sm:$0xff] }
  0xbf   :  { %4695 = vst [vmem:[#allocation37_spill] sm:$0xff] %v3407_v55  ;;  %1093 = vmatpush.msra.mxu1 %v369_v2  ;;  %v335_v2 = vld [vmem:[%s4603_s0 + $0x348] sm:$0xff] }
  0xc0   :  { %4692 = vst [vmem:[#allocation34_spill] sm:$0xff] %v3385_v38  ;;  %v3428_v38 = vmul.f32 %v3027_v52, %v75_v54  ;;  %1017 = vmatpush.msra.mxu0 %v335_v2 }
  0xc1   :  { %590 = vmatmul.f32.gmra.mxu2 %v3388_v18 }
  0xc2   :  { %667 = vmatmul.f32.gmra.mxu3 %v3391_v56  ;;  %v3415_v23 = vpop.f32.mrf.mxu0  ;;  %v3417_v13 = vpop.f32.mrf.mxu1  ;;  %4697 = vst [vmem:[#allocation39_spill] sm:$0xff] %v3428_v38 }
  0xc4   :  { %v449_v27 = vpop.f32.mrf.mxu2 }
  0xc5   :  { %v526_v56 = vpop.f32.mrf.mxu3  ;;  %744 = vmatmul.f32.gmra.mxu0 %v3407_v55  ;;  %821 = vmatmul.f32.gmra.mxu1 %v2539_v37  ;;  %v301_v37 = vld [vmem:[%s4603_s0 + $0x238] sm:$0xff] }
  0xc6   :  { %v3425_v18 = vadd.f32 %v526_v56, %v449_v27  ;;  %v3441_v56 = vmul.f32 %v3059_v8, %v77_v59  ;;  %v80_v59 = vld [vmem:[%s4605_s2 + $0x1f0] sm:$0xff]  ;;  %v81_v27 = vld [vmem:[%s4605_s2 + $0x1f8] sm:$0xff]  ;;  %941 = vmatpush.msra.mxu3 %v301_v37 }
  0xc7   :  { %v3468_v6 = vmul.f32 %v3027_v52, %v80_v59  ;;  %v3471_v11 = vmul.f32 %v3036_v57, %v81_v27  ;;  %v85_v37 = vld [vmem:[%s4605_s2 + $0x218] sm:$0xff]  ;;  %v86_v59 = vld [vmem:[%s4605_s2 + $0x220] sm:$0xff] }
  0xc8   :  { %4696 = vst [vmem:[#allocation38_spill] sm:$0xff] %v3425_v18 }
  0xc9   :  { %593 = vmatmul.f32.gmra.mxu2 %v3428_v38  ;;  %4699 = vst [vmem:[#allocation41_spill] sm:$0xff] %v3441_v56 }
  0xca   :  { %670 = vmatmul.f32.gmra.mxu3 %v3431_v10  ;;  %v3452_v54 = vpop.f32.mrf.mxu0  ;;  %v3454_v33 = vpop.f32.mrf.mxu1  ;;  %v367_v10 = vld [vmem:[%s4603_s0 + $0x448] sm:$0xff]  ;;  %4701 = vst [vmem:[#allocation43_spill] sm:$0xff] %v3468_v6 }
  0xcb   :  { %1094 = vmatpush.msra.mxu1 %v367_v10  ;;  %4702 = vst [vmem:[#allocation44_spill] sm:$0xff] %v3471_v11  ;;  %v267_v10 = vld [vmem:[%s4603_s0 + $0x128] sm:$0xff] }
  0xcc   :  { %v452_v38 = vpop.f32.mrf.mxu2  ;;  %865 = vmatpush.msra.mxu2 %v267_v10  ;;  %v365_v10 = vld [vmem:[%s4603_s0 + $0x438] sm:$0xff] }
  0xcd   :  { %v529_v55 = vpop.f32.mrf.mxu3  ;;  %747 = vmatmul.f32.gmra.mxu0 %v3441_v56  ;;  %824 = vmatmul.f32.gmra.mxu1 %v2589_v53  ;;  %v3505_v56 = vmul.f32 %v3036_v57, %v86_v59 }
  0xce   :  { %v3465_v18 = vadd.f32 %v529_v55, %v452_v38  ;;  %v3481_v38 = vmul.f32 %v3059_v8, %v82_v40  ;;  %v333_v55 = vld [vmem:[%s4603_s0 + $0x338] sm:$0xff]  ;;  %1095 = vmatpush.msra.mxu1 %v365_v10 }
  0xcf   :  { %1018 = vmatpush.msra.mxu0 %v333_v55  ;;  %4706 = vst [vmem:[#allocation48_spill] sm:$0xff] %v3505_v56  ;;  %v87_v55 = vld [vmem:[%s4605_s2 + $0x228] sm:$0xff] }
  0xd0   :  { %4700 = vst [vmem:[#allocation42_spill] sm:$0xff] %v3465_v18  ;;  %v299_v18 = vld [vmem:[%s4603_s0 + $0x228] sm:$0xff] }
  0xd1   :  { %596 = vmatmul.f32.gmra.mxu2 %v3468_v6  ;;  %4703 = vst [vmem:[#allocation45_spill] sm:$0xff] %v3481_v38  ;;  %v3502_v6 = vmul.f32 %v3027_v52, %v85_v37  ;;  %942 = vmatpush.msra.mxu3 %v299_v18  ;;  %v91_v18 = vld [vmem:[%s4605_s2 + $0x248] sm:$0xff] }
  0xd2   :  { %673 = vmatmul.f32.gmra.mxu3 %v3471_v11  ;;  %v3489_v53 = vpop.f32.mrf.mxu0  ;;  %v3491_v2 = vpop.f32.mrf.mxu1 }
  0xd3   :  { %4705 = vst [vmem:[#allocation47_spill] sm:$0xff] %v3502_v6 }
  0xd4   :  { %v455_v27 = vpop.f32.mrf.mxu2 }
  0xd5   :  { %v532_v40 = vpop.f32.mrf.mxu3  ;;  %750 = vmatmul.f32.gmra.mxu0 %v3481_v38  ;;  %827 = vmatmul.f32.gmra.mxu1 %v2653_v9  ;;  %v3521_v9 = vmul.f32 %v3059_v8, %v87_v55  ;;  %v3539_v55 = vmul.f32 %v3036_v57, %v91_v18  ;;  %v265_v38 = vld [vmem:[%s4603_s0 + $0x118] sm:$0xff] }
  0xd6   :  { %v3499_v11 = vadd.f32 %v532_v40, %v455_v27  ;;  %v90_v27 = vld [vmem:[%s4605_s2 + $0x240] sm:$0xff]  ;;  %866 = vmatpush.msra.mxu2 %v265_v38  ;;  %v297_v18 = vld [vmem:[%s4603_s0 + $0x218] sm:$0xff]  ;;  %v95_v38 = vld [vmem:[%s4605_s2 + $0x268] sm:$0xff] }
  0xd7   :  { %4707 = vst [vmem:[#allocation49_spill] sm:$0xff] %v3521_v9  ;;  %943 = vmatpush.msra.mxu3 %v297_v18  ;;  %v96_v18 = vld [vmem:[%s4605_s2 + $0x270] sm:$0xff] }
  0xd8   :  { %4704 = vst [vmem:[#allocation46_spill] sm:$0xff] %v3499_v11  ;;  %v331_v11 = vld [vmem:[%s4603_s0 + $0x328] sm:$0xff]  ;;  %867 = vmatpush.msra.mxu2 %v263_v41  ;;  %v100_v41 = vld [vmem:[%s4605_s2 + $0x290] sm:$0xff] }
  0xd9   :  { %599 = vmatmul.f32.gmra.mxu2 %v3502_v6  ;;  %4710 = vst [vmem:[#allocation52_spill] sm:$0xff] %v3539_v55  ;;  %1019 = vmatpush.msra.mxu0 %v331_v11 }
  0xda   :  { %676 = vmatmul.f32.gmra.mxu3 %v3505_v56  ;;  %v3523_v37 = vpop.f32.mrf.mxu0  ;;  %v3525_v59 = vpop.f32.mrf.mxu1  ;;  %v3536_v56 = vmul.f32 %v3027_v52, %v90_v27  ;;  %v92_v27 = vld [vmem:[%s4605_s2 + $0x250] sm:$0xff] }
  0xdc   :  { %v458_v40 = vpop.f32.mrf.mxu2  ;;  %4709 = vst [vmem:[#allocation51_spill] sm:$0xff] %v3536_v56 }
  0xdd   :  { %v535_v10 = vpop.f32.mrf.mxu3  ;;  %753 = vmatmul.f32.gmra.mxu0 %v3521_v9  ;;  %830 = vmatmul.f32.gmra.mxu1 %v2717_v32  ;;  %v363_v32 = vld [vmem:[%s4603_s0 + $0x428] sm:$0xff] }
  0xde   :  { %v3533_v6 = vadd.f32 %v535_v10, %v458_v40  ;;  %1096 = vmatpush.msra.mxu1 %v363_v32  ;;  %v3561_v40 = vmul.f32 %v3059_v8, %v92_v27  ;;  %v3579_v27 = vmul.f32 %v3036_v57, %v96_v18  ;;  %v361_v18 = vld [vmem:[%s4603_s0 + $0x418] sm:$0xff] }
  0xe0   :  { %4708 = vst [vmem:[#allocation50_spill] sm:$0xff] %v3533_v6  ;;  %v97_v6 = vld [vmem:[%s4605_s2 + $0x278] sm:$0xff]  ;;  %1097 = vmatpush.msra.mxu1 %v361_v18  ;;  %v359_v18 = vld [vmem:[%s4603_s0 + $0x408] sm:$0xff] }
  0xe1   :  { %602 = vmatmul.f32.gmra.mxu2 %v3536_v56  ;;  %4711 = vst [vmem:[#allocation53_spill] sm:$0xff] %v3561_v40 }
  0xe2   :  { %679 = vmatmul.f32.gmra.mxu3 %v3539_v55  ;;  %v3563_v10 = vpop.f32.mrf.mxu0  ;;  %v3565_v11 = vpop.f32.mrf.mxu1  ;;  %v3576_v55 = vmul.f32 %v3027_v52, %v95_v38  ;;  %4714 = vst [vmem:[#allocation56_spill] sm:$0xff] %v3579_v27  ;;  %v295_v38 = vld [vmem:[%s4603_s0 + $0x208] sm:$0xff]  ;;  %1098 = vmatpush.msra.mxu1 %v359_v18 }
  0xe3   :  { %944 = vmatpush.msra.mxu3 %v295_v38  ;;  %v327_v38 = vld [vmem:[%s4603_s0 + $0x308] sm:$0xff] }
  0xe4   :  { %v461_v32 = vpop.f32.mrf.mxu2  ;;  %4713 = vst [vmem:[#allocation55_spill] sm:$0xff] %v3576_v55 }
  0xe5   :  { %v538_v9 = vpop.f32.mrf.mxu3  ;;  %756 = vmatmul.f32.gmra.mxu0 %v3561_v40  ;;  %833 = vmatmul.f32.gmra.mxu1 %v2781_v58  ;;  %v3595_v58 = vmul.f32 %v3059_v8, %v97_v6  ;;  %v101_v6 = vld [vmem:[%s4605_s2 + $0x298] sm:$0xff] }
  0xe6   :  { %v3573_v56 = vadd.f32 %v538_v9, %v461_v32  ;;  %v329_v9 = vld [vmem:[%s4603_s0 + $0x318] sm:$0xff]  ;;  %v3619_v17 = vmul.f32 %v3036_v57, %v101_v6  ;;  %s2247_s0 = sshll.u32 %s4607_s4, 4  ;;  %s2248_s0 = int_to_ptr.hbm [resolvable:$true] %s2247_s0 }
  0xe7   :  { %1020 = vmatpush.msra.mxu0 %v329_v9  ;;  %4715 = vst [vmem:[#allocation57_spill] sm:$0xff] %v3595_v58 }
  0xe8   :  { %4712 = vst [vmem:[#allocation54_spill] sm:$0xff] %v3573_v56  ;;  %v3616_v56 = vmul.f32 %v3027_v52, %v100_v41  ;;  %v105_v41 = vld [vmem:[%s4605_s2 + $0x2b8] sm:$0xff] }
  0xe9   :  { %605 = vmatmul.f32.gmra.mxu2 %v3576_v55  ;;  %4718 = vst [vmem:[#allocation60_spill] sm:$0xff] %v3619_v17  ;;  %1021 = vmatpush.msra.mxu0 %v327_v38  ;;  %v107_v38 = vld [vmem:[%s4605_s2 + $0x2c8] sm:$0xff] }
  0xea   :  { %682 = vmatmul.f32.gmra.mxu3 %v3579_v27  ;;  %v3603_v32 = vpop.f32.mrf.mxu0  ;;  %v3605_v40 = vpop.f32.mrf.mxu1  ;;  %4717 = vst [vmem:[#allocation59_spill] sm:$0xff] %v3616_v56 }
  0xec   :  { %v464_v9 = vpop.f32.mrf.mxu2 }
  0xed   :  { %v541_v27 = vpop.f32.mrf.mxu3  ;;  %759 = vmatmul.f32.gmra.mxu0 %v3595_v58  ;;  %836 = vmatmul.f32.gmra.mxu1 %v2839_v16 }
  0xee   :  { %v3613_v55 = vadd.f32 %v541_v27, %v464_v9  ;;  %v3629_v27 = vmul.f32 %v3059_v8, %v102_v35  ;;  %v106_v35 = vld [vmem:[%s4605_s2 + $0x2c0] sm:$0xff]  ;;  %v485_v9 = vadd.f32 %v3266_v31, %v3264_v44 }
  0xef   :  { %v3651_v49 = vmul.f32 %v3036_v57, %v106_v35  ;;  %v110_v31 = vld [vmem:[%s4605_s2 + $0x2e0] sm:$0xff] }
  0xf0   :  { %4716 = vst [vmem:[#allocation58_spill] sm:$0xff] %v3613_v55  ;;  %v3648_v55 = vmul.f32 %v3027_v52, %v105_v41 }
  0xf1   :  { %608 = vmatmul.f32.gmra.mxu2 %v3616_v56  ;;  %4720 = vst [vmem:[#allocation62_spill] sm:$0xff] %v3651_v49 }
  0xf2   :  { %685 = vmatmul.f32.gmra.mxu3 %v3619_v17  ;;  %v715_v16 = vpop.f32.mrf.mxu0  ;;  %v3640_v6 = vpop.f32.mrf.mxu1 }
  0xf3   :  { %4719 = vst [vmem:[#allocation61_spill] sm:$0xff] %v3640_v6 }
  0xf4   :  { %v561_v17 = vpop.f32.mrf.mxu2 }
  0xf5   :  { %v638_v56 = vpop.f32.mrf.mxu3  ;;  %v562_v58 = vadd.f32 %v561_v17, %v485_v9  ;;  %762 = vmatmul.f32.gmra.mxu0 %v3629_v27  ;;  %839 = vmatmul.f32.gmra.mxu1 %v2885_v39  ;;  %v3663_v17 = vmul.f32 %v3059_v8, %v107_v38  ;;  %v3676_v9 = vmul.f32 %v3027_v52, %v110_v31  ;;  %v115_v31 = vld [vmem:[%s4605_s2 + $0x308] sm:$0xff] }
  0xf7   :  { %v639_v18 = vadd.f32 %v638_v56, %v562_v58  ;;  %v111_v56 = vld [vmem:[%s4605_s2 + $0x2e8] sm:$0xff]  ;;  %v488_v58 = vadd.f32 %v3303_v43, %v3301_v48 }
  0xf8   :  { %v3679_v38 = vmul.f32 %v3036_v57, %v111_v56  ;;  %v116_v56 = vld [vmem:[%s4605_s2 + $0x310] sm:$0xff] }
  0xf9   :  { %v3658_v6 = vadd.f32 %v715_v16, %v639_v18  ;;  %611 = vmatmul.f32.gmra.mxu2 %v3648_v55  ;;  %v112_v18 = vld [vmem:[%s4605_s2 + $0x2f0] sm:$0xff] }
  0xfa   :  { %688 = vmatmul.f32.gmra.mxu3 %v3651_v49  ;;  %v718_v44 = vpop.f32.mrf.mxu0  ;;  %v3668_v39 = vpop.f32.mrf.mxu1  ;;  %4722 = vst [vmem:[#allocation64_spill] sm:$0xff] %v3679_v38  ;;  %v3691_v48 = vmul.f32 %v3059_v8, %v112_v18  ;;  %v117_v18 = vld [vmem:[%s4605_s2 + $0x318] sm:$0xff] }
  0xfb   :  { %4721 = vst [vmem:[#allocation63_spill] sm:$0xff] %v3658_v6 }
  0xfc   :  { %v564_v16 = vpop.f32.mrf.mxu2 }
  0xfd   :  { %v641_v41 = vpop.f32.mrf.mxu3  ;;  %v565_v35 = vadd.f32 %v564_v16, %v488_v58  ;;  %765 = vmatmul.f32.gmra.mxu0 %v3663_v17  ;;  %842 = vmatmul.f32.gmra.mxu1 %v2931_v61 }
  0xff   :  { %v642_v6 = vadd.f32 %v641_v41, %v565_v35  ;;  %v3704_v41 = vmul.f32 %v3027_v52, %v115_v31  ;;  %v3707_v35 = vmul.f32 %v3036_v57, %v116_v56  ;;  %v3719_v52 = vmul.f32 %v3059_v8, %v117_v18 }
 0x101   :  { %v3686_v49 = vadd.f32 %v718_v44, %v642_v6  ;;  %614 = vmatmul.f32.gmra.mxu2 %v3676_v9  ;;  %v491_v6 = vadd.f32 %v3337_v25, %v3335_v63 }
 0x102   :  { %691 = vmatmul.f32.gmra.mxu3 %v3679_v38  ;;  %v721_v43 = vpop.f32.mrf.mxu0  ;;  %v3696_v61 = vpop.f32.mrf.mxu1 }
 0x103   :  { %4723 = vst [vmem:[#allocation65_spill] sm:$0xff] %v3686_v49 }
 0x104   :  { %v567_v44 = vpop.f32.mrf.mxu2 }
 0x105   :  { %v644_v58 = vpop.f32.mrf.mxu3  ;;  %v568_v16 = vadd.f32 %v567_v44, %v491_v6  ;;  %768 = vmatmul.f32.gmra.mxu0 %v3691_v48  ;;  %845 = vmatmul.f32.gmra.mxu1 %v2971_v15  ;;  %v494_v15 = vadd.f32 %v3377_v3, %v3375_v62  ;;  %v497_v3 = vadd.f32 %v3417_v13, %v3415_v23 }
 0x106   :  { %v500_v13 = vadd.f32 %v3454_v33, %v3452_v54  ;;  %v503_v54 = vadd.f32 %v3491_v2, %v3489_v53  ;;  %v506_v53 = vadd.f32 %v3525_v59, %v3523_v37  ;;  %v509_v37 = vadd.f32 %v3565_v11, %v3563_v10 }
 0x107   :  { %v645_v49 = vadd.f32 %v644_v58, %v568_v16  ;;  %v512_v10 = vadd.f32 %v3605_v40, %v3603_v32  ;;  %v4726_v40 = vld [vmem:[#allocation22_spill] sm:$0xff] }
 0x109   :  { %v3714_v38 = vadd.f32 %v721_v43, %v645_v49  ;;  %617 = vmatmul.f32.gmra.mxu2 %v3704_v41 }
 0x10a   :  { %694 = vmatmul.f32.gmra.mxu3 %v3707_v35  ;;  %v724_v57 = vpop.f32.mrf.mxu0  ;;  %v3721_v63 = vpop.f32.mrf.mxu1 }
 0x10c   :  { %v570_v25 = vpop.f32.mrf.mxu2 }
 0x10d   :  { %v647_v31 = vpop.f32.mrf.mxu3  ;;  %v571_v56 = vadd.f32 %v570_v25, %v494_v15  ;;  %771 = vmatmul.f32.gmra.mxu0 %v3719_v52  ;;  %848 = vmatmul.f32.gmra.mxu1 %v3011_v42 }
 0x10f   :  { %v648_v49 = vadd.f32 %v647_v31, %v571_v56 }
 0x111   :  { %v3727_v43 = vadd.f32 %v724_v57, %v648_v49  ;;  %868 = vmatmul.f32.vlgmr.msra.gmra.mxu2 %v2568_v46 }
 0x112   :  { %945 = vmatmul.f32.vlgmr.msra.gmra.mxu3 %v3051_v30  ;;  %v727_v8 = vpop.f32.mrf.mxu0  ;;  %v3731_v6 = vpop.f32.mrf.mxu1 }
 0x114   :  { %v573_v62 = vpop.f32.mrf.mxu2 }
 0x115   :  { %v650_v44 = vpop.f32.mrf.mxu3  ;;  %v574_v58 = vadd.f32 %v573_v62, %v497_v3  ;;  %1022 = vmatmul.f32.vlgmr.msra.gmra.mxu0 %v3056_v7  ;;  %1099 = vmatmul.f32.vlgmr.msra.gmra.mxu1 %v3067_v12 }
 0x117   :  { %v651_v42 = vadd.f32 %v650_v44, %v574_v58  ;;  %v4724_v44 = vld [vmem:[#allocation12_spill] sm:$0xff] }
 0x119   :  { %v3737_v16 = vadd.f32 %v727_v8, %v651_v42  ;;  %871 = vmatmul.f32.gmra.mxu2 %v2626_v0 }
 0x11a   :  { %948 = vmatmul.f32.gmra.mxu3 %v3082_v22  ;;  %v730_v46 = vpop.f32.mrf.mxu0  ;;  %v3741_v30 = vpop.f32.mrf.mxu1 }
 0x11c   :  { %v576_v23 = vpop.f32.mrf.mxu2 }
 0x11d   :  { %v653_v18 = vpop.f32.mrf.mxu3  ;;  %v577_v57 = vadd.f32 %v576_v23, %v500_v13  ;;  %1025 = vmatmul.f32.gmra.mxu0 %v3085_v28  ;;  %1102 = vmatmul.f32.gmra.mxu1 %v3095_v34  ;;  %v4727_v13 = vld [vmem:[#allocation20_spill] sm:$0xff]  ;;  %v4728_v23 = vld [vmem:[#allocation21_spill] sm:$0xff] }
 0x11f   :  { %v654_v7 = vadd.f32 %v653_v18, %v577_v57  ;;  %v4729_v18 = vld [vmem:[#allocation14_spill] sm:$0xff]  ;;  %v4730_v57 = vld [vmem:[#allocation23_spill] sm:$0xff] }
 0x121   :  { %v3747_v12 = vadd.f32 %v730_v46, %v654_v7  ;;  %874 = vmatmul.f32.gmra.mxu2 %v2690_v20 }
 0x122   :  { %951 = vmatmul.f32.gmra.mxu3 %v3116_v60  ;;  %v733_v0 = vpop.f32.mrf.mxu0  ;;  %v3751_v22 = vpop.f32.mrf.mxu1 }
 0x124   :  { %v579_v33 = vpop.f32.mrf.mxu2 }
 0x125   :  { %v656_v15 = vpop.f32.mrf.mxu3  ;;  %v580_v25 = vadd.f32 %v579_v33, %v503_v54  ;;  %1028 = vmatmul.f32.gmra.mxu0 %v3119_v1  ;;  %1105 = vmatmul.f32.gmra.mxu1 %v3129_v29 }
 0x127   :  { %v657_v28 = vadd.f32 %v656_v15, %v580_v25  ;;  %v4731_v15 = vld [vmem:[#allocation26_spill] sm:$0xff] }
 0x129   :  { %v3757_v34 = vadd.f32 %v733_v0, %v657_v28  ;;  %877 = vmatmul.f32.gmra.mxu2 %v2754_v47  ;;  %v4732_v28 = vld [vmem:[#allocation24_spill] sm:$0xff] }
 0x12a   :  { %954 = vmatmul.f32.gmra.mxu3 %v3144_v14  ;;  %v736_v20 = vpop.f32.mrf.mxu0  ;;  %v3761_v60 = vpop.f32.mrf.mxu1 }
 0x12c   :  { %v582_v2 = vpop.f32.mrf.mxu2 }
 0x12d   :  { %v659_v31 = vpop.f32.mrf.mxu3  ;;  %v583_v56 = vadd.f32 %v582_v2, %v506_v53  ;;  %1031 = vmatmul.f32.gmra.mxu0 %v3147_v21  ;;  %1108 = vmatmul.f32.gmra.mxu1 %v3163_v19 }
 0x12f   :  { %v660_v1 = vadd.f32 %v659_v31, %v583_v56  ;;  %v4734_v31 = vld [vmem:[#allocation16_spill] sm:$0xff]  ;;  %v4735_v56 = vld [vmem:[#allocation27_spill] sm:$0xff] }
 0x131   :  { %v3767_v29 = vadd.f32 %v736_v20, %v660_v1  ;;  %880 = vmatmul.f32.gmra.mxu2 %v2812_v5  ;;  %v4733_v20 = vld [vmem:[#allocation25_spill] sm:$0xff] }
 0x132   :  { %957 = vmatmul.f32.gmra.mxu3 %v3172_v50  ;;  %v739_v47 = vpop.f32.mrf.mxu0  ;;  %v3771_v14 = vpop.f32.mrf.mxu1 }
 0x134   :  { %v585_v59 = vpop.f32.mrf.mxu2 }
 0x135   :  { %v662_v49 = vpop.f32.mrf.mxu3  ;;  %v586_v8 = vadd.f32 %v585_v59, %v509_v37  ;;  %1034 = vmatmul.f32.gmra.mxu0 %v3175_v51  ;;  %1111 = vmatmul.f32.gmra.mxu1 %v3197_v24 }
 0x137   :  { %v663_v21 = vadd.f32 %v662_v49, %v586_v8  ;;  %v4736_v49 = vld [vmem:[#allocation30_spill] sm:$0xff] }
 0x139   :  { %v3777_v19 = vadd.f32 %v739_v47, %v663_v21  ;;  %883 = vmatmul.f32.gmra.mxu2 %v2864_v26  ;;  %v4725_v26 = vld [vmem:[#allocation19_spill] sm:$0xff]  ;;  %v4737_v21 = vld [vmem:[#allocation28_spill] sm:$0xff] }
 0x13a   :  { %960 = vmatmul.f32.gmra.mxu3 %v3206_v36  ;;  %v742_v5 = vpop.f32.mrf.mxu0  ;;  %v3781_v50 = vpop.f32.mrf.mxu1 }
 0x13c   :  { %v588_v11 = vpop.f32.mrf.mxu2 }
 0x13d   :  { %v665_v3 = vpop.f32.mrf.mxu3  ;;  %v589_v62 = vadd.f32 %v588_v11, %v512_v10  ;;  %1037 = vmatmul.f32.gmra.mxu0 %v3209_v45  ;;  %1114 = vmatmul.f32.gmra.mxu1 %v3225_v4 }
 0x13f   :  { %v666_v51 = vadd.f32 %v665_v3, %v589_v62  ;;  %v4739_v3 = vld [vmem:[#allocation18_spill] sm:$0xff]  ;;  %v4740_v62 = vld [vmem:[#allocation31_spill] sm:$0xff] }
 0x141   :  { %v3787_v24 = vadd.f32 %v742_v5, %v666_v51  ;;  %886 = vmatmul.f32.gmra.mxu2 %v4724_v44  ;;  %v4738_v5 = vld [vmem:[#allocation29_spill] sm:$0xff] }
 0x142   :  { %963 = vmatmul.f32.gmra.mxu3 %v4725_v26  ;;  %v745_v36 = vpop.f32.mrf.mxu0  ;;  %v3791_v58 = vpop.f32.mrf.mxu1 }
 0x144   :  { %v591_v42 = vpop.f32.mrf.mxu2 }
 0x145   :  { %v668_v46 = vpop.f32.mrf.mxu3  ;;  %v592_v32 = vadd.f32 %v591_v42, %v4726_v40  ;;  %1040 = vmatmul.f32.gmra.mxu0 %v4727_v13  ;;  %1117 = vmatmul.f32.gmra.mxu1 %v4728_v23  ;;  %v4741_v42 = vld [vmem:[#allocation34_spill] sm:$0xff]  ;;  %v4742_v40 = vld [vmem:[#allocation32_spill] sm:$0xff] }
 0x147   :  { %v669_v45 = vadd.f32 %v668_v46, %v592_v32  ;;  %v4743_v32 = vld [vmem:[#allocation33_spill] sm:$0xff] }
 0x149   :  { %v3796_v4 = vadd.f32 %v745_v36, %v669_v45  ;;  %889 = vmatmul.f32.gmra.mxu2 %v4729_v18  ;;  %v4745_v45 = vld [vmem:[#allocation5_spill] sm:$0xff]  ;;  %v4746_v18 = vld [vmem:[#allocation35_spill] sm:$0xff] }
 0x14a   :  { %966 = vmatmul.f32.gmra.mxu3 %v4730_v57  ;;  %v748_v7 = vpop.f32.mrf.mxu0  ;;  %v3800_v0 = vpop.f32.mrf.mxu1 }
 0x14c   :  { %v594_v54 = vpop.f32.mrf.mxu2 }
 0x14d   :  { %v671_v33 = vpop.f32.mrf.mxu3  ;;  %v595_v25 = vadd.f32 %v594_v54, %v4731_v15  ;;  %1043 = vmatmul.f32.gmra.mxu0 %v4732_v28  ;;  %1120 = vmatmul.f32.gmra.mxu1 %v4733_v20  ;;  %v4747_v15 = vld [vmem:[#allocation38_spill] sm:$0xff]  ;;  %v4748_v28 = vld [vmem:[#allocation36_spill] sm:$0xff]  ;;  %v4749_v20 = vld [vmem:[#allocation37_spill] sm:$0xff] }
 0x14f   :  { %v672_v53 = vadd.f32 %v671_v33, %v595_v25 }
 0x151   :  { %v3805_v2 = vadd.f32 %v748_v7, %v672_v53  ;;  %892 = vmatmul.f32.gmra.mxu2 %v4734_v31 }
 0x152   :  { %969 = vmatmul.f32.gmra.mxu3 %v4735_v56  ;;  %v751_v1 = vpop.f32.mrf.mxu0  ;;  %v3809_v47 = vpop.f32.mrf.mxu1  ;;  %v4750_v56 = vld [vmem:[#allocation6_spill] sm:$0xff] }
 0x154   :  { %v597_v37 = vpop.f32.mrf.mxu2 }
 0x155   :  { %v674_v59 = vpop.f32.mrf.mxu3  ;;  %v598_v8 = vadd.f32 %v597_v37, %v4736_v49  ;;  %1046 = vmatmul.f32.gmra.mxu0 %v4737_v21  ;;  %1123 = vmatmul.f32.gmra.mxu1 %v4738_v5  ;;  %v4752_v21 = vld [vmem:[#allocation42_spill] sm:$0xff] }
 0x157   :  { %v675_v10 = vadd.f32 %v674_v59, %v598_v8 }
 0x159   :  { %v3814_v11 = vadd.f32 %v751_v1, %v675_v10  ;;  %895 = vmatmul.f32.gmra.mxu2 %v4739_v3  ;;  %v4751_v1 = vld [vmem:[#allocation39_spill] sm:$0xff]  ;;  %v4753_v10 = vld [vmem:[#allocation40_spill] sm:$0xff]  ;;  %v4754_v3 = vld [vmem:[#allocation41_spill] sm:$0xff] }
 0x15a   :  { %972 = vmatmul.f32.gmra.mxu3 %v4740_v62  ;;  %v754_v51 = vpop.f32.mrf.mxu0  ;;  %v3818_v44 = vpop.f32.mrf.mxu1 }
 0x15c   :  { %v600_v26 = vpop.f32.mrf.mxu2 }
 0x15d   :  { %v677_v36 = vpop.f32.mrf.mxu3  ;;  %v601_v46 = vadd.f32 %v600_v26, %v4741_v42  ;;  %1049 = vmatmul.f32.gmra.mxu0 %v4742_v40  ;;  %1126 = vmatmul.f32.gmra.mxu1 %v4743_v32  ;;  %v4755_v26 = vld [vmem:[#allocation7_spill] sm:$0xff] }
 0x15f   :  { %v678_v13 = vadd.f32 %v677_v36, %v601_v46  ;;  %v4756_v36 = vld [vmem:[#allocation43_spill] sm:$0xff] }
 0x161   :  { %v3823_v23 = vadd.f32 %v754_v51, %v678_v13  ;;  %898 = vmatmul.f32.gmra.mxu2 %v4745_v45  ;;  %v4757_v13 = vld [vmem:[#allocation46_spill] sm:$0xff] }
 0x162   :  { %975 = vmatmul.f32.gmra.mxu3 %v4746_v18  ;;  %v757_v57 = vpop.f32.mrf.mxu0  ;;  %v3827_v7 = vpop.f32.mrf.mxu1  ;;  %v4758_v18 = vld [vmem:[#allocation44_spill] sm:$0xff] }
 0x163   :  { %4744 = vst [vmem:[#allocation12_spill] sm:$0xff] %v3823_v23 }
 0x164   :  { %v603_v54 = vpop.f32.mrf.mxu2 }
 0x165   :  { %v680_v33 = vpop.f32.mrf.mxu3  ;;  %v604_v25 = vadd.f32 %v603_v54, %v4747_v15  ;;  %1052 = vmatmul.f32.gmra.mxu0 %v4748_v28  ;;  %1129 = vmatmul.f32.gmra.mxu1 %v4749_v20  ;;  %v4761_v15 = vld [vmem:[#allocation8_spill] sm:$0xff] }
 0x167   :  { %v681_v53 = vadd.f32 %v680_v33, %v604_v25  ;;  %v4762_v25 = vld [vmem:[#allocation47_spill] sm:$0xff] }
 0x169   :  { %v3832_v31 = vadd.f32 %v757_v57, %v681_v53  ;;  %901 = vmatmul.f32.gmra.mxu2 %v4750_v56  ;;  %v4759_v57 = vld [vmem:[#allocation45_spill] sm:$0xff] }
 0x16a   :  { %978 = vmatmul.f32.gmra.mxu3 %v4751_v1  ;;  %v760_v37 = vpop.f32.mrf.mxu0  ;;  %v3836_v59 = vpop.f32.mrf.mxu1  ;;  %v4763_v1 = vld [vmem:[#allocation50_spill] sm:$0xff] }
 0x16c   :  { %v606_v49 = vpop.f32.mrf.mxu2 }
 0x16d   :  { %v683_v8 = vpop.f32.mrf.mxu3  ;;  %v607_v5 = vadd.f32 %v606_v49, %v4752_v21  ;;  %1055 = vmatmul.f32.gmra.mxu0 %v4753_v10  ;;  %1132 = vmatmul.f32.gmra.mxu1 %v4754_v3  ;;  %v4764_v49 = vld [vmem:[#allocation48_spill] sm:$0xff]  ;;  %v4767_v10 = vld [vmem:[#allocation9_spill] sm:$0xff]  ;;  %v4768_v3 = vld [vmem:[#allocation51_spill] sm:$0xff] }
 0x16f   :  { %v684_v62 = vadd.f32 %v683_v8, %v607_v5  ;;  %v4765_v8 = vld [vmem:[#allocation49_spill] sm:$0xff] }
 0x171   :  { %v3841_v51 = vadd.f32 %v760_v37, %v684_v62  ;;  %904 = vmatmul.f32.gmra.mxu2 %v4755_v26 }
 0x172   :  { %981 = vmatmul.f32.gmra.mxu3 %v4756_v36  ;;  %v763_v42 = vpop.f32.mrf.mxu0  ;;  %v3845_v46 = vpop.f32.mrf.mxu1 }
 0x174   :  { %v609_v40 = vpop.f32.mrf.mxu2 }
 0x175   :  { %v686_v32 = vpop.f32.mrf.mxu3  ;;  %v610_v45 = vadd.f32 %v609_v40, %v4757_v13  ;;  %1058 = vmatmul.f32.gmra.mxu0 %v4758_v18  ;;  %1135 = vmatmul.f32.gmra.mxu1 %v4759_v57  ;;  %v4769_v40 = vld [vmem:[#allocation54_spill] sm:$0xff]  ;;  %v4770_v13 = vld [vmem:[#allocation52_spill] sm:$0xff] }
 0x177   :  { %v687_v54 = vadd.f32 %v686_v32, %v610_v45  ;;  %v4771_v45 = vld [vmem:[#allocation53_spill] sm:$0xff] }
 0x179   :  { %v3850_v33 = vadd.f32 %v763_v42, %v687_v54  ;;  %907 = vmatmul.f32.gmra.mxu2 %v4761_v15  ;;  %v4772_v54 = vld [vmem:[#allocation10_spill] sm:$0xff]  ;;  %v4773_v15 = vld [vmem:[#allocation55_spill] sm:$0xff] }
 0x17a   :  { %984 = vmatmul.f32.gmra.mxu3 %v4762_v25  ;;  %v766_v28 = vpop.f32.mrf.mxu0  ;;  %v3854_v20 = vpop.f32.mrf.mxu1 }
 0x17b   :  { %4760 = vst [vmem:[#allocation19_spill] sm:$0xff] %v3850_v33 }
 0x17c   :  { %v612_v53 = vpop.f32.mrf.mxu2 }
 0x17d   :  { %v689_v56 = vpop.f32.mrf.mxu3  ;;  %v613_v37 = vadd.f32 %v612_v53, %v4763_v1  ;;  %1061 = vmatmul.f32.gmra.mxu0 %v4764_v49  ;;  %1138 = vmatmul.f32.gmra.mxu1 %v4765_v8  ;;  %v4774_v1 = vld [vmem:[#allocation58_spill] sm:$0xff]  ;;  %v4775_v49 = vld [vmem:[#allocation56_spill] sm:$0xff]  ;;  %v4776_v8 = vld [vmem:[#allocation57_spill] sm:$0xff] }
 0x17f   :  { %v690_v21 = vadd.f32 %v689_v56, %v613_v37 }
 0x181   :  { %v3859_v5 = vadd.f32 %v766_v28, %v690_v21  ;;  %910 = vmatmul.f32.gmra.mxu2 %v4767_v10 }
 0x182   :  { %987 = vmatmul.f32.gmra.mxu3 %v4768_v3  ;;  %v769_v62 = vpop.f32.mrf.mxu0  ;;  %v3863_v26 = vpop.f32.mrf.mxu1  ;;  %v4777_v3 = vld [vmem:[#allocation11_spill] sm:$0xff] }
 0x183   :  { %4766 = vst [vmem:[#allocation22_spill] sm:$0xff] %v3859_v5 }
 0x184   :  { %v615_v36 = vpop.f32.mrf.mxu2 }
 0x185   :  { %v692_v42 = vpop.f32.mrf.mxu3  ;;  %v616_v32 = vadd.f32 %v615_v36, %v4769_v40  ;;  %1064 = vmatmul.f32.gmra.mxu0 %v4770_v13  ;;  %1141 = vmatmul.f32.gmra.mxu1 %v4771_v45  ;;  %v4779_v13 = vld [vmem:[#allocation61_spill] sm:$0xff] }
 0x187   :  { %v693_v18 = vadd.f32 %v692_v42, %v616_v32 }
 0x189   :  { %v3868_v57 = vadd.f32 %v769_v62, %v693_v18  ;;  %913 = vmatmul.f32.gmra.mxu2 %v4772_v54  ;;  %v4778_v62 = vld [vmem:[#allocation59_spill] sm:$0xff]  ;;  %v4780_v18 = vld [vmem:[#allocation60_spill] sm:$0xff] }
 0x18a   :  { %990 = vmatmul.f32.gmra.mxu3 %v4773_v15  ;;  %v772_v25 = vpop.f32.mrf.mxu0  ;;  %v3872_v28 = vpop.f32.mrf.mxu1 }
 0x18c   :  { %v618_v53 = vpop.f32.mrf.mxu2 }
 0x18d   :  { %v695_v56 = vpop.f32.mrf.mxu3  ;;  %v619_v37 = vadd.f32 %v618_v53, %v4774_v1  ;;  %1067 = vmatmul.f32.gmra.mxu0 %v4775_v49  ;;  %1144 = vmatmul.f32.gmra.mxu1 %v4776_v8  ;;  %v4781_v53 = vld [vmem:[#allocation13_spill] sm:$0xff] }
 0x18f   :  { %v696_v21 = vadd.f32 %v695_v56, %v619_v37 }
 0x191   :  { %v773_v10 = vadd.f32 %v772_v25, %v696_v21  ;;  %916 = vmatmul.f32.gmra.mxu2 %v4777_v3  ;;  %v4782_v21 = vld [vmem:[#allocation62_spill] sm:$0xff]  ;;  %v4783_v3 = vld [vmem:[#allocation15_spill] sm:$0xff] }
 0x192   :  { %993 = vmatmul.f32.gmra.mxu3 %v4778_v62  ;;  %v1023_v36 = vpop.f32.mrf.mxu0  ;;  %v1100_v42 = vpop.f32.mrf.mxu1 }
 0x193   :  { %1199 = vst [vmem:[#allocation2 + $0x130] sm:$0xff] %v773_v10 }
 0x194   :  { %v869_v40 = vpop.f32.mrf.mxu2 }
 0x195   :  { %v946_v32 = vpop.f32.mrf.mxu3  ;;  %v870_v45 = vadd.f32 %v869_v40, %v4779_v13  ;;  %1070 = vmatmul.f32.gmra.mxu0 %v4780_v18  ;;  %1147 = vmatmul.f32.gmra.mxu1 %v3629_v27  ;;  %v4785_v18 = vld [vmem:[#allocation63_spill] sm:$0xff] }
 0x197   :  { %v947_v54 = vadd.f32 %v946_v32, %v870_v45 }
 0x199   :  { %v1024_v15 = vadd.f32 %v1023_v36, %v947_v54  ;;  %919 = vmatmul.f32.gmra.mxu2 %v4781_v53 }
 0x19a   :  { %996 = vmatmul.f32.gmra.mxu3 %v3648_v55  ;;  %v1026_v25 = vpop.f32.mrf.mxu0  ;;  %v1103_v56 = vpop.f32.mrf.mxu1 }
 0x19b   :  { %v1101_v1 = vadd.f32 %v1100_v42, %v1024_v15 }
 0x19c   :  { %v872_v37 = vpop.f32.mrf.mxu2 }
 0x19d   :  { %v949_v49 = vpop.f32.mrf.mxu3  ;;  %1162 = vst.msk [vmem:[#allocation2 + $0x8] sm:$0xff] %vm1161_vm0, %v1101_v1  ;;  %v873_v8 = vadd.f32 %v872_v37, %v3668_v39  ;;  %1073 = vmatmul.f32.gmra.mxu0 %v4782_v21  ;;  %1150 = vmatmul.f32.gmra.mxu1 %v3663_v17  ;;  %v4784_v17 = vld [vmem:[#allocation64_spill] sm:$0xff]  ;;  %v4786_v1 = vld [vmem:[#allocation17_spill] sm:$0xff] }
 0x19f   :  { %v950_v27 = vadd.f32 %v949_v49, %v873_v8 }
 0x1a1   :  { %v1027_v10 = vadd.f32 %v1026_v25, %v950_v27  ;;  %922 = vmatmul.f32.gmra.mxu2 %v4783_v3  ;;  %v4787_v3 = vld [vmem:[#allocation65_spill] sm:$0xff] }
 0x1a2   :  { %999 = vmatmul.f32.gmra.mxu3 %v3676_v9  ;;  %v1029_v55 = vpop.f32.mrf.mxu0  ;;  %v1106_v62 = vpop.f32.mrf.mxu1  ;;  %v1321_v9 = vmul.f32 %v4785_v18, %v4785_v18 }
 0x1a3   :  { %v1104_v36 = vadd.f32 %v1103_v56, %v1027_v10 }
 0x1a4   :  { %v875_v42 = vpop.f32.mrf.mxu2  ;;  %v1202_v32 = vld [vmem:[#allocation2 + $0x8] sm:$0xff] }
 0x1a5   :  { %v952_v40 = vpop.f32.mrf.mxu3  ;;  %1164 = vst.msk [vmem:[#allocation2 + $0x18] sm:$0xff] %vm1161_vm0, %v1104_v36  ;;  %v876_v39 = vadd.f32 %v875_v42, %v3696_v61  ;;  %v1241_v13 = vsel %vm1161_vm0, %v1202_v32, 0.0  ;;  %v1322_v45 = vmul.f32 %v1202_v32, %v1202_v32  ;;  %1076 = vmatmul.f32.gmra.mxu0 %v4784_v17  ;;  %1153 = vmatmul.f32.gmra.mxu1 %v3691_v48 }
 0x1a6   :  { %v1242_v54 = vadd.f32 %v1241_v13, %v4785_v18  ;;  %v1323_v17 = vmul.f32 %v4787_v3, %v4787_v3 }
 0x1a7   :  { %v953_v15 = vadd.f32 %v952_v40, %v876_v39  ;;  %v1361_v53 = vsel %vm1161_vm0, %v1322_v45, 0.0 }
 0x1a8   :  { %1243 = vadd.xlane.f32.xlu0 %v1242_v54  ;;  %v1362_v25 = vadd.f32 %v1361_v53, %v1321_v9 }
 0x1a9   :  { %v1030_v56 = vadd.f32 %v1029_v55, %v953_v15  ;;  %925 = vmatmul.f32.gmra.mxu2 %v4786_v1 }
 0x1aa   :  { %1002 = vmatmul.f32.gmra.mxu3 %v3704_v41  ;;  %1363 = vadd.xlane.f32.xlu2 %v1362_v25  ;;  %v1032_v61 = vpop.f32.mrf.mxu0  ;;  %v1109_v37 = vpop.f32.mrf.mxu1 }
 0x1ab   :  { %v1107_v49 = vadd.f32 %v1106_v62, %v1030_v56 }
 0x1ac   :  { %v878_v48 = vpop.f32.mrf.mxu2  ;;  %v1204_v21 = vld [vmem:[#allocation2 + $0x18] sm:$0xff] }
 0x1ad   :  { %v955_v8 = vpop.f32.mrf.mxu3  ;;  %1166 = vst.msk [vmem:[#allocation2 + $0x28] sm:$0xff] %vm1161_vm0, %v1107_v49  ;;  %v879_v27 = vadd.f32 %v878_v48, %v3721_v63  ;;  %v1245_v10 = vsel %vm1161_vm0, %v1204_v21, 0.0  ;;  %1079 = vmatmul.f32.gmra.mxu0 %v3707_v35  ;;  %1156 = vmatmul.f32.gmra.mxu1 %v3719_v52  ;;  %v1324_v36 = vmul.f32 %v1204_v21, %v1204_v21 }
 0x1ae   :  { %v1246_v55 = vadd.f32 %v1245_v10, %v4787_v3 }
 0x1af   :  { %v956_v41 = vadd.f32 %v955_v8, %v879_v27  ;;  %v1365_v39 = vsel %vm1161_vm0, %v1324_v36, 0.0 }
 0x1b0   :  { %1247 = vadd.xlane.f32.xlu0 %v1246_v55  ;;  %v1366_v9 = vadd.f32 %v1365_v39, %v1323_v17  ;;  %v1327_v55 = vmul.f32 %v3727_v43, %v3727_v43 }
 0x1b1   :  { %v1033_v42 = vadd.f32 %v1032_v61, %v956_v41 }
 0x1b2   :  { %v1035_v62 = vpop.f32.mrf.mxu0  ;;  %v1112_v40 = vpop.f32.mrf.mxu1 }
 0x1b3   :  { %v1110_v32 = vadd.f32 %v1109_v37, %v1033_v42 }
 0x1b4   :  { %v881_v13 = vpop.f32.mrf.mxu2  ;;  %v1206_v63 = vld [vmem:[#allocation2 + $0x28] sm:$0xff] }
 0x1b5   :  { %v958_v45 = vpop.f32.mrf.mxu3  ;;  %1168 = vst.msk [vmem:[#allocation2 + $0x38] sm:$0xff] %vm1161_vm0, %v1110_v32  ;;  %v882_v35 = vadd.f32 %v881_v13, %v3731_v6  ;;  %v1249_v52 = vsel %vm1161_vm0, %v1206_v63, 0.0  ;;  %v1326_v53 = vmul.f32 %v1206_v63, %v1206_v63  ;;  %v1325_v6 = vmul.f32 %v3714_v38, %v3714_v38 }
 0x1b6   :  { %v1250_v54 = vadd.f32 %v1249_v52, %v3714_v38 }
 0x1b7   :  { %v959_v15 = vadd.f32 %v958_v45, %v882_v35  ;;  %v1369_v37 = vsel %vm1161_vm0, %v1326_v53, 0.0 }
 0x1b8   :  { %1251 = vadd.xlane.f32.xlu1 %v1250_v54  ;;  %1367 = vadd.xlane.f32.xlu0 %v1366_v9  ;;  %v1370_v10 = vadd.f32 %v1369_v37, %v1325_v6  ;;  %v1329_v9 = vmul.f32 %v3737_v16, %v3737_v16 }
 0x1b9   :  { %v1036_v25 = vadd.f32 %v1035_v62, %v959_v15 }
 0x1ba   :  { %v1038_v56 = vpop.f32.mrf.mxu0  ;;  %v1115_v1 = vpop.f32.mrf.mxu1 }
 0x1bb   :  { %v1113_v61 = vadd.f32 %v1112_v40, %v1036_v25 }
 0x1bc   :  { %v884_v49 = vpop.f32.mrf.mxu2  ;;  %v1208_v8 = vld [vmem:[#allocation2 + $0x38] sm:$0xff] }
 0x1bd   :  { %v961_v48 = vpop.f32.mrf.mxu3  ;;  %1170 = vst.msk [vmem:[#allocation2 + $0x48] sm:$0xff] %vm1161_vm0, %v1113_v61  ;;  %v885_v21 = vadd.f32 %v884_v49, %v3741_v30  ;;  %v1328_v27 = vmul.f32 %v1208_v8, %v1208_v8  ;;  %v1253_v13 = vsel %vm1161_vm0, %v1208_v8, 0.0 }
 0x1be   :  { %v1254_v54 = vadd.f32 %v1253_v13, %v3727_v43 }
 0x1bf   :  { %v962_v41 = vadd.f32 %v961_v48, %v885_v21  ;;  %v1373_v36 = vsel %vm1161_vm0, %v1328_v27, 0.0 }
 0x1c0   :  { %1371 = vadd.xlane.f32.xlu1 %v1370_v10  ;;  %v1374_v42 = vadd.f32 %v1373_v36, %v1327_v55  ;;  %v1331_v10 = vmul.f32 %v3747_v12, %v3747_v12 }
 0x1c1   :  { %v1039_v62 = vadd.f32 %v1038_v56, %v962_v41 }
 0x1c2   :  { %1375 = vadd.xlane.f32.xlu2 %v1374_v42  ;;  %v1041_v40 = vpop.f32.mrf.mxu0  ;;  %v1118_v32 = vpop.f32.mrf.mxu1 }
 0x1c3   :  { %v1116_v39 = vadd.f32 %v1115_v1, %v1039_v62 }
 0x1c4   :  { %v887_v45 = vpop.f32.mrf.mxu2  ;;  %v1210_v30 = vld [vmem:[#allocation2 + $0x48] sm:$0xff] }
 0x1c5   :  { %v964_v63 = vpop.f32.mrf.mxu3  ;;  %1172 = vst.msk [vmem:[#allocation2 + $0x58] sm:$0xff] %vm1161_vm0, %v1116_v39  ;;  %v888_v17 = vadd.f32 %v887_v45, %v3751_v22  ;;  %v1257_v35 = vsel %vm1161_vm0, %v1210_v30, 0.0  ;;  %v1330_v52 = vmul.f32 %v1210_v30, %v1210_v30 }
 0x1c6   :  { %v1258_v25 = vadd.f32 %v1257_v35, %v3737_v16 }
 0x1c7   :  { %v965_v15 = vadd.f32 %v964_v63, %v888_v17  ;;  %v1377_v53 = vsel %vm1161_vm0, %v1330_v52, 0.0  ;;  %v1333_v52 = vmul.f32 %v3757_v34, %v3757_v34 }
 0x1c8   :  { %1255 = vadd.xlane.f32.xlu1 %v1254_v54  ;;  %v1378_v56 = vadd.f32 %v1377_v53, %v1329_v9 }
 0x1c9   :  { %v1042_v1 = vadd.f32 %v1041_v40, %v965_v15 }
 0x1ca   :  { %1259 = vadd.xlane.f32.xlu2 %v1258_v25  ;;  %1379 = vadd.xlane.f32.xlu0 %v1378_v56  ;;  %v1044_v61 = vpop.f32.mrf.mxu0  ;;  %v1121_v22 = vpop.f32.mrf.mxu1 }
 0x1cb   :  { %v1119_v37 = vadd.f32 %v1118_v32, %v1042_v1 }
 0x1cc   :  { %v890_v49 = vpop.f32.mrf.mxu2  ;;  %v1212_v6 = vld [vmem:[#allocation2 + $0x58] sm:$0xff] }
 0x1cd   :  { %v967_v48 = vpop.f32.mrf.mxu3  ;;  %1174 = vst.msk [vmem:[#allocation2 + $0x68] sm:$0xff] %vm1161_vm0, %v1119_v37  ;;  %v891_v8 = vadd.f32 %v890_v49, %v3761_v60  ;;  %v1332_v21 = vmul.f32 %v1212_v6, %v1212_v6  ;;  %v1261_v27 = vsel %vm1161_vm0, %v1212_v6, 0.0 }
 0x1ce   :  { %v1262_v42 = vadd.f32 %v1261_v27, %v3747_v12 }
 0x1cf   :  { %v968_v55 = vadd.f32 %v967_v48, %v891_v8  ;;  %v1381_v41 = vsel %vm1161_vm0, %v1332_v21, 0.0  ;;  %v1335_v8 = vmul.f32 %v3767_v29, %v3767_v29 }
 0x1d0   :  { %v1382_v36 = vadd.f32 %v1381_v41, %v1331_v10 }
 0x1d1   :  { %v1045_v62 = vadd.f32 %v1044_v61, %v968_v55 }
 0x1d2   :  { %1383 = vadd.xlane.f32.xlu1 %v1382_v36  ;;  %1263 = vadd.xlane.f32.xlu2 %v1262_v42  ;;  %v1047_v40 = vpop.f32.mrf.mxu0  ;;  %v1124_v32 = vpop.f32.mrf.mxu1 }
 0x1d3   :  { %v1122_v39 = vadd.f32 %v1121_v22, %v1045_v62 }
 0x1d4   :  { %v893_v13 = vpop.f32.mrf.mxu2  ;;  %v1214_v45 = vld [vmem:[#allocation2 + $0x68] sm:$0xff] }
 0x1d5   :  { %v970_v60 = vpop.f32.mrf.mxu3  ;;  %1176 = vst.msk [vmem:[#allocation2 + $0x78] sm:$0xff] %vm1161_vm0, %v1122_v39  ;;  %v894_v63 = vadd.f32 %v893_v13, %v3771_v14  ;;  %v1265_v30 = vsel %vm1161_vm0, %v1214_v45, 0.0  ;;  %v1334_v17 = vmul.f32 %v1214_v45, %v1214_v45  ;;  %v1337_v45 = vmul.f32 %v3777_v19, %v3777_v19 }
 0x1d6   :  { %v1266_v35 = vadd.f32 %v1265_v30, %v3757_v34 }
 0x1d7   :  { %v971_v54 = vadd.f32 %v970_v60, %v894_v63  ;;  %v1385_v9 = vsel %vm1161_vm0, %v1334_v17, 0.0 }
 0x1d8   :  { %1267 = vadd.xlane.f32.xlu0 %v1266_v35  ;;  %v1386_v15 = vadd.f32 %v1385_v9, %v1333_v52 }
 0x1d9   :  { %v1048_v53 = vadd.f32 %v1047_v40, %v971_v54 }
 0x1da   :  { %1387 = vadd.xlane.f32.xlu2 %v1386_v15  ;;  %v1050_v25 = vpop.f32.mrf.mxu0  ;;  %v1127_v56 = vpop.f32.mrf.mxu1 }
 0x1db   :  { %v1125_v1 = vadd.f32 %v1124_v32, %v1048_v53 }
 0x1dc   :  { %v896_v61 = vpop.f32.mrf.mxu2  ;;  %v1216_v22 = vld [vmem:[#allocation2 + $0x78] sm:$0xff] }
 0x1dd   :  { %v973_v14 = vpop.f32.mrf.mxu3  ;;  %1178 = vst.msk [vmem:[#allocation2 + $0x88] sm:$0xff] %vm1161_vm0, %v1125_v1  ;;  %v897_v37 = vadd.f32 %v896_v61, %v3781_v50  ;;  %v1269_v49 = vsel %vm1161_vm0, %v1216_v22, 0.0  ;;  %v1336_v48 = vmul.f32 %v1216_v22, %v1216_v22 }
 0x1de   :  { %v1270_v6 = vadd.f32 %v1269_v49, %v3767_v29 }
 0x1df   :  { %v974_v21 = vadd.f32 %v973_v14, %v897_v37  ;;  %v1389_v27 = vsel %vm1161_vm0, %v1336_v48, 0.0  ;;  %v1339_v14 = vmul.f32 %v3787_v24, %v3787_v24 }
 0x1e0   :  { %1271 = vadd.xlane.f32.xlu1 %v1270_v6  ;;  %v1390_v10 = vadd.f32 %v1389_v27, %v1335_v8 }
 0x1e1   :  { %v1051_v55 = vadd.f32 %v1050_v25, %v974_v21 }
 0x1e2   :  { %1391 = vadd.xlane.f32.xlu0 %v1390_v10  ;;  %v1053_v41 = vpop.f32.mrf.mxu0  ;;  %v1130_v36 = vpop.f32.mrf.mxu1 }
 0x1e3   :  { %v1128_v42 = vadd.f32 %v1127_v56, %v1051_v55 }
 0x1e4   :  { %v899_v62 = vpop.f32.mrf.mxu2  ;;  %v1218_v40 = vld [vmem:[#allocation2 + $0x88] sm:$0xff] }
 0x1e5   :  { %v976_v50 = vpop.f32.mrf.mxu3  ;;  %1180 = vst.msk [vmem:[#allocation2 + $0x98] sm:$0xff] %vm1161_vm0, %v1128_v42  ;;  %v900_v32 = vadd.f32 %v899_v62, %v3791_v58  ;;  %v1273_v39 = vsel %vm1161_vm0, %v1218_v40, 0.0  ;;  %v1338_v13 = vmul.f32 %v1218_v40, %v1218_v40  ;;  %v1341_v62 = vmul.f32 %v3796_v4, %v3796_v4 }
 0x1e6   :  { %v1274_v60 = vadd.f32 %v1273_v39, %v3777_v19 }
 0x1e7   :  { %v977_v63 = vadd.f32 %v976_v50, %v900_v32  ;;  %v1393_v30 = vsel %vm1161_vm0, %v1338_v13, 0.0 }
 0x1e8   :  { %1275 = vadd.xlane.f32.xlu2 %v1274_v60  ;;  %v1394_v17 = vadd.f32 %v1393_v30, %v1337_v45 }
 0x1e9   :  { %v1054_v35 = vadd.f32 %v1053_v41, %v977_v63 }
 0x1ea   :  { %1395 = vadd.xlane.f32.xlu1 %v1394_v17  ;;  %v1056_v52 = vpop.f32.mrf.mxu0  ;;  %v1133_v54 = vpop.f32.mrf.mxu1 }
 0x1eb   :  { %v1131_v9 = vadd.f32 %v1130_v36, %v1054_v35 }
 0x1ec   :  { %v902_v15 = vpop.f32.mrf.mxu2  ;;  %v1220_v53 = vld [vmem:[#allocation2 + $0x98] sm:$0xff] }
 0x1ed   :  { %v979_v58 = vpop.f32.mrf.mxu3  ;;  %1182 = vst.msk [vmem:[#allocation2 + $0xa8] sm:$0xff] %vm1161_vm0, %v1131_v9  ;;  %v903_v25 = vadd.f32 %v902_v15, %v3800_v0  ;;  %v1277_v56 = vsel %vm1161_vm0, %v1220_v53, 0.0  ;;  %v1340_v1 = vmul.f32 %v1220_v53, %v1220_v53  ;;  %v1343_v9 = vmul.f32 %v3805_v2, %v3805_v2 }
 0x1ee   :  { %v1278_v61 = vadd.f32 %v1277_v56, %v3787_v24 }
 0x1ef   :  { %v980_v22 = vadd.f32 %v979_v58, %v903_v25  ;;  %v1397_v37 = vsel %vm1161_vm0, %v1340_v1, 0.0 }
 0x1f0   :  { %1279 = vadd.xlane.f32.xlu0 %v1278_v61  ;;  %v1398_v49 = vadd.f32 %v1397_v37, %v1339_v14 }
 0x1f1   :  { %v1057_v48 = vadd.f32 %v1056_v52, %v980_v22 }
 0x1f2   :  { %1399 = vadd.xlane.f32.xlu2 %v1398_v49  ;;  %v1059_v6 = vpop.f32.mrf.mxu0  ;;  %v1136_v8 = vpop.f32.mrf.mxu1 }
 0x1f3   :  { %v1134_v21 = vadd.f32 %v1133_v54, %v1057_v48 }
 0x1f4   :  { %v905_v27 = vpop.f32.mrf.mxu2  ;;  %v1222_v10 = vld [vmem:[#allocation2 + $0xa8] sm:$0xff] }
 0x1f5   :  { %v982_v0 = vpop.f32.mrf.mxu3  ;;  %1184 = vst.msk [vmem:[#allocation2 + $0xb8] sm:$0xff] %vm1161_vm0, %v1134_v21  ;;  %v906_v55 = vadd.f32 %v905_v27, %v3809_v47  ;;  %v1281_v41 = vsel %vm1161_vm0, %v1222_v10, 0.0  ;;  %v1342_v36 = vmul.f32 %v1222_v10, %v1222_v10 }
 0x1f6   :  { %v1282_v42 = vadd.f32 %v1281_v41, %v3796_v4 }
 0x1f7   :  { %v983_v50 = vadd.f32 %v982_v0, %v906_v55  ;;  %v1401_v40 = vsel %vm1161_vm0, %v1342_v36, 0.0 }
 0x1f8   :  { %1283 = vadd.xlane.f32.xlu1 %v1282_v42  ;;  %v1402_v32 = vadd.f32 %v1401_v40, %v1341_v62 }
 0x1f9   :  { %v1060_v39 = vadd.f32 %v1059_v6, %v983_v50 }
 0x1fa   :  { %1403 = vadd.xlane.f32.xlu0 %v1402_v32  ;;  %v1062_v13 = vpop.f32.mrf.mxu0  ;;  %v1139_v60 = vpop.f32.mrf.mxu1 }
 0x1fb   :  { %v1137_v45 = vadd.f32 %v1136_v8, %v1060_v39  ;;  %v1345_v8 = vmul.f32 %v3814_v11, %v3814_v11 }
 0x1fc   :  { %v908_v63 = vpop.f32.mrf.mxu2  ;;  %v1224_v30 = vld [vmem:[#allocation2 + $0xb8] sm:$0xff] }
 0x1fd   :  { %v985_v47 = vpop.f32.mrf.mxu3  ;;  %1186 = vst.msk [vmem:[#allocation2 + $0xc8] sm:$0xff] %vm1161_vm0, %v1137_v45  ;;  %v909_v17 = vadd.f32 %v908_v63, %v3818_v44  ;;  %v1285_v35 = vsel %vm1161_vm0, %v1224_v30, 0.0  ;;  %v1344_v52 = vmul.f32 %v1224_v30, %v1224_v30 }
 0x1fe   :  { %v1286_v54 = vadd.f32 %v1285_v35, %v3805_v2 }
 0x1ff   :  { %v986_v15 = vadd.f32 %v985_v47, %v909_v17  ;;  %v1405_v58 = vsel %vm1161_vm0, %v1344_v52, 0.0 }
 0x200   :  { %1287 = vadd.xlane.f32.xlu2 %v1286_v54  ;;  %v1406_v53 = vadd.f32 %v1405_v58, %v1343_v9 }
 0x201   :  { %v1063_v25 = vadd.f32 %v1062_v13, %v986_v15  ;;  %v1347_v13 = vmul.f32 %v3823_v23, %v3823_v23 }
 0x202   :  { %1407 = vadd.xlane.f32.xlu1 %v1406_v53  ;;  %v1065_v56 = vpop.f32.mrf.mxu0  ;;  %v1142_v1 = vpop.f32.mrf.mxu1 }
 0x203   :  { %v1140_v61 = vadd.f32 %v1139_v60, %v1063_v25  ;;  %v1349_v25 = vmul.f32 %v3832_v31, %v3832_v31 }
 0x204   :  { %v911_v14 = vpop.f32.mrf.mxu2  ;;  %v1226_v22 = vld [vmem:[#allocation2 + $0xc8] sm:$0xff] }
 0x205   :  { %v988_v44 = vpop.f32.mrf.mxu3  ;;  %1188 = vst.msk [vmem:[#allocation2 + $0xd8] sm:$0xff] %vm1161_vm0, %v1140_v61  ;;  %v912_v37 = vadd.f32 %v911_v14, %v3827_v7  ;;  %v1289_v49 = vsel %vm1161_vm0, %v1226_v22, 0.0  ;;  %v1346_v48 = vmul.f32 %v1226_v22, %v1226_v22 }
 0x206   :  { %v1290_v6 = vadd.f32 %v1289_v49, %v3814_v11 }
 0x207   :  { %v989_v21 = vadd.f32 %v988_v44, %v912_v37  ;;  %v1409_v27 = vsel %vm1161_vm0, %v1346_v48, 0.0 }
 0x208   :  { %1291 = vadd.xlane.f32.xlu0 %v1290_v6  ;;  %v1410_v0 = vadd.f32 %v1409_v27, %v1345_v8 }
 0x209   :  { %v1066_v10 = vadd.f32 %v1065_v56, %v989_v21 }
 0x20a   :  { %1411 = vadd.xlane.f32.xlu2 %v1410_v0  ;;  %v1068_v55 = vpop.f32.mrf.mxu0  ;;  %v1145_v41 = vpop.f32.mrf.mxu1 }
 0x20b   :  { %v1143_v36 = vadd.f32 %v1142_v1, %v1066_v10 }
 0x20c   :  { %v914_v42 = vpop.f32.mrf.mxu2  ;;  %v1228_v62 = vld [vmem:[#allocation2 + $0xd8] sm:$0xff] }
 0x20d   :  { %v991_v7 = vpop.f32.mrf.mxu3  ;;  %1190 = vst.msk [vmem:[#allocation2 + $0xe8] sm:$0xff] %vm1161_vm0, %v1143_v36  ;;  %v915_v50 = vadd.f32 %v914_v42, %v3836_v59  ;;  %v1293_v40 = vsel %vm1161_vm0, %v1228_v62, 0.0  ;;  %v1348_v32 = vmul.f32 %v1228_v62, %v1228_v62  ;;  %v1351_v42 = vmul.f32 %v3841_v51, %v3841_v51 }
 0x20e   :  { %v1294_v39 = vadd.f32 %v1293_v40, %v3823_v23 }
 0x20f   :  { %v992_v60 = vadd.f32 %v991_v7, %v915_v50  ;;  %v1413_v45 = vsel %vm1161_vm0, %v1348_v32, 0.0 }
 0x210   :  { %1295 = vadd.xlane.f32.xlu1 %v1294_v39  ;;  %v1414_v63 = vadd.f32 %v1413_v45, %v1347_v13 }
 0x211   :  { %v1069_v47 = vadd.f32 %v1068_v55, %v992_v60 }
 0x212   :  { %1415 = vadd.xlane.f32.xlu0 %v1414_v63  ;;  %v1071_v30 = vpop.f32.mrf.mxu0  ;;  %v1148_v17 = vpop.f32.mrf.mxu1 }
 0x213   :  { %v1146_v35 = vadd.f32 %v1145_v41, %v1069_v47 }
 0x214   :  { %v917_v52 = vpop.f32.mrf.mxu2  ;;  %v1230_v54 = vld [vmem:[#allocation2 + $0xe8] sm:$0xff] }
 0x215   :  { %v994_v59 = vpop.f32.mrf.mxu3  ;;  %1192 = vst.msk [vmem:[#allocation2 + $0xf8] sm:$0xff] %vm1161_vm0, %v1146_v35  ;;  %v918_v9 = vadd.f32 %v917_v52, %v3845_v46  ;;  %v1297_v15 = vsel %vm1161_vm0, %v1230_v54, 0.0  ;;  %v1350_v58 = vmul.f32 %v1230_v54, %v1230_v54 }
 0x216   :  { %v1298_v53 = vadd.f32 %v1297_v15, %v3832_v31 }
 0x217   :  { %v995_v56 = vadd.f32 %v994_v59, %v918_v9  ;;  %v1417_v1 = vsel %vm1161_vm0, %v1350_v58, 0.0  ;;  %v1353_v9 = vmul.f32 %v3850_v33, %v3850_v33 }
 0x218   :  { %1299 = vadd.xlane.f32.xlu2 %v1298_v53  ;;  %v1418_v61 = vadd.f32 %v1417_v1, %v1349_v25 }
 0x219   :  { %v1072_v14 = vadd.f32 %v1071_v30, %v995_v56 }
 0x21a   :  { %1419 = vadd.xlane.f32.xlu1 %v1418_v61  ;;  %v1074_v44 = vpop.f32.mrf.mxu0  ;;  %v1151_v49 = vpop.f32.mrf.mxu1 }
 0x21b   :  { %v1149_v22 = vadd.f32 %v1148_v17, %v1072_v14  ;;  %v1244_v37 = vpop.xlane.xlu0 %1243 }
 0x21c   :  { %v4001_v46 = vmul.f32 0.0051020407, %v1244_v37  ;;  %v920_v48 = vpop.f32.mrf.mxu2  ;;  %v1232_v8 = vld [vmem:[#allocation2 + $0xf8] sm:$0xff] }
 0x21d   :  { %v997_v6 = vpop.f32.mrf.mxu3  ;;  %1194 = vst.msk [vmem:[#allocation2 + $0x108] sm:$0xff] %vm1161_vm0, %v1149_v22  ;;  %v921_v21 = vadd.f32 %v920_v48, %v3854_v20  ;;  %v1364_v27 = vpop.xlane.xlu2 %1363  ;;  %v1301_v0 = vsel %vm1161_vm0, %v1232_v8, 0.0  ;;  %v1352_v10 = vmul.f32 %v1232_v8, %v1232_v8 }
 0x21e   :  { %v1481_v55 = vmul.f32 %v4001_v46, %v4001_v46  ;;  %v1461_v41 = vmul.f32 0.0051020407, %v1364_v27  ;;  %v1302_v36 = vadd.f32 %v1301_v0, %v3841_v51 }
 0x21f   :  { %v998_v7 = vadd.f32 %v997_v6, %v921_v21  ;;  %v1421_v62 = vsel %vm1161_vm0, %v1352_v10, 0.0  ;;  %v4658_v6 = vmov 0  }
 0x220   :  { %v1501_v50 = vsub.f32 %v1461_v41, %v1481_v55  ;;  %1303 = vadd.xlane.f32.xlu0 %v1302_v36  ;;  %v1422_v40 = vadd.f32 %v1421_v62, %v1351_v42  ;;  %2298 = vset.pattern.permute.xlu2 %v4658_v6  ;;  %v1355_v42 = vmul.f32 %v3859_v5, %v3859_v5 }
 0x221   :  { %v1075_v20 = vadd.f32 %v1074_v44, %v998_v7  ;;  %2297 = vset.pattern.permute.xlu0 %v4658_v6  ;;  %2299 = vset.pattern.permute.xlu1 %v4658_v6 }
 0x222   :  { %v1521_v32 = vmax.f32 %v1501_v50, 0.0  ;;  %1423 = vadd.xlane.f32.xlu2 %v1422_v40  ;;  %v1077_v60 = vpop.f32.mrf.mxu0  ;;  %v1154_v54 = vpop.f32.mrf.mxu1 }
 0x223   :  { %v1152_v39 = vadd.f32 %v1151_v49, %v1075_v20  ;;  %v1248_v13 = vpop.xlane.xlu0 %1247 }
 0x224   :  { %v4012_v45 = vadd.f32 0.001, %v1521_v32  ;;  %v923_v63 = vpop.f32.mrf.mxu2  ;;  %v1234_v30 = vld [vmem:[#allocation2 + $0x108] sm:$0xff]  ;;  %v4022_v53 = vmul.f32 0.0051020407, %v1248_v13 }
 0x225   :  { %v1000_v47 = vpop.f32.mrf.mxu3  ;;  %1196 = vst.msk [vmem:[#allocation2 + $0x118] sm:$0xff] %vm1161_vm0, %v1152_v39  ;;  %v924_v17 = vadd.f32 %v923_v63, %v3863_v26  ;;  %v1305_v35 = vsel %vm1161_vm0, %v1234_v30, 0.0  ;;  %v1354_v52 = vmul.f32 %v1234_v30, %v1234_v30 }
 0x226   :  { %2307 = vrsqrt.f32 %v4012_v45  ;;  %v1306_v59 = vadd.f32 %v1305_v35, %v3850_v33  ;;  %v1482_v44 = vmul.f32 %v4022_v53, %v4022_v53  ;;  %v1357_v35 = vmul.f32 %v3868_v57, %v3868_v57 }
 0x227   :  { %v1001_v15 = vadd.f32 %v1000_v47, %v924_v17  ;;  %v1425_v58 = vsel %vm1161_vm0, %v1354_v52, 0.0  ;;  %vm1567_vm2 = vweird.f32 %v4012_v45 }
 0x228   :  { %1307 = vadd.xlane.f32.xlu1 %v1306_v59  ;;  %v1426_v25 = vadd.f32 %v1425_v58, %v1353_v9 }
 0x229   :  { %v1078_v56 = vadd.f32 %v1077_v60, %v1001_v15 }
 0x22a   :  { %1427 = vadd.xlane.f32.xlu0 %v1426_v25  ;;  %v1080_v0 = vpop.f32.mrf.mxu0  ;;  %v1157_v62 = vpop.f32.mrf.mxu1 }
 0x22b   :  { %v1155_v26 = vadd.f32 %v1154_v54, %v1078_v56  ;;  %v4024_v1 = vpop.xlane.xlu1 %1251  ;;  %v1368_v61 = vpop.xlane.xlu0 %1367 }
 0x22c   :  { %v4026_v14 = vpop.eup %2307  ;;  %v1462_v22 = vmul.f32 0.0051020407, %v1368_v61  ;;  %v926_v37 = vpop.f32.mrf.mxu2  ;;  %v1236_v48 = vld [vmem:[#allocation2 + $0x118] sm:$0xff] }
 0x22d   :  { %v1003_v49 = vpop.f32.mrf.mxu3  ;;  %1198 = vst.msk [vmem:[#allocation2 + $0x128] sm:$0xff] %vm1161_vm0, %v1155_v26  ;;  %v927_v8 = vadd.f32 %v926_v37, %v3872_v28  ;;  %v1309_v21 = vsel %vm1161_vm0, %v1236_v48, 0.0  ;;  %v1356_v55 = vmul.f32 %v1236_v48, %v1236_v48  ;;  %v1562_v41 = vmul.f32 %v4026_v14, %v4012_v45 }
 0x22e   :  { %v1502_v27 = vsub.f32 %v1462_v22, %v1482_v44  ;;  %v1310_v10 = vadd.f32 %v1309_v21, %v3859_v5  ;;  %vm1568_vm1 = vweird.f32 %v4026_v14 }
 0x22f   :  { %v1004_v36 = vadd.f32 %v1003_v49, %v927_v8  ;;  %v1429_v28 = vsel %vm1161_vm0, %v1356_v55, 0.0  ;;  %v1563_v32 = vmul.f32 %v4026_v14, %v1562_v41  ;;  %vm1569_vm3 = vmor %vm1567_vm2, %vm1568_vm1 }
 0x230   :  { %v1522_v7 = vmax.f32 %v1502_v27, 0.0  ;;  %1311 = vadd.xlane.f32.xlu2 %v1310_v10  ;;  %v1430_v40 = vadd.f32 %v1429_v28, %v1355_v42 }
 0x231   :  { %v1081_v50 = vadd.f32 %v1080_v0, %v1004_v36  ;;  %v1564_v52 = vmul.f32 0.5, %v1563_v32  ;;  %v4060_v0 = vld [vmem:[%s4606_s3] sm:$0xff]  ;;  %v4070_v32 = vld [vmem:[%s4606_s3 + $0x8] sm:$0xff] }
 0x232   :  { %v1542_v20 = vadd.f32 0.001, %v1522_v7  ;;  %1431 = vadd.xlane.f32.xlu1 %v1430_v40 }
 0x233   :  { %v1158_v39 = vadd.f32 %v1157_v62, %v1081_v50  ;;  %v1372_v13 = vpop.xlane.xlu1 %1371  ;;  %v1565_v15 = vsub.f32 1.5, %v1564_v52 }
 0x234   :  { %2309 = vrsqrt.f32 %v1542_v20  ;;  %v1238_v60 = vld [vmem:[#allocation2 + $0x128] sm:$0xff]  ;;  %vm1577_vm5 = vweird.f32 %v1542_v20 }
 0x235   :  { %1200 = vst.msk [vmem:[#allocation2 + $0x138] sm:$0xff] %vm1161_vm0, %v1158_v39  ;;  %v1376_v63 = vpop.xlane.xlu2 %1375  ;;  %v1313_v47 = vsel %vm1161_vm0, %v1238_v60, 0.0  ;;  %v1358_v30 = vmul.f32 %v1238_v60, %v1238_v60  ;;  %v1566_v37 = vmul.f32 %v4026_v14, %v1565_v15 }
 0x236   :  { %v1314_v17 = vadd.f32 %v1313_v47, %v3868_v57  ;;  %v1464_v44 = vmul.f32 0.0051020407, %v1376_v63 }
 0x237   :  { %v1433_v59 = vsel %vm1161_vm0, %v1358_v30, 0.0  ;;  %v1570_v27 = vsel %vm1569_vm3, %v4026_v14, %v1566_v37  ;;  %v4076_v30 = vmul.f32 0.0051020407, %v4024_v1 }
 0x238   :  { %1315 = vadd.xlane.f32.xlu0 %v1314_v17  ;;  %v1434_v54 = vadd.f32 %v1433_v59, %v1357_v35  ;;  %v1781_v36 = vmul.f32 %v4060_v0, %v1570_v27  ;;  %v1463_v35 = vmul.f32 0.0051020407, %v1372_v13 }
 0x23a   :  { %v2310_v9 = vpop.eup %2309  ;;  %1435 = vadd.xlane.f32.xlu2 %v1434_v54  ;;  %v1801_v45 = vmul.f32 %v1781_v36, %v4001_v46  ;;  %v1483_v54 = vmul.f32 %v4076_v30, %v4076_v30 }
 0x23b   :  { %v1572_v58 = vmul.f32 %v2310_v9, %v1542_v20  ;;  %v1256_v25 = vpop.xlane.xlu1 %1255  ;;  %vm1578_vm4 = vweird.f32 %v2310_v9 }
 0x23c   :  { %v4049_v56 = vmul.f32 0.0051020407, %v1256_v25  ;;  %vm1579_vm6 = vmor %vm1577_vm5, %vm1578_vm4 }
 0x23d   :  { %v1573_v26 = vmul.f32 %v2310_v9, %v1572_v58  ;;  %v1260_v61 = vpop.xlane.xlu2 %1259  ;;  %v1380_v21 = vpop.xlane.xlu0 %1379 }
 0x23e   :  { %v1484_v22 = vmul.f32 %v4049_v56, %v4049_v56 }
 0x23f   :  { %v1574_v48 = vmul.f32 0.5, %v1573_v26 }
 0x240   :  { %v1504_v49 = vsub.f32 %v1464_v44, %v1484_v22  ;;  %v4089_v22 = vld [vmem:[%s4606_s3 + $0x18] sm:$0xff] }
 0x241   :  { %v1575_v55 = vsub.f32 1.5, %v1574_v48 }
 0x242   :  { %v1524_v8 = vmax.f32 %v1504_v49, 0.0 }
 0x243   :  { %v1576_v42 = vmul.f32 %v2310_v9, %v1575_v55 }
 0x244   :  { %v1544_v10 = vadd.f32 0.001, %v1524_v8 }
 0x245   :  { %v1264_v41 = vpop.xlane.xlu2 %1263  ;;  %v1580_v40 = vsel %vm1579_vm6, %v2310_v9, %v1576_v42  ;;  %v1503_v9 = vsub.f32 %v1463_v35, %v1483_v54  ;;  %v1384_v13 = vpop.xlane.xlu1 %1383  ;;  %v1240_v54 = vld [vmem:[#allocation2 + $0x138] sm:$0xff] }
 0x246   :  { %2311 = vrsqrt.f32 %v1544_v10  ;;  %v1782_v63 = vmul.f32 %v4070_v32, %v1580_v40  ;;  %vm1597_vm8 = vweird.f32 %v1544_v10  ;;  %v4084_v44 = vmul.f32 0.0051020407, %v1264_v41 }
 0x247   :  { %v1523_v26 = vmax.f32 %v1503_v9, 0.0  ;;  %v1466_v42 = vmul.f32 0.0051020407, %v1384_v13 }
 0x248   :  { %v1802_v15 = vmul.f32 %v1782_v63, %v4022_v53  ;;  %v4091_v53 = vmul.f32 0.0051020407, %v1260_v61  ;;  %v1486_v55 = vmul.f32 %v4084_v44, %v4084_v44 }
 0x249   :  { %v4093_v27 = vadd.f32 0.001, %v1523_v26 }
 0x24a   :  { %v1485_v41 = vmul.f32 %v4091_v53, %v4091_v53  ;;  %v1506_v61 = vsub.f32 %v1466_v42, %v1486_v55 }
 0x24b   :  { %v1268_v7 = vpop.xlane.xlu0 %1267  ;;  %1841 = vrot.lane.b32.xlu1 %v1801_v45, %s2395_s25  ;;  %v1465_v45 = vmul.f32 0.0051020407, %v1380_v21  ;;  %vm1587_vm1 = vweird.f32 %v4093_v27 }
 0x24c   :  { %v2312_v62 = vpop.eup %2311  ;;  %v4065_v14 = vmul.f32 0.0051020407, %v1268_v7  ;;  %1923 = vperm.xlu0 %2297, %v1781_v36  }
 0x24d   :  { %v1592_v28 = vmul.f32 %v2312_v62, %v1544_v10  ;;  %v1388_v50 = vpop.xlane.xlu2 %1387  ;;  %vm1598_vm7 = vweird.f32 %v2312_v62 }
 0x24e   :  { %v1487_v46 = vmul.f32 %v4065_v14, %v4065_v14  ;;  %v1467_v20 = vmul.f32 0.0051020407, %v1388_v50  ;;  %vm1599_vm9 = vmor %vm1597_vm8, %vm1598_vm7  ;;  %v1505_v50 = vsub.f32 %v1465_v45, %v1485_v41 }
 0x24f   :  { %v1593_v39 = vmul.f32 %v2312_v62, %v1592_v28 }
 0x250   :  { %v1507_v60 = vsub.f32 %v1467_v20, %v1487_v46 }
 0x251   :  { %v1594_v47 = vmul.f32 0.5, %v1593_v39 }
 0x252   :  { %v1527_v17 = vmax.f32 %v1507_v60, 0.0  ;;  %1928 = vperm.xlu2 %2298, %v1782_v63   ;;  %v1526_v63 = vmax.f32 %v1506_v61, 0.0 }
 0x253   :  { %v1595_v59 = vsub.f32 1.5, %v1594_v47 }
 0x254   :  { %v1547_v52 = vadd.f32 0.001, %v1527_v17  ;;  %v1525_v17 = vmax.f32 %v1505_v50, 0.0  ;;  %v4109_v9 = vadd.f32 0.001, %v1526_v63 }
 0x255   :  { %v1596_v58 = vmul.f32 %v2312_v62, %v1595_v59  ;;  %v4082_v25 = vpop.xlane.xlu0 %1391 }
 0x256   :  { %2313 = vrsqrt.f32 %v1547_v52  ;;  %vm1627_vm11 = vweird.f32 %v1547_v52  ;;  %v4117_v13 = vadd.f32 0.001, %v1525_v17  ;;  %vm1617_vm6 = vweird.f32 %v4109_v9 }
 0x257   :  { %v1600_v37 = vsel %vm1599_vm9, %v2312_v62, %v1596_v58  ;;  %2315 = vrsqrt.f32 %v4093_v27  ;;  %v1272_v62 = vpop.xlane.xlu1 %1271 }
 0x258   :  { %v1784_v10 = vmul.f32 %v4089_v22, %v1600_v37  ;;  %vm1607_vm8 = vweird.f32 %v4117_v13 }
 0x25a   :  { %1843 = vrot.lane.b32.xlu2 %v1802_v15, %s2395_s25  ;;  %v1804_v60 = vmul.f32 %v1784_v10, %v4049_v56 }
 0x25b   :  { %v1276_v48 = vpop.xlane.xlu2 %1275 }
 0x25c   :  { %v2314_v1 = vpop.eup %2313  ;;  %v4111_v15 = vmul.f32 0.0051020407, %v1276_v48  ;;  %v1239_v48 = vld [vmem:[#allocation2 + $0x130] sm:$0xff] }
 0x25d   :  { %v1622_v49 = vmul.f32 %v2314_v1, %v1547_v52  ;;  %vm1628_vm10 = vweird.f32 %v2314_v1  ;;  %v4106_v35 = vpop.eup %2315  ;;  %v1360_v52 = vmul.f32 %v1240_v54, %v1240_v54  ;;  %v1359_v61 = vmul.f32 %v1239_v48, %v1239_v48 }
 0x25e   :  { %vm1629_vm12 = vmor %vm1627_vm11, %vm1628_vm10  ;;  %v1582_v56 = vmul.f32 %v4106_v35, %v4093_v27  ;;  %vm1588_vm14 = vweird.f32 %v4106_v35 }
 0x25f   :  { %v1623_v8 = vmul.f32 %v2314_v1, %v1622_v49  ;;  %v1396_v58 = vpop.xlane.xlu1 %1395  ;;  %v4122_v49 = vld [vmem:[%s4606_s3 + $0x30] sm:$0xff]  ;;  %v1437_v42 = vsel %vm1161_vm0, %v1360_v52, 0.0  ;;  %vm1589_vm3 = vmor %vm1587_vm1, %vm1588_vm14 }
 0x260   :  { %v1469_v55 = vmul.f32 0.0051020407, %v1396_v58 }
 0x261   :  { %v1624_v36 = vmul.f32 0.5, %v1623_v8  ;;  %v4124_v8 = vmul.f32 0.0051020407, %v1272_v62 }
 0x262   :  { %1938 = vperm.xlu2 %2298, %v1784_v10   ;;  %v1489_v10 = vmul.f32 %v4111_v15, %v4111_v15 }
 0x263   :  { %v1280_v7 = vpop.xlane.xlu0 %1279  ;;  %v1625_v40 = vsub.f32 1.5, %v1624_v36  ;;  %v1317_v36 = vsel %vm1161_vm0, %v1240_v54, 0.0  ;;  %v1488_v45 = vmul.f32 %v4124_v8, %v4124_v8 }
 0x264   :  { %v4101_v28 = vmul.f32 0.0051020407, %v1280_v7  ;;  %v1468_v7 = vmul.f32 0.0051020407, %v4082_v25 }
 0x265   :  { %v1400_v46 = vpop.xlane.xlu2 %1399  ;;  %v1626_v21 = vmul.f32 %v2314_v1, %v1625_v40  ;;  %v1509_v40 = vsub.f32 %v1469_v55, %v1489_v10 }
 0x266   :  { %v1490_v20 = vmul.f32 %v4101_v28, %v4101_v28  ;;  %v1470_v39 = vmul.f32 0.0051020407, %v1400_v46 }
 0x267   :  { %v1630_v37 = vsel %vm1629_vm12, %v2314_v1, %v1626_v21  ;;  %v1583_v1 = vmul.f32 %v4106_v35, %v1582_v56  ;;  %v1508_v21 = vsub.f32 %v1468_v7, %v1488_v45  ;;  %v1529_v54 = vmax.f32 %v1509_v40, 0.0  ;;  %v4161_v40 = vld [vmem:[%s4606_s3 + $0x48] sm:$0xff] }
 0x268   :  { %v1510_v47 = vsub.f32 %v1470_v39, %v1490_v20  ;;  %v1787_v41 = vmul.f32 %v4122_v49, %v1630_v37  ;;  %v1318_v20 = vadd.f32 %v1317_v36, %v1239_v48  ;;  %v1438_v39 = vadd.f32 %v1437_v42, %v1359_v61 }
 0x269   :  { %v1528_v10 = vmax.f32 %v1508_v21, 0.0  ;;  %v4152_v42 = vadd.f32 0.001, %v1529_v54 }
 0x26a   :  { %v1530_v59 = vmax.f32 %v1510_v47, 0.0  ;;  %1847 = vrot.lane.b32.xlu2 %v1804_v60, %s2395_s25  ;;  %v1584_v60 = vmul.f32 0.5, %v1583_v1  ;;  %v1807_v58 = vmul.f32 %v1787_v41, %v4065_v14 }
 0x26b   :  { %v1284_v46 = vpop.xlane.xlu1 %1283  ;;  %vm1647_vm14 = vweird.f32 %v4152_v42 }
 0x26c   :  { %v4113_v26 = vadd.f32 0.001, %v1530_v59  ;;  %v1585_v56 = vsub.f32 1.5, %v1584_v60  ;;  %v4166_v60 = vadd.f32 0.001, %v1528_v10 }
 0x26d   :  { %v1404_v62 = vpop.xlane.xlu0 %1403 }
 0x26e   :  { %2317 = vrsqrt.f32 %v4113_v26  ;;  %vm1657_vm15 = vweird.f32 %v4113_v26 }
 0x26f   :  { %2319 = vrsqrt.f32 %v4109_v9 }
 0x270   :  { %2321 = vrsqrt.f32 %v4117_v13 }
 0x271   :  { %2323 = vrsqrt.f32 %v4152_v42 }
 0x272   :  { %1953 = vperm.xlu2 %2298, %v1787_v41   ;;  %2325 = vrsqrt.f32 %v4166_v60 }
 0x273   :  { %v1288_v47 = vpop.xlane.xlu2 %1287 }
 0x274   :  { %v2318_v50 = vpop.eup %2317  ;;  %v4149_v1 = vmul.f32 0.0051020407, %v1288_v47 }
 0x275   :  { %v1652_v63 = vmul.f32 %v2318_v50, %v4113_v26  ;;  %v4139_v17 = vpop.eup %2319  ;;  %1319 = vadd.xlane.f32.xlu1 %v1318_v20  ;;  %vm1658_vm13 = vweird.f32 %v2318_v50  ;;  %v1408_v14 = vpop.xlane.xlu1 %1407  ;;  %v1586_v20 = vmul.f32 %v4106_v35, %v1585_v56 }
 0x276   :  { %1439 = vadd.xlane.f32.xlu0 %v1438_v39  ;;  %v4141_v59 = vpop.eup %2321  ;;  %v1612_v37 = vmul.f32 %v4139_v17, %v4109_v9  ;;  %vm1659_vm2 = vmor %vm1657_vm15, %vm1658_vm13  ;;  %v1492_v26 = vmul.f32 %v4149_v1, %v4149_v1  ;;  %v1472_v47 = vmul.f32 0.0051020407, %v1408_v14  ;;  %v1471_v14 = vmul.f32 0.0051020407, %v1404_v62 }
 0x277   :  { %v1653_v25 = vmul.f32 %v2318_v50, %v1652_v63  ;;  %v1602_v48 = vmul.f32 %v4141_v59, %v4117_v13  ;;  %vm1618_vm4 = vweird.f32 %v4139_v17  ;;  %vm1608_vm5 = vweird.f32 %v4141_v59 }
 0x278   :  { %v1613_v45 = vmul.f32 %v4139_v17, %v1612_v37  ;;  %v1590_v37 = vsel %vm1589_vm3, %v4106_v35, %v1586_v20  ;;  %vm1619_vm7 = vmor %vm1617_vm6, %vm1618_vm4 }
 0x279   :  { %v1654_v52 = vmul.f32 0.5, %v1653_v25  ;;  %v1603_v39 = vmul.f32 %v4141_v59, %v1602_v48  ;;  %v1512_v48 = vsub.f32 %v1472_v47, %v1492_v26  ;;  %vm4224_vm9 = vmor %vm1607_vm8, %vm1608_vm5 }
 0x27a   :  { %1853 = vrot.lane.b32.xlu2 %v1807_v58, %s2395_s25  ;;  %v1614_v54 = vmul.f32 0.5, %v1613_v45  ;;  %v4177_v58 = vmul.f32 0.0051020407, %v1284_v46 }
 0x27b   :  { %v1655_v55 = vsub.f32 1.5, %v1654_v52  ;;  %v1292_v36 = vpop.xlane.xlu0 %1291  ;;  %v4183_v52 = vld [vmem:[%s4606_s3 + $0x10] sm:$0xff]  ;;  %v1532_v20 = vmax.f32 %v1512_v48, 0.0 }
 0x27c   :  { %v4154_v41 = vmul.f32 0.0051020407, %v1292_v36  ;;  %v1615_v36 = vsub.f32 1.5, %v1614_v54  ;;  %v1491_v46 = vmul.f32 %v4177_v58, %v4177_v58 }
 0x27d   :  { %v1412_v7 = vpop.xlane.xlu2 %1411  ;;  %v1656_v61 = vmul.f32 %v2318_v50, %v1655_v55  ;;  %v1783_v55 = vmul.f32 %v4183_v52, %v1590_v37 }
 0x27e   :  { %v1493_v63 = vmul.f32 %v4154_v41, %v4154_v41  ;;  %v1473_v21 = vmul.f32 0.0051020407, %v1412_v7  ;;  %v4191_v7 = vpop.eup %2323  ;;  %v1616_v47 = vmul.f32 %v4139_v17, %v1615_v36 }
 0x27f   :  { %v1660_v25 = vsel %vm1659_vm2, %v2318_v50, %v1656_v61  ;;  %v1604_v50 = vmul.f32 0.5, %v1603_v39  ;;  %v1803_v39 = vmul.f32 %v1783_v55, %v4076_v30  ;;  %v1642_v62 = vmul.f32 %v4191_v7, %v4152_v42 }
 0x280   :  { %v1790_v27 = vmul.f32 %v4161_v40, %v1660_v25  ;;  %v1513_v56 = vsub.f32 %v1473_v21, %v1493_v63  ;;  %v4194_v63 = vpop.eup %2325  ;;  %v1511_v21 = vsub.f32 %v1471_v14, %v1491_v46  ;;  %v1620_v9 = vsel %vm1619_vm7, %v4139_v17, %v1616_v47  ;;  %v4239_v47 = vld [vmem:[%s4606_s3 + $0x20] sm:$0xff] }
 0x281   :  { %v1605_v61 = vsub.f32 1.5, %v1604_v50  ;;  %v1632_v30 = vmul.f32 %v4194_v63, %v4166_v60  ;;  %v4217_v50 = vld [vmem:[%s4606_s3 + $0x28] sm:$0xff]  ;;  %v1643_v48 = vmul.f32 %v4191_v7, %v1642_v62  ;;  %vm1648_vm13 = vweird.f32 %v4191_v7 }
 0x282   :  { %1968 = vperm.xlu2 %2298, %v1790_v27   ;;  %v1533_v10 = vmax.f32 %v1513_v56, 0.0  ;;  %v1810_v26 = vmul.f32 %v1790_v27, %v4101_v28  ;;  %v4208_v28 = vadd.f32 0.001, %v1532_v20  ;;  %vm1649_vm15 = vmor %vm1647_vm14, %vm1648_vm13  ;;  %vm1638_vm1 = vweird.f32 %v4194_v63 }
 0x283   :  { %v1296_v35 = vpop.xlane.xlu1 %1295  ;;  %v1606_v54 = vmul.f32 %v4141_v59, %v1605_v61  ;;  %v1633_v13 = vmul.f32 %v4194_v63, %v1632_v30  ;;  %v1786_v61 = vmul.f32 %v4217_v50, %v1620_v9  ;;  %v1644_v62 = vmul.f32 0.5, %v1643_v48 }
 0x284   :  { %v4189_v45 = vadd.f32 0.001, %v1533_v10  ;;  %v1531_v10 = vmax.f32 %v1511_v21, 0.0  ;;  %vm1637_vm2 = vweird.f32 %v4166_v60  ;;  %v4302_v60 = vld [vmem:[%s4606_s3 + $0x38] sm:$0xff]  ;;  %vm1677_vm5 = vweird.f32 %v4208_v28 }
 0x285   :  { %v1416_v25 = vpop.xlane.xlu0 %1415  ;;  %v1610_v17 = vsel %vm4224_vm9, %v4141_v59, %v1606_v54  ;;  %v1634_v59 = vmul.f32 0.5, %v1633_v13  ;;  %v1645_v6 = vsub.f32 1.5, %v1644_v62  ;;  %vm1639_vm3 = vmor %vm1637_vm2, %vm1638_vm1 }
 0x286   :  { %2327 = vrsqrt.f32 %v4189_v45  ;;  %v4241_v21 = vadd.f32 0.001, %v1531_v10  ;;  %v1785_v54 = vmul.f32 %v4239_v47, %v1610_v17  ;;  %v1474_v48 = vmul.f32 0.0051020407, %v1416_v25 }
 0x287   :  { %2329 = vrsqrt.f32 %v4208_v28  ;;  %vm1687_vm11 = vweird.f32 %v4189_v45  ;;  %v1635_v62 = vsub.f32 1.5, %v1634_v59 }
 0x288   :  { %2331 = vrsqrt.f32 %v4241_v21 }
 0x289   :  { %v1636_v42 = vmul.f32 %v4194_v63, %v1635_v62 }
 0x28a   :  { %1845 = vrot.lane.b32.xlu0 %v1803_v39, %s2395_s25  ;;  %1859 = vrot.lane.b32.xlu2 %v1810_v26, %s2395_s25 }
 0x28b   :  { %v1300_v27 = vpop.xlane.xlu2 %1299 }
 0x28c   :  { %v4211_v56 = vmul.f32 0.0051020407, %v1300_v27  ;;  %v2328_v37 = vpop.eup %2327 }
 0x28d   :  { %v1420_v36 = vpop.xlane.xlu1 %1419  ;;  %v1682_v46 = vmul.f32 %v2328_v37, %v4189_v45  ;;  %vm1688_vm10 = vweird.f32 %v2328_v37 }
 0x28e   :  { %1933 = vperm.xlu1 %2299, %v1783_v55   ;;  %v1495_v39 = vmul.f32 %v4211_v56, %v4211_v56  ;;  %v1475_v26 = vmul.f32 0.0051020407, %v1420_v36  ;;  %v4243_v55 = vmul.f32 0.0051020407, %v1296_v35  ;;  %v4248_v36 = vpop.eup %2329  ;;  %vm1689_vm12 = vmor %vm1687_vm11, %vm1688_vm10  ;;  %vm1667_vm11 = vweird.f32 %v4241_v21 }
 0x28f   :  { %v1683_v20 = vmul.f32 %v2328_v37, %v1682_v46  ;;  %v1672_v25 = vmul.f32 %v4248_v36, %v4208_v28  ;;  %vm1678_vm4 = vweird.f32 %v4248_v36 }
 0x290   :  { %v1515_v46 = vsub.f32 %v1475_v26, %v1495_v39  ;;  %v1494_v35 = vmul.f32 %v4243_v55, %v4243_v55  ;;  %v4259_v39 = vld [vmem:[%s4606_s3 + $0x60] sm:$0xff]  ;;  %v1806_v26 = vmul.f32 %v1786_v61, %v4084_v44  ;;  %v4269_v44 = vpop.eup %2331  ;;  %vm4327_vm6 = vmor %vm1677_vm5, %vm1678_vm4 }
 0x291   :  { %v1684_v30 = vmul.f32 0.5, %v1683_v20  ;;  %vm1668_vm9 = vweird.f32 %v4269_v44 }
 0x292   :  { %1948 = vperm.xlu0 %2297, %v1786_v61   ;;  %v1535_v45 = vmax.f32 %v1515_v46, 0.0  ;;  %v1514_v33 = vsub.f32 %v1474_v48, %v1494_v35  ;;  %v1673_v61 = vmul.f32 %v4248_v36, %v1672_v25  ;;  %v1805_v46 = vmul.f32 %v1785_v54, %v4091_v53  ;;  %v4282_v48 = vld [vmem:[%s4606_s3 + $0x40] sm:$0xff] }
 0x293   :  { %v1304_v27 = vpop.xlane.xlu0 %1303  ;;  %v1685_v9 = vsub.f32 1.5, %v1684_v30 }
 0x294   :  { %v4246_v14 = vmul.f32 0.0051020407, %v1304_v27  ;;  %v4273_v59 = vadd.f32 0.001, %v1535_v45 }
 0x295   :  { %v1424_v10 = vpop.xlane.xlu2 %1423  ;;  %v1686_v20 = vmul.f32 %v2328_v37, %v1685_v9 }
 0x296   :  { %v1496_v13 = vmul.f32 %v4246_v14, %v4246_v14  ;;  %v1476_v17 = vmul.f32 0.0051020407, %v1424_v10  ;;  %1943 = vperm.xlu1 %2299, %v1785_v54   ;;  %v1646_v10 = vmul.f32 %v4191_v7, %v1645_v6  ;;  %v1534_v6 = vmax.f32 %v1514_v33, 0.0 }
 0x297   :  { %v1690_v27 = vsel %vm1689_vm12, %v2328_v37, %v1686_v20  ;;  %v1674_v33 = vmul.f32 0.5, %v1673_v61  ;;  %v1640_v20 = vsel %vm1639_vm3, %v4194_v63, %v1636_v42  ;;  %vm1669_vm12 = vmor %vm1667_vm11, %vm1668_vm9  ;;  %vm1707_vm14 = vweird.f32 %v4273_v59 }
 0x298   :  { %v1516_v30 = vsub.f32 %v1476_v17, %v1496_v13  ;;  %v1793_v9 = vmul.f32 %v4259_v39, %v1690_v27  ;;  %v1650_v35 = vsel %vm1649_vm15, %v4191_v7, %v1646_v10  ;;  %v1662_v13 = vmul.f32 %v4269_v44, %v4241_v21 }
 0x299   :  { %v1789_v53 = vmul.f32 %v4282_v48, %v1650_v35  ;;  %v4293_v7 = vadd.f32 0.001, %v1534_v6 }
 0x29a   :  { %v1536_v5 = vmax.f32 %v1516_v30, 0.0  ;;  %1851 = vrot.lane.b32.xlu0 %v1806_v26, %s2395_s25  ;;  %1983 = vperm.xlu2 %2298, %v1793_v9   ;;  %v1813_v17 = vmul.f32 %v1793_v9, %v4154_v41  ;;  %v1663_v26 = vmul.f32 %v4269_v44, %v1662_v13  ;;  %v1675_v30 = vsub.f32 1.5, %v1674_v33 }
 0x29b   :  { %v1788_v41 = vmul.f32 %v4302_v60, %v1640_v20  ;;  %vm1697_vm2 = vweird.f32 %v4293_v7 }
 0x29c   :  { %v4275_v37 = vadd.f32 0.001, %v1536_v5  ;;  %v1308_v5 = vpop.xlane.xlu1 %1307  ;;  %v1676_v33 = vmul.f32 %v4248_v36, %v1675_v30 }
 0x29d   :  { %v4295_v54 = vmul.f32 0.0051020407, %v1308_v5  ;;  %v1428_v62 = vpop.xlane.xlu0 %1427  ;;  %v1809_v5 = vmul.f32 %v1789_v53, %v4111_v15 }
 0x29e   :  { %2333 = vrsqrt.f32 %v4275_v37  ;;  %1849 = vrot.lane.b32.xlu1 %v1805_v46, %s2395_s25  ;;  %v1477_v10 = vmul.f32 0.0051020407, %v1428_v62  ;;  %v1664_v46 = vmul.f32 0.5, %v1663_v26  ;;  %vm1717_vm8 = vweird.f32 %v4275_v37 }
 0x29f   :  { %2335 = vrsqrt.f32 %v4273_v59  ;;  %v1497_v9 = vmul.f32 %v4295_v54, %v4295_v54  ;;  %v1680_v28 = vsel %vm4327_vm6, %v4248_v36, %v1676_v33 }
 0x2a0   :  { %2337 = vrsqrt.f32 %v4293_v7  ;;  %v1665_v26 = vsub.f32 1.5, %v1664_v46 }
 0x2a1   :  { %v1517_v62 = vsub.f32 %v1477_v10, %v1497_v9 }
 0x2a2   :  { %1963 = vperm.xlu0 %2297, %v1789_v53   ;;  %1865 = vrot.lane.b32.xlu2 %v1813_v17, %s2395_s25  ;;  %v1808_v53 = vmul.f32 %v1788_v41, %v4124_v8 }
 0x2a3   :  { %v1312_v25 = vpop.xlane.xlu2 %1311  ;;  %v1537_v46 = vmax.f32 %v1517_v62, 0.0 }
 0x2a4   :  { %v2334_v45 = vpop.eup %2333  ;;  %v4306_v27 = vmul.f32 0.0051020407, %v1312_v25 }
 0x2a5   :  { %v1712_v63 = vmul.f32 %v2334_v45, %v4275_v37  ;;  %v4313_v61 = vpop.eup %2335  ;;  %v1432_v35 = vpop.xlane.xlu1 %1431  ;;  %vm1718_vm7 = vweird.f32 %v2334_v45 }
 0x2a6   :  { %v1498_v6 = vmul.f32 %v4306_v27, %v4306_v27  ;;  %v1478_v13 = vmul.f32 0.0051020407, %v1432_v35  ;;  %1958 = vperm.xlu1 %2299, %v1788_v41   ;;  %v1702_v17 = vmul.f32 %v4313_v61, %v4273_v59  ;;  %v4344_v41 = vld [vmem:[%s4606_s3 + $0x58] sm:$0xff]  ;;  %vm1719_vm10 = vmor %vm1717_vm8, %vm1718_vm7  ;;  %vm1708_vm13 = vweird.f32 %v4313_v61 }
 0x2a7   :  { %v1713_v42 = vmul.f32 %v2334_v45, %v1712_v63  ;;  %v4324_v63 = vpop.eup %2337  ;;  %vm1709_vm15 = vmor %vm1707_vm14, %vm1708_vm13 }
 0x2a8   :  { %v1518_v25 = vsub.f32 %v1478_v13, %v1498_v6  ;;  %v1703_v10 = vmul.f32 %v4313_v61, %v1702_v17  ;;  %v1692_v36 = vmul.f32 %v4324_v63, %v4293_v7  ;;  %vm1698_vm1 = vweird.f32 %v4324_v63 }
 0x2a9   :  { %v1714_v20 = vmul.f32 0.5, %v1713_v42  ;;  %v4349_v42 = vld [vmem:[%s4606_s3 + $0x78] sm:$0xff]  ;;  %vm1699_vm3 = vmor %vm1697_vm2, %vm1698_vm1 }
 0x2aa   :  { %1857 = vrot.lane.b32.xlu0 %v1809_v5, %s2395_s25  ;;  %v1538_v23 = vmax.f32 %v1518_v25, 0.0  ;;  %v1666_v5 = vmul.f32 %v4269_v44, %v1665_v26  ;;  %v1704_v25 = vmul.f32 0.5, %v1703_v10  ;;  %v1693_v26 = vmul.f32 %v4324_v63, %v1692_v36 }
 0x2ab   :  { %v1715_v35 = vsub.f32 1.5, %v1714_v20  ;;  %v1316_v15 = vpop.xlane.xlu0 %1315  ;;  %v1792_v20 = vmul.f32 %v4344_v41, %v1680_v28 }
 0x2ac   :  { %v4332_v9 = vmul.f32 0.0051020407, %v1316_v15  ;;  %v4339_v6 = vadd.f32 0.001, %v1538_v23  ;;  %v1670_v21 = vsel %vm1669_vm12, %v4269_v44, %v1666_v5  ;;  %v1705_v30 = vsub.f32 1.5, %v1704_v25 }
 0x2ad   :  { %v1436_v8 = vpop.xlane.xlu2 %1435  ;;  %v1716_v37 = vmul.f32 %v2334_v45, %v1715_v35  ;;  %v4362_v35 = vadd.f32 0.001, %v1537_v46  ;;  %v1812_v44 = vmul.f32 %v1792_v20, %v4149_v1 }
 0x2ae   :  { %v1499_v13 = vmul.f32 %v4332_v9, %v4332_v9  ;;  %v1479_v23 = vmul.f32 0.0051020407, %v1436_v8  ;;  %1855 = vrot.lane.b32.xlu1 %v1808_v53, %s2395_s25  ;;  %2339 = vrsqrt.f32 %v4339_v6  ;;  %v1694_v8 = vmul.f32 0.5, %v1693_v26  ;;  %v4397_v26 = vld [vmem:[%s4606_s3 + $0x70] sm:$0xff] }
 0x2af   :  { %v1720_v33 = vsel %vm1719_vm10, %v2334_v45, %v1716_v37  ;;  %v4371_v45 = vld [vmem:[%s4606_s3 + $0x50] sm:$0xff]  ;;  %2341 = vrsqrt.f32 %v4362_v35  ;;  %vm1737_vm8 = vweird.f32 %v4339_v6  ;;  %vm1727_vm11 = vweird.f32 %v4362_v35 }
 0x2b0   :  { %v1519_v17 = vsub.f32 %v1479_v23, %v1499_v13  ;;  %v1796_v62 = vmul.f32 %v4349_v42, %v1720_v33  ;;  %v1791_v10 = vmul.f32 %v4371_v45, %v1670_v21  ;;  %v1706_v13 = vmul.f32 %v4313_v61, %v1705_v30 }
 0x2b1   :  { %v1695_v23 = vsub.f32 1.5, %v1694_v8  ;;  %v2396_v33 = vmov 1  }
 0x2b2   :  { %v1539_v15 = vmax.f32 %v1519_v17, 0.0  ;;  %1978 = vperm.xlu0 %2297, %v1792_v20   ;;  %1998 = vperm.xlu2 %2298, %v1796_v62   ;;  %v1816_v37 = vmul.f32 %v1796_v62, %v4246_v14  ;;  %v1811_v62 = vmul.f32 %v1791_v10, %v4177_v58  ;;  %v1710_v25 = vsel %vm1709_vm15, %v4313_v61, %v1706_v13 }
 0x2b3   :  { %v1795_v61 = vmul.f32 %v4397_v26, %v1710_v25 }
 0x2b4   :  { %v1559_v53 = vadd.f32 0.001, %v1539_v15  ;;  %v4377_v46 = vpop.eup %2339  ;;  %v1696_v15 = vmul.f32 %v4324_v63, %v1695_v23 }
 0x2b5   :  { %v4374_v28 = vpop.permute.xlu2 %1928  ;;  %v1732_v36 = vmul.f32 %v4377_v46, %v4339_v6  ;;  %v4387_v5 = vpop.eup %2341  ;;  %vm1738_vm7 = vweird.f32 %v4377_v46 }
 0x2b6   :  { %2343 = vrsqrt.f32 %v1559_v53  ;;  %1973 = vperm.xlu1 %2299, %v1791_v10   ;;  %v1722_v59 = vmul.f32 %v4387_v5, %v4362_v35  ;;  %vm1747_vm5 = vweird.f32 %v1559_v53  ;;  %vm1739_vm9 = vmor %vm1737_vm8, %vm1738_vm7  ;;  %vm1728_vm10 = vweird.f32 %v4387_v5 }
 0x2b7   :  { %v1733_v14 = vmul.f32 %v4377_v46, %v1732_v36  ;;  %vm1729_vm12 = vmor %vm1727_vm11, %vm1728_vm10 }
 0x2b8   :  { %v1723_v8 = vmul.f32 %v4387_v5, %v1722_v59  ;;  %v4792_v59 = vmov 0  }
 0x2b9   :  { %v1734_v30 = vmul.f32 0.5, %v1733_v14  ;;  %v4420_v14 = vld [vmem:[%s4606_s3 + $0x90] sm:$0xff] }
 0x2ba   :  { %1863 = vrot.lane.b32.xlu0 %v1812_v44, %s2395_s25  ;;  %1871 = vrot.lane.b32.xlu2 %v1816_v37, %s2395_s25  ;;  %v1700_v44 = vsel %vm1699_vm3, %v4324_v63, %v1696_v15  ;;  %v4412_v37 = vld [vmem:[%s4606_s3 + $0x68] sm:$0xff]  ;;  %v1724_v63 = vmul.f32 0.5, %v1723_v8 }
 0x2bb   :  { %2301 = vset.pattern.permute.xlu2 %v2396_v33  ;;  %v1735_v7 = vsub.f32 1.5, %v1734_v30  ;;  %v1794_v13 = vmul.f32 %v4412_v37, %v1700_v44 }
 0x2bc   :  { %v2344_v1 = vpop.eup %2343  ;;  %v1725_v25 = vsub.f32 1.5, %v1724_v63 }
 0x2bd   :  { %v1742_v17 = vmul.f32 %v2344_v1, %v1559_v53  ;;  %v1844_v20 = vpop.permute.xlu2 %1843  ;;  %vm1748_vm4 = vweird.f32 %v2344_v1  ;;  %v1736_v53 = vmul.f32 %v4377_v46, %v1735_v7 }
 0x2be   :  { %1861 = vrot.lane.b32.xlu1 %v1811_v62, %s2395_s25  ;;  %v1902_v58 = vsub.f32 %v4070_v32, %v1844_v20  ;;  %vm1749_vm6 = vmor %vm1747_vm5, %vm1748_vm4  ;;  %v1815_v20 = vmul.f32 %v1795_v61, %v4211_v56  ;;  %v4461_v7 = vpop.permute.xlu0 %1923 }
 0x2bf   :  { %v1743_v21 = vmul.f32 %v2344_v1, %v1742_v17  ;;  %v1740_v56 = vsel %vm1739_vm9, %v4377_v46, %v1736_v53  ;;  %v4446_v46 = vld [vmem:[%s4606_s3 + $0x80] sm:$0xff] }
 0x2c1   :  { %v1744_v10 = vmul.f32 0.5, %v1743_v21  ;;  %v4434_v21 = vld [vmem:[%s4606_s3 + $0x88] sm:$0xff] }
 0x2c2   :  { %1993 = vperm.xlu0 %2297, %v1795_v61   ;;  %2068 = vperm.xlu2 %2301, %v1902_v58   ;;  %v1726_v58 = vmul.f32 %v4387_v5, %v1725_v25  ;;  %v1798_v6 = vmul.f32 %v4434_v21, %v1740_v56 }
 0x2c3   :  { %v1745_v36 = vsub.f32 1.5, %v1744_v10 }
 0x2c5   :  { %v4414_v32 = vpop.permute.xlu2 %1938  ;;  %v1746_v23 = vmul.f32 %v2344_v1, %v1745_v36 }
 0x2c6   :  { %1988 = vperm.xlu1 %2299, %v1794_v13  }
 0x2c7   :  { %v1750_v17 = vsel %vm1749_vm6, %v2344_v1, %v1746_v23  ;;  %v1814_v1 = vmul.f32 %v1794_v13, %v4243_v55  ;;  %v1730_v55 = vsel %vm1729_vm12, %v4387_v5, %v1726_v58  ;;  %v1842_v5 = vpop.permute.xlu1 %1841 }
 0x2c8   :  { %v1799_v62 = vmul.f32 %v4420_v14, %v1750_v17  ;;  %v1797_v35 = vmul.f32 %v4446_v46, %v1730_v55  ;;  %v1901_v36 = vsub.f32 %v4060_v0, %v1842_v5  ;;  %v4476_v5 = vld [vmem:[%s4606_s3 + $0x98] sm:$0xff]  ;;  %s2397_s3 = smov [#allocation2]  }
 0x2ca   :  { %1869 = vrot.lane.b32.xlu0 %v1815_v20, %s2395_s25  ;;  %2303 = vset.pattern.permute.xlu2 %v4792_v59  ;;  %v1819_v61 = vmul.f32 %v1799_v62, %v4332_v9  ;;  %v1818_v9 = vmul.f32 %v1798_v6, %v4306_v27  ;;  %v1817_v44 = vmul.f32 %v1797_v35, %v4295_v54 }
 0x2cb   :  { %2013 = vperm.xlu2 %2303, %v1799_v62  }
 0x2cd   :  { %v1848_v15 = vpop.permute.xlu2 %1847 }
 0x2ce   :  { %1867 = vrot.lane.b32.xlu1 %v1814_v1, %s2395_s25  ;;  %v1904_v10 = vsub.f32 %v4089_v22, %v1848_v15 }
 0x2d2   :  { %2008 = vperm.xlu0 %2297, %v1798_v6  }
 0x2d3   :  { %1877 = vrot.lane.b32.xlu2 %v1819_v61, %s2395_s25 }
 0x2d4   :  { %2304 = vset.pattern.permute.xlu2 %v2396_v33 }
 0x2d5   :  { %v4450_v30 = vpop.permute.xlu2 %1953 }
 0x2d6   :  { %2003 = vperm.xlu1 %2299, %v1797_v35  }
 0x2da   :  { %1875 = vrot.lane.b32.xlu0 %v1818_v9, %s2395_s25 }
 0x2db   :  { %2078 = vperm.xlu2 %2304, %v1904_v10   ;;  %2300 = vset.pattern.permute.xlu0 %v2396_v33 }
 0x2dd   :  { %v1854_v8 = vpop.permute.xlu2 %1853 }
 0x2de   :  { %1873 = vrot.lane.b32.xlu1 %v1817_v44, %s2395_s25  ;;  %v1907_v27 = vsub.f32 %v4122_v49, %v1854_v8 }
 0x2df   :  { %2302 = vset.pattern.permute.xlu1 %v2396_v33 }
 0x2e2   :  { %2063 = vperm.xlu0 %2300, %v1901_v36  }
 0x2e3   :  { %2093 = vperm.xlu2 %2304, %v1907_v27  }
 0x2e5   :  { %v4464_v22 = vpop.permute.xlu2 %1968 }
 0x2e8   :  { %v1320_v13 = vpop.xlane.xlu1 %1319 }
 0x2e9   :  { %v1440_v23 = vpop.xlane.xlu0 %1439  ;;  %v1460_v63 = vmul.f32 0.0051020407, %v1320_v13 }
 0x2ea   :  { %v1480_v17 = vmul.f32 0.0051020407, %v1440_v23 }
 0x2eb   :  { %v1500_v20 = vmul.f32 %v1460_v63, %v1460_v63 }
 0x2ed   :  { %v1860_v54 = vpop.permute.xlu2 %1859  ;;  %v1520_v62 = vsub.f32 %v1480_v17, %v1500_v20 }
 0x2ee   :  { %v1910_v53 = vsub.f32 %v4161_v40, %v1860_v54 }
 0x2ef   :  { %v1540_v0 = vmax.f32 %v1520_v62, 0.0 }
 0x2f0   :  { %2108 = vperm.xlu2 %2304, %v1910_v53  }
 0x2f1   :  { %v1560_v25 = vadd.f32 0.001, %v1540_v0 }
 0x2f3   :  { %2345 = vrsqrt.f32 %v1560_v25  ;;  %vm1757_vm14 = vweird.f32 %v1560_v25 }
 0x2f5   :  { %v4467_v15 = vpop.permute.xlu2 %1983 }
 0x2f9   :  { %v2346_v49 = vpop.eup %2345 }
 0x2fa   :  { %v1752_v1 = vmul.f32 %v2346_v49, %v1560_v25  ;;  %vm1758_vm13 = vweird.f32 %v2346_v49 }
 0x2fb   :  { %vm1759_vm15 = vmor %vm1757_vm14, %vm1758_vm13 }
 0x2fc   :  { %v1846_v56 = vpop.permute.xlu0 %1845  ;;  %v1753_v58 = vmul.f32 %v2346_v49, %v1752_v1 }
 0x2fd   :  { %v1903_v6 = vsub.f32 %v4183_v52, %v1846_v56  ;;  %v1866_v61 = vpop.permute.xlu2 %1865 }
 0x2fe   :  { %v1913_v55 = vsub.f32 %v4259_v39, %v1866_v61  ;;  %v1754_v35 = vmul.f32 0.5, %v1753_v58 }
 0x2ff   :  { %2073 = vperm.xlu1 %2302, %v1903_v6  }
 0x300   :  { %2123 = vperm.xlu2 %2304, %v1913_v55   ;;  %v1755_v9 = vsub.f32 1.5, %v1754_v35  ;;  %v4471_v40 = vpop.permute.xlu1 %1933 }
 0x302   :  { %v1756_v10 = vmul.f32 %v2346_v49, %v1755_v9 }
 0x304   :  { %v4478_v8 = vpop.permute.xlu0 %1948  ;;  %v1760_v52 = vsel %vm1759_vm15, %v2346_v49, %v1756_v10  ;;  %v2348_v10 = vld [vmem:[#allocation2 + $0x38] sm:$0xff] }
 0x305   :  { %v1800_v39 = vmul.f32 %v4476_v5, %v1760_v52  ;;  %v2028_v52 = vmul.f32 %v2348_v10, %v4414_v32 }
 0x307   :  { %2305 = vset.pattern.permute.xlu1 %v4792_v59  ;;  %v1820_v23 = vmul.f32 %v1800_v39, %v1460_v63  ;;  %v2347_v63 = vld [vmem:[#allocation2 + $0x18] sm:$0xff] }
 0x308   :  { %2018 = vperm.xlu1 %2305, %v1800_v39   ;;  %v4482_v44 = vpop.permute.xlu1 %1943  ;;  %v2024_v0 = vmul.f32 %v2347_v63, %v4374_v28 }
 0x30c   :  { %v4484_v36 = vpop.permute.xlu2 %1998  ;;  %v1852_v27 = vpop.permute.xlu0 %1851 }
 0x30d   :  { %v1906_v13 = vsub.f32 %v4217_v50, %v1852_v27  ;;  %v2023_v50 = vmul.f32 %v4374_v28, %v4787_v3 }
 0x30f   :  { %2088 = vperm.xlu0 %2300, %v1906_v13  }
 0x310   :  { %1879 = vrot.lane.b32.xlu1 %v1820_v23, %s2395_s25  ;;  %v1850_v17 = vpop.permute.xlu1 %1849  ;;  %v2349_v23 = vld [vmem:[#allocation2 + $0x68] sm:$0xff]  ;;  %s2245_s25 = sshll.u32 %s2397_s3, 4  ;;  %s2246_s25 = int_to_ptr.vmem [resolvable:$true] %s2245_s25 }
 0x311   :  { %2306 = vset.pattern.permute.xlu1 %v2396_v33  ;;  %v1905_v62 = vsub.f32 %v4239_v47, %v1850_v17 }
 0x314   :  { %v1872_v20 = vpop.permute.xlu2 %1871  ;;  %v4489_v54 = vpop.permute.xlu0 %1963 }
 0x315   :  { %v1916_v59 = vsub.f32 %v4349_v42, %v1872_v20 }
 0x317   :  { %2138 = vperm.xlu2 %2304, %v1916_v59  }
 0x318   :  { %2083 = vperm.xlu1 %2306, %v1905_v62   ;;  %v4493_v53 = vpop.permute.xlu1 %1958 }
 0x31c   :  { %v2069_v25 = vpop.permute.xlu2 %2068  ;;  %v1858_v49 = vpop.permute.xlu0 %1857 }
 0x31d   :  { %v2163_v33 = vadd.f32 %v2069_v25, %v2023_v50  ;;  %v2164_v1 = vadd.f32 %v2069_v25, %v2024_v0  ;;  %v1909_v56 = vsub.f32 %v4282_v48, %v1858_v49 }
 0x31f   :  { %2203 = vst [vmem:[#allocation2 + $0x10] sm:$0xff] %v2163_v33  ;;  %2103 = vperm.xlu0 %2300, %v1909_v56  }
 0x320   :  { %2204 = vst.msk [vmem:[#allocation2 + $0x18] sm:$0xff] %vm1161_vm0, %v2164_v1  ;;  %v1856_v47 = vpop.permute.xlu1 %1855 }
 0x321   :  { %v1908_v42 = vsub.f32 %v4302_v60, %v1856_v47  ;;  %v2027_v60 = vmul.f32 %v4414_v32, %v3727_v43  ;;  %v2034_v43 = vmul.f32 %v2349_v23, %v4450_v30 }
 0x323   :  { %2098 = vperm.xlu1 %2306, %v1908_v42  }
 0x324   :  { %v4501_v58 = vpop.permute.xlu0 %1978 }
 0x325   :  { %v4503_v3 = vpop.permute.xlu2 %2013 }
 0x328   :  { %v4505_v6 = vpop.permute.xlu1 %1973 }
 0x32c   :  { %v1864_v28 = vpop.permute.xlu0 %1863 }
 0x32d   :  { %v1912_v61 = vsub.f32 %v4344_v41, %v1864_v28  ;;  %v1878_v55 = vpop.permute.xlu2 %1877  ;;  %v2351_v28 = vld [vmem:[#allocation2 + $0x8] sm:$0xff] }
 0x32e   :  { %v1919_v48 = vsub.f32 %v4420_v14, %v1878_v55 }
 0x32f   :  { %2118 = vperm.xlu0 %2300, %v1912_v61  }
 0x330   :  { %2153 = vperm.xlu2 %2304, %v1919_v48   ;;  %v1862_v35 = vpop.permute.xlu1 %1861 }
 0x331   :  { %v1911_v9 = vsub.f32 %v4371_v45, %v1862_v35  ;;  %v2033_v45 = vmul.f32 %v4450_v30, %v3757_v34  ;;  %v2039_v34 = vmul.f32 %v4464_v22, %v3787_v24  ;;  %v2350_v30 = vld [vmem:[#allocation2 + $0x98] sm:$0xff]  ;;  %v2021_v24 = vmul.f32 %v4461_v7, %v4785_v18  ;;  %v2352_v35 = vld [vmem:[#allocation2 + $0xc8] sm:$0xff] }
 0x332   :  { %v2040_v25 = vmul.f32 %v2350_v30, %v4464_v22  ;;  %v2022_v22 = vmul.f32 %v2351_v28, %v4461_v7  ;;  %v2025_v18 = vmul.f32 %v4471_v40, %v3714_v38  ;;  %v2051_v7 = vmul.f32 %v4484_v36, %v3841_v51  ;;  %v2359_v28 = vld [vmem:[#allocation2 + $0x78] sm:$0xff] }
 0x333   :  { %2113 = vperm.xlu1 %2306, %v1911_v9   ;;  %v2046_v9 = vmul.f32 %v2352_v35, %v4467_v15  ;;  %v2031_v51 = vmul.f32 %v4478_v8, %v3747_v12  ;;  %v2356_v12 = vld [vmem:[#allocation2 + $0x128] sm:$0xff] }
 0x334   :  { %v4513_v39 = vpop.permute.xlu0 %1993  ;;  %v2058_v30 = vmul.f32 %v2356_v12, %v4503_v3 }
 0x335   :  { %v2079_v27 = vpop.permute.xlu2 %2078 }
 0x336   :  { %v2167_v13 = vadd.f32 %v2079_v27, %v2027_v60  ;;  %v2168_v41 = vadd.f32 %v2079_v27, %v2028_v52  ;;  %v2353_v52 = vld [vmem:[#allocation2 + $0xf8] sm:$0xff] }
 0x337   :  { %v2052_v27 = vmul.f32 %v2353_v52, %v4484_v36  ;;  %v2355_v36 = vld [vmem:[#allocation2 + $0x58] sm:$0xff] }
 0x338   :  { %2207 = vst [vmem:[#allocation2 + $0x30] sm:$0xff] %v2167_v13  ;;  %v4516_v14 = vpop.permute.xlu1 %1988  ;;  %v2354_v13 = vld [vmem:[#allocation2 + $0x28] sm:$0xff] }
 0x339   :  { %2208 = vst.msk [vmem:[#allocation2 + $0x38] sm:$0xff] %vm1161_vm0, %v2168_v41 }
 0x33c   :  { %v1870_v17 = vpop.permute.xlu0 %1869 }
 0x33d   :  { %v1915_v32 = vsub.f32 %v4397_v26, %v1870_v17  ;;  %v2094_v20 = vpop.permute.xlu2 %2093 }
 0x33e   :  { %v2173_v59 = vadd.f32 %v2094_v20, %v2033_v45  ;;  %v2174_v62 = vadd.f32 %v2094_v20, %v2034_v43 }
 0x33f   :  { %2133 = vperm.xlu0 %2300, %v1915_v32  }
 0x340   :  { %2213 = vst [vmem:[#allocation2 + $0x60] sm:$0xff] %v2173_v59  ;;  %v1868_v50 = vpop.permute.xlu1 %1867 }
 0x341   :  { %2214 = vst.msk [vmem:[#allocation2 + $0x68] sm:$0xff] %vm1161_vm0, %v2174_v62  ;;  %v1914_v63 = vsub.f32 %v4412_v37, %v1868_v50 }
 0x343   :  { %2128 = vperm.xlu1 %2306, %v1914_v63   ;;  %v2029_v63 = vmul.f32 %v4482_v44, %v3737_v16  ;;  %v2037_v16 = vmul.f32 %v4489_v54, %v3777_v19 }
 0x344   :  { %v4524_v0 = vpop.permute.xlu0 %2008 }
 0x348   :  { %v4529_v26 = vpop.permute.xlu1 %2003 }
 0x34a   :  { %v2109_v49 = vpop.permute.xlu2 %2108 }
 0x34b   :  { %v2179_v33 = vadd.f32 %v2109_v49, %v2039_v34  ;;  %v2180_v1 = vadd.f32 %v2109_v49, %v2040_v25  ;;  %v2057_v34 = vmul.f32 %v4503_v3, %v3868_v57  ;;  %v2358_v57 = vld [vmem:[#allocation2 + $0x88] sm:$0xff] }
 0x34c   :  { %v1876_v56 = vpop.permute.xlu0 %1875 }
 0x34d   :  { %2219 = vst [vmem:[#allocation2 + $0x90] sm:$0xff] %v2179_v33  ;;  %v1918_v47 = vsub.f32 %v4434_v21, %v1876_v56  ;;  %v2045_v21 = vmul.f32 %v4467_v15, %v3814_v11  ;;  %v2026_v11 = vmul.f32 %v2354_v13, %v4471_v40  ;;  %v2032_v40 = vmul.f32 %v2355_v36, %v4478_v8  ;;  %v2357_v8 = vld [vmem:[#allocation2 + $0x48] sm:$0xff] }
 0x34e   :  { %2220 = vst.msk [vmem:[#allocation2 + $0x98] sm:$0xff] %vm1161_vm0, %v2180_v1  ;;  %v2030_v25 = vmul.f32 %v2357_v8, %v4482_v44 }
 0x34f   :  { %2148 = vperm.xlu0 %2300, %v1918_v47  }
 0x350   :  { %v1874_v37 = vpop.permute.xlu1 %1873 }
 0x351   :  { %v1917_v42 = vsub.f32 %v4446_v46, %v1874_v37  ;;  %v2038_v37 = vmul.f32 %v2358_v57, %v4489_v54  ;;  %v2043_v54 = vmul.f32 %v4501_v58, %v3805_v2  ;;  %v2049_v2 = vmul.f32 %v4513_v39, %v3832_v31  ;;  %v4794_v31 = vld [vmem:[#allocation22_spill] sm:$0xff] }
 0x353   :  { %2143 = vperm.xlu1 %2306, %v1917_v42  }
 0x354   :  { %v2064_v61 = vpop.permute.xlu0 %2063 }
 0x355   :  { %v2161_v55 = vadd.f32 %v2064_v61, %v2021_v24  ;;  %v2162_v48 = vadd.f32 %v2064_v61, %v2022_v22  ;;  %v2035_v24 = vmul.f32 %v4493_v53, %v3767_v29  ;;  %v2036_v22 = vmul.f32 %v2359_v28, %v4493_v53 }
 0x356   :  { %v2041_v53 = vmul.f32 %v4505_v6, %v3796_v4 }
 0x357   :  { %2201 = vst [vmem:[#allocation2] sm:$0xff] %v2161_v55 }
 0x358   :  { %2202 = vst.msk [vmem:[#allocation2 + $0x8] sm:$0xff] %vm1161_vm0, %v2162_v48  ;;  %v2360_v48 = vld [vmem:[#allocation2 + $0xb8] sm:$0xff] }
 0x35a   :  { %v2124_v46 = vpop.permute.xlu2 %2123 }
 0x35b   :  { %v2185_v60 = vadd.f32 %v2124_v46, %v2045_v21  ;;  %v2186_v10 = vadd.f32 %v2124_v46, %v2046_v9  ;;  %v2044_v21 = vmul.f32 %v2360_v48, %v4501_v58  ;;  %v2361_v46 = vld [vmem:[#allocation2 + $0xa8] sm:$0xff] }
 0x35c   :  { %v2362_v58 = vld [vmem:[#allocation2 + $0xe8] sm:$0xff] }
 0x35d   :  { %2225 = vst [vmem:[#allocation2 + $0xc0] sm:$0xff] %v2185_v60  ;;  %v2042_v60 = vmul.f32 %v2361_v46, %v4505_v6  ;;  %v2050_v52 = vmul.f32 %v2362_v58, %v4513_v39  ;;  %v2055_v39 = vmul.f32 %v4524_v0, %v4794_v31 }
 0x35e   :  { %2226 = vst.msk [vmem:[#allocation2 + $0xc8] sm:$0xff] %vm1161_vm0, %v2186_v10 }
 0x371   :  { %v2139_v41 = vpop.permute.xlu2 %2138  ;;  %v2074_v15 = vpop.permute.xlu1 %2073 }
 0x372   :  { %v2191_v45 = vadd.f32 %v2139_v41, %v2051_v7  ;;  %v2192_v23 = vadd.f32 %v2139_v41, %v2052_v27  ;;  %v2165_v43 = vadd.f32 %v2074_v15, %v2025_v18  ;;  %v2166_v17 = vadd.f32 %v2074_v15, %v2026_v11  ;;  %v4793_v11 = vld [vmem:[#allocation12_spill] sm:$0xff] }
 0x373   :  { %v2047_v6 = vmul.f32 %v4516_v14, %v4793_v11  ;;  %v2363_v41 = vld [vmem:[#allocation2 + $0xd8] sm:$0xff] }
 0x374   :  { %2231 = vst [vmem:[#allocation2 + $0xf0] sm:$0xff] %v2191_v45  ;;  %v2048_v15 = vmul.f32 %v2363_v41, %v4516_v14 }
 0x375   :  { %2232 = vst.msk [vmem:[#allocation2 + $0xf8] sm:$0xff] %vm1161_vm0, %v2192_v23 }
 0x376   :  { %2205 = vst [vmem:[#allocation2 + $0x20] sm:$0xff] %v2165_v43 }
 0x377   :  { %2206 = vst.msk [vmem:[#allocation2 + $0x28] sm:$0xff] %vm1161_vm0, %v2166_v17  ;;  %v2364_v17 = vld [vmem:[#allocation2 + $0x118] sm:$0xff] }
 0x37a   :  { %v4550_v38 = vpop.permute.xlu1 %2018 }
 0x381   :  { %v2089_v32 = vpop.permute.xlu0 %2088 }
 0x382   :  { %v2171_v20 = vadd.f32 %v2089_v32, %v2031_v51  ;;  %v2172_v59 = vadd.f32 %v2089_v32, %v2032_v40  ;;  %v1880_v62 = vpop.permute.xlu1 %1879  ;;  %v2056_v51 = vmul.f32 %v2364_v17, %v4524_v0  ;;  %v2366_v0 = vld [vmem:[#allocation2 + $0x130] sm:$0xff] }
 0x383   :  { %v1920_v50 = vsub.f32 %v4476_v5, %v1880_v62  ;;  %v2059_v12 = vmul.f32 %v2366_v0, %v4550_v38 }
 0x384   :  { %2211 = vst [vmem:[#allocation2 + $0x50] sm:$0xff] %v2171_v20  ;;  %v4795_v20 = vld [vmem:[#allocation19_spill] sm:$0xff] }
 0x385   :  { %2212 = vst.msk [vmem:[#allocation2 + $0x58] sm:$0xff] %vm1161_vm0, %v2172_v59  ;;  %2158 = vperm.xlu1 %2306, %v1920_v50   ;;  %v2053_v14 = vmul.f32 %v4529_v26, %v4795_v20  ;;  %v2365_v59 = vld [vmem:[#allocation2 + $0x108] sm:$0xff] }
 0x386   :  { %v2054_v62 = vmul.f32 %v2365_v59, %v4529_v26 }
 0x38a   :  { %v2154_v49 = vpop.permute.xlu2 %2153  ;;  %v2084_v33 = vpop.permute.xlu1 %2083 }
 0x38b   :  { %v2197_v1 = vadd.f32 %v2154_v49, %v2057_v34  ;;  %v2198_v5 = vadd.f32 %v2154_v49, %v2058_v30  ;;  %v2169_v56 = vadd.f32 %v2084_v33, %v2029_v63  ;;  %v2170_v47 = vadd.f32 %v2084_v33, %v2030_v25  ;;  %v2367_v30 = vld [vmem:[#allocation2 + $0x138] sm:$0xff] }
 0x38c   :  { %v2060_v26 = vmul.f32 %v2367_v30, %v4550_v38 }
 0x38d   :  { %2237 = vst [vmem:[#allocation2 + $0x120] sm:$0xff] %v2197_v1 }
 0x38e   :  { %2238 = vst.msk [vmem:[#allocation2 + $0x128] sm:$0xff] %vm1161_vm0, %v2198_v5 }
 0x38f   :  { %2209 = vst [vmem:[#allocation2 + $0x40] sm:$0xff] %v2169_v56 }
 0x390   :  { %2210 = vst.msk [vmem:[#allocation2 + $0x48] sm:$0xff] %vm1161_vm0, %v2170_v47 }
 0x391   :  { %v2104_v3 = vpop.permute.xlu0 %2103 }
 0x392   :  { %v2177_v44 = vadd.f32 %v2104_v3, %v2037_v16  ;;  %v2178_v42 = vadd.f32 %v2104_v3, %v2038_v37 }
 0x394   :  { %2217 = vst [vmem:[#allocation2 + $0x80] sm:$0xff] %v2177_v44 }
 0x395   :  { %2218 = vst.msk [vmem:[#allocation2 + $0x88] sm:$0xff] %vm1161_vm0, %v2178_v42  ;;  %v2099_v61 = vpop.permute.xlu1 %2098 }
 0x396   :  { %v2175_v55 = vadd.f32 %v2099_v61, %v2035_v24  ;;  %v2176_v19 = vadd.f32 %v2099_v61, %v2036_v22 }
 0x398   :  { %2215 = vst [vmem:[#allocation2 + $0x70] sm:$0xff] %v2175_v55 }
 0x399   :  { %2216 = vst.msk [vmem:[#allocation2 + $0x78] sm:$0xff] %vm1161_vm0, %v2176_v19 }
 0x3a1   :  { %v2119_v35 = vpop.permute.xlu0 %2118 }
 0x3a2   :  { %v2183_v9 = vadd.f32 %v2119_v35, %v2043_v54  ;;  %v2184_v29 = vadd.f32 %v2119_v35, %v2044_v21 }
 0x3a4   :  { %2223 = vst [vmem:[#allocation2 + $0xb0] sm:$0xff] %v2183_v9 }
 0x3a5   :  { %2224 = vst.msk [vmem:[#allocation2 + $0xb8] sm:$0xff] %vm1161_vm0, %v2184_v29  ;;  %v2114_v10 = vpop.permute.xlu1 %2113 }
 0x3a6   :  { %v2181_v18 = vadd.f32 %v2114_v10, %v2041_v53  ;;  %v2182_v7 = vadd.f32 %v2114_v10, %v2042_v60 }
 0x3a8   :  { %2221 = vst [vmem:[#allocation2 + $0xa0] sm:$0xff] %v2181_v18 }
 0x3a9   :  { %2222 = vst.msk [vmem:[#allocation2 + $0xa8] sm:$0xff] %vm1161_vm0, %v2182_v7 }
 0x3b1   :  { %v2134_v27 = vpop.permute.xlu0 %2133 }
 0x3b2   :  { %v2189_v13 = vadd.f32 %v2134_v27, %v2049_v2  ;;  %v2190_v4 = vadd.f32 %v2134_v27, %v2050_v52 }
 0x3b4   :  { %2229 = vst [vmem:[#allocation2 + $0xe0] sm:$0xff] %v2189_v13 }
 0x3b5   :  { %2230 = vst.msk [vmem:[#allocation2 + $0xe8] sm:$0xff] %vm1161_vm0, %v2190_v4  ;;  %v2129_v45 = vpop.permute.xlu1 %2128 }
 0x3b6   :  { %v2187_v23 = vadd.f32 %v2129_v45, %v2047_v6  ;;  %v2188_v43 = vadd.f32 %v2129_v45, %v2048_v15 }
 0x3b8   :  { %2227 = vst [vmem:[#allocation2 + $0xd0] sm:$0xff] %v2187_v23 }
 0x3b9   :  { %2228 = vst.msk [vmem:[#allocation2 + $0xd8] sm:$0xff] %vm1161_vm0, %v2188_v43 }
 0x3c1   :  { %v2149_v36 = vpop.permute.xlu0 %2148 }
 0x3c2   :  { %v2195_v40 = vadd.f32 %v2149_v36, %v2055_v39  ;;  %v2196_v32 = vadd.f32 %v2149_v36, %v2056_v51 }
 0x3c4   :  { %2235 = vst [vmem:[#allocation2 + $0x110] sm:$0xff] %v2195_v40 }
 0x3c5   :  { %2236 = vst.msk [vmem:[#allocation2 + $0x118] sm:$0xff] %vm1161_vm0, %v2196_v32  ;;  %v2144_v50 = vpop.permute.xlu1 %2143 }
 0x3c6   :  { %v2193_v63 = vadd.f32 %v2144_v50, %v2053_v14  ;;  %v2194_v34 = vadd.f32 %v2144_v50, %v2054_v62 }
 0x3c8   :  { %2233 = vst [vmem:[#allocation2 + $0x100] sm:$0xff] %v2193_v63 }
 0x3c9   :  { %2234 = vst.msk [vmem:[#allocation2 + $0x108] sm:$0xff] %vm1161_vm0, %v2194_v34 }
 0x3f7   :  { %v2159_v8 = vpop.permute.xlu1 %2158 }
 0x3f8   :  { %v2199_v25 = vadd.f32 %v2159_v8, %v2059_v12  ;;  %v2200_v49 = vadd.f32 %v2159_v8, %v2060_v26 }
 0x3fa   :  { %2239 = vst [vmem:[#allocation2 + $0x130] sm:$0xff] %v2199_v25 }
 0x3fb   :  { %2240 = vst.msk [vmem:[#allocation2 + $0x138] sm:$0xff] %vm1161_vm0, %v2200_v49 }
 0x3fc   :  { %2253 = dma.vmem_to_hbm [thread:$0]  %s2246_s25, 5120, %s2248_s0, [#allocation3], %s2398_s12, %s2398_s12, %s2399_s13  }
 0x3fd   :  { %2392 = dma.done.wait [#allocation3], 5120  }
 0x3fe   :  { %2393 = vsyncadd [#allocation3], 4294962176 }
 0x3ff   :  { %2258 = vsyncpa [#allocation3], 1 }

</bundles_post_ra>
